<compile_context>
chip_gen: v7x
topology: tpu7x:2x2x1
jax: 0.10.0
libtpu: 0.0.40
codegen_flags: <defaults>
</compile_context>

<pallas_src>
import functools

import jax
import jax.numpy as jnp
from jax import lax
from jax.experimental import pallas as pl
from jax.experimental.pallas import tpu as pltpu


def _ode_func_kernel(x_ref, w1_ref, b1_ref, w2_ref, b2_ref, o_ref,
                     xp_ref, hp_ref, *, H, W, PAD):
    """One image, fully fused in VMEM.

    x_ref : (1, 1, H*W)        flattened input image (NCHW order, Cin=1)
    w1_ref: (64, 9)            conv1 weights, tap index = ky*3 + kx
    b1_ref: (64, 1)            conv1 bias
    w2_ref: (9, 64, 64)        conv2 weights, [tap, cout, cin]
    b2_ref: (64, 1)            conv2 bias
    o_ref : (1, 64, H*W)       output (flattened NCHW slab, lane-dense)
    xp_ref: (1, H*W + 2*PAD)   scratch: halo-padded flat input row
    hp_ref: (64, H*W + 2*PAD)  scratch: halo-padded flat conv1 activations
    """
    HW = H * W
    C1 = o_ref.shape[1]  # 64

    # ---- edge masks: only the dx=+-1 row-wrap needs masking (the zero halo already
    #      handles all dy out-of-bounds reads). Hoisted once, reused by both convs.
    col = lax.broadcasted_iota(jnp.int32, (1, HW), 1)
    xx = col % W
    mask_l = xx >= 1          # valid outputs for dx = -1 taps
    mask_r = xx < (W - 1)     # valid outputs for dx = +1 taps

    taps = [(ky - 1, kx - 1) for ky in range(3) for kx in range(3)]
    masks = [mask_l if dx < 0 else (mask_r if dx > 0 else None) for (_dy, dx) in taps]

    # ---- stage the halo-padded flat input row (pad=1 handled in-kernel, zero only halos)
    xp_ref[:, :PAD] = jnp.zeros((1, PAD), jnp.float32)
    xp_ref[:, PAD + HW:PAD + HW + PAD] = jnp.zeros((1, PAD), jnp.float32)
    xp_ref[:, PAD:PAD + HW] = x_ref[0]

    # ---- conv1 (Cin=1): 9 VPU broadcast multiply-adds; accumulator starts at the bias
    acc1 = jnp.broadcast_to(b1_ref[...], (C1, HW))
    for tap, (dy, dx) in enumerate(taps):
        start = PAD + dy * W + dx              # static lane offset into the padded row
        xs = xp_ref[:, start:start + HW]       # (1, HW)
        if masks[tap] is not None:
            xs = jnp.where(masks[tap], xs, 0.0)
        acc1 = acc1 + w1_ref[:, tap:tap + 1] * xs    # (64,1)*(1,HW) outer product
    h1 = jnp.maximum(acc1, 0.0)                # fused ReLU, never leaves VMEM

    # ---- stage halo-padded conv1 activations for conv2's shifted slices
    hp_ref[:, :PAD] = jnp.zeros((C1, PAD), jnp.float32)
    hp_ref[:, PAD + HW:PAD + HW + PAD] = jnp.zeros((C1, PAD), jnp.float32)
    hp_ref[:, PAD:PAD + HW] = h1

    # ---- conv2: 9 MXU matmuls (64,64)@(64,HW); accumulator starts at the bias
    acc2 = jnp.broadcast_to(b2_ref[...], (C1, HW))
    for tap, (dy, dx) in enumerate(taps):
        start = PAD + dy * W + dx
        hs = hp_ref[:, start:start + HW]       # (64, HW)
        if masks[tap] is not None:
            hs = jnp.where(masks[tap], hs, 0.0)
        acc2 = acc2 + jnp.dot(w2_ref[tap], hs,
                              preferred_element_type=jnp.float32)
    o_ref[0] = jnp.maximum(acc2, 0.0).astype(o_ref.dtype)   # fused ReLU, lane-dense store


def ode_func_forward(x_nchw, params):
    """Forward pass of ODEFunc. x_nchw: (N, 1, H, W) f32 -> (N, 64, H, W) f32."""
    N, cin, H, W = x_nchw.shape
    assert cin == 1, "ODEFunc.conv1 expects a single input channel"
    HW = H * W
    C1 = params["b1"].shape[0]
    # Flat halo big enough for shifts dy*W+dx in [-(W+1), W+1]; rounded up to a multiple
    # of 128 so the center writes into the scratch rows stay lane-aligned.
    PAD = ((W + 1 + 127) // 128) * 128
    PADW = HW + 2 * PAD

    x_flat = x_nchw.reshape(N, 1, HW)   # free reshape, keeps NCHW ordering

    kernel = functools.partial(_ode_func_kernel, H=H, W=W, PAD=PAD)

    out_flat = pl.pallas_call(
        kernel,
        out_shape=jax.ShapeDtypeStruct((N, C1, HW), jnp.float32),
        grid=(N,),
        in_specs=[
            pl.BlockSpec((1, 1, HW), lambda n: (n, 0, 0)),
            pl.BlockSpec((C1, 9), lambda n: (0, 0)),
            pl.BlockSpec((C1, 1), lambda n: (0, 0)),
            pl.BlockSpec((9, C1, C1), lambda n: (0, 0, 0)),
            pl.BlockSpec((C1, 1), lambda n: (0, 0)),
        ],
        out_specs=pl.BlockSpec((1, C1, HW), lambda n: (n, 0, 0)),
        scratch_shapes=[
            pltpu.VMEM((1, PADW), jnp.float32),
            pltpu.VMEM((C1, PADW), jnp.float32),
        ],
        compiler_params=pltpu.CompilerParams(
            dimension_semantics=("parallel",)),     # images split across TCs on v7x
    )(x_flat, params["w1"], params["b1"], params["w2"], params["b2"])

    return out_flat.reshape(N, C1, H, W)            # free reshape: already NCHW order


def init_params(key):
    k1, k2, k3, k4 = jax.random.split(key, 4)
    # conv1: Conv2d(1, 64, 3, padding=1); conv2: Conv2d(64, 64, 3, padding=1)
    w1_oihw = jax.random.normal(k1, (64, 1, 3, 3), jnp.float32) * 0.1
    b1 = jax.random.normal(k2, (64,), jnp.float32) * 0.1
    w2_oihw = jax.random.normal(k3, (64, 64, 3, 3), jnp.float32) * 0.05
    b2 = jax.random.normal(k4, (64,), jnp.float32) * 0.1
    params = {
        "w1": w1_oihw.reshape(64, 9),                                   # [cout, ky*3+kx]
        "b1": b1.reshape(64, 1),
        "w2": jnp.transpose(w2_oihw, (2, 3, 0, 1)).reshape(9, 64, 64),  # [tap, cout, cin]
        "b2": b2.reshape(64, 1),
    }
    return params, (w1_oihw, b1, w2_oihw, b2)


def _reference_forward(x_nchw, raw):
    """Pure-JAX reference (lax conv, NCHW) for a correctness sanity check."""
    w1, b1, w2, b2 = raw
    dn = lax.conv_dimension_numbers(x_nchw.shape, w1.shape, ("NCHW", "OIHW", "NCHW"))
    h = lax.conv_general_dilated(x_nchw, w1, (1, 1), ((1, 1), (1, 1)),
                                 dimension_numbers=dn,
                                 precision=lax.Precision.HIGHEST)
    h = jnp.maximum(h + b1[None, :, None, None], 0.0)
    dn2 = lax.conv_dimension_numbers(h.shape, w2.shape, ("NCHW", "OIHW", "NCHW"))
    h = lax.conv_general_dilated(h, w2, (1, 1), ((1, 1), (1, 1)),
                                 dimension_numbers=dn2,
                                 precision=lax.Precision.HIGHEST)
    return jnp.maximum(h + b2[None, :, None, None], 0.0)


if __name__ == "__main__":
    key = jax.random.PRNGKey(0)
    kx, kp = jax.random.split(key)
    # Small shapes consistent with the module: 1 input channel.
    x = jax.random.normal(kx, (2, 1, 16, 16), jnp.float32)
    params, raw = init_params(kp)

    fwd = jax.jit(ode_func_forward)
    out = jax.block_until_ready(fwd(x, params))
    ref = jax.block_until_ready(_reference_forward(x, raw))

    assert out.shape == (2, 64, 16, 16), out.shape
    max_err = float(jnp.max(jnp.abs(out - ref)))
    # Tolerance allows for MXU f32 matmul pass differences vs. the XLA conv reference.
    assert jnp.allclose(out, ref, atol=1e-2, rtol=1e-2), f"max_err={max_err}"
    print("KERNEL_OK")
</pallas_src>

<mosaic_0001>
module attributes {stable_mosaic.version = 11 : i64} {
  func.func @_ode_func_kernel(%arg0: i32, %arg1: memref<1x1x256xf32, #tpu.memory_space<vmem>>, %arg2: memref<64x9xf32, #tpu.memory_space<vmem>>, %arg3: memref<64x1xf32, #tpu.memory_space<vmem>>, %arg4: memref<9x64x64xf32, #tpu.memory_space<vmem>>, %arg5: memref<64x1xf32, #tpu.memory_space<vmem>>, %arg6: memref<1x64x256xf32, #tpu.memory_space<vmem>>, %arg7: memref<1x512xf32, #tpu.memory_space<vmem>>, %arg8: memref<64x512xf32, #tpu.memory_space<vmem>>) attributes {dimension_semantics = [#tpu.dimension_semantics<parallel>], iteration_bounds = array<i64: 2>, scalar_prefetch = 0 : i64, scratch_operands = 2 : i64, tpu.core_type = #tpu.core_type<tc>, window_params = [{transform_indices = @transform_0, window_bounds = array<i64: 1, 1, 256>}, {pipeline_mode = #tpu.pipeline_mode<synchronous>, transform_indices = @transform_1, window_bounds = array<i64: 64, 9>}, {pipeline_mode = #tpu.pipeline_mode<synchronous>, transform_indices = @transform_2, window_bounds = array<i64: 64, 1>}, {pipeline_mode = #tpu.pipeline_mode<synchronous>, transform_indices = @transform_3, window_bounds = array<i64: 9, 64, 64>}, {pipeline_mode = #tpu.pipeline_mode<synchronous>, transform_indices = @transform_4, window_bounds = array<i64: 64, 1>}, {transform_indices = @transform_5, window_bounds = array<i64: 1, 64, 256>}]} {
    %0 = tpu.iota {dimensions = array<i32: 1>} : vector<1x256xi32>
    %c16_i32 = arith.constant 16 : i32
    %c0_i32 = arith.constant 0 : i32
    %1 = arith.cmpi eq, %c16_i32, %c0_i32 : i32
    %c1_i32 = arith.constant 1 : i32
    %2 = arith.select %1, %c1_i32, %c16_i32 : i32
    %3 = vector.broadcast %2 : i32 to vector<1x256xi32>
    %4 = arith.remsi %0, %3 : vector<1x256xi32>
    %c0_i32_0 = arith.constant 0 : i32
    %5 = vector.broadcast %c0_i32_0 : i32 to vector<1x256xi32>
    %6 = arith.cmpi ne, %4, %5 : vector<1x256xi32>
    %c0_i32_1 = arith.constant 0 : i32
    %7 = vector.broadcast %c0_i32_1 : i32 to vector<1x256xi32>
    %8 = arith.cmpi slt, %4, %7 : vector<1x256xi32>
    %c0_i32_2 = arith.constant 0 : i32
    %9 = arith.cmpi slt, %2, %c0_i32_2 : i32
    %10 = vector.broadcast %9 : i1 to vector<1x256xi1>
    %11 = vector.broadcast %10 : vector<1x256xi1> to vector<1x256xi1>
    %12 = arith.xori %8, %11 : vector<1x256xi1>
    %13 = arith.andi %12, %6 : vector<1x256xi1>
    %14 = vector.broadcast %2 : i32 to vector<1x256xi32>
    %15 = arith.addi %4, %14 : vector<1x256xi32>
    %16 = arith.select %13, %15, %4 : vector<1x256xi1>, vector<1x256xi32>
    %c1_i32_3 = arith.constant 1 : i32
    %17 = vector.broadcast %c1_i32_3 : i32 to vector<1x256xi32>
    %18 = arith.cmpi sge, %16, %17 : vector<1x256xi32>
    %c15_i32 = arith.constant 15 : i32
    %19 = vector.broadcast %c15_i32 : i32 to vector<1x256xi32>
    %20 = arith.cmpi slt, %16, %19 : vector<1x256xi32>
    %cst = arith.constant 0.000000e+00 : f32
    %21 = vector.broadcast %cst : f32 to vector<1x128xf32>
    %c0 = arith.constant 0 : index
    %c0_4 = arith.constant 0 : index
    %22 = vector.load %arg7[%c0, %c0_4] : memref<1x512xf32, #tpu.memory_space<vmem>>, vector<1x128xf32>
    tpu.vector_store %arg7[%c0, %c0_4], %21 {strides = array<i32>} : memref<1x512xf32, #tpu.memory_space<vmem>>, vector<1x128xf32>,
    %cst_5 = arith.constant 0.000000e+00 : f32
    %23 = vector.broadcast %cst_5 : f32 to vector<1x128xf32>
    %c0_6 = arith.constant 0 : index
    %c384 = arith.constant 384 : index
    %24 = vector.load %arg7[%c0_6, %c384] : memref<1x512xf32, #tpu.memory_space<vmem>>, vector<1x128xf32>
    tpu.vector_store %arg7[%c0_6, %c384], %23 {strides = array<i32>} : memref<1x512xf32, #tpu.memory_space<vmem>>, vector<1x128xf32>,
    %c0_7 = arith.constant 0 : index
    %c0_8 = arith.constant 0 : index
    %c0_9 = arith.constant 0 : index
    %25 = vector.load %arg1[%c0_7, %c0_8, %c0_9] : memref<1x1x256xf32, #tpu.memory_space<vmem>>, vector<1x1x256xf32>
    %26 = vector.shape_cast %25 : vector<1x1x256xf32> to vector<1x256xf32>
    %c0_10 = arith.constant 0 : index
    %c128 = arith.constant 128 : index
    %27 = vector.load %arg7[%c0_10, %c128] : memref<1x512xf32, #tpu.memory_space<vmem>>, vector<1x256xf32>
    tpu.vector_store %arg7[%c0_10, %c128], %26 {strides = array<i32>} : memref<1x512xf32, #tpu.memory_space<vmem>>, vector<1x256xf32>,
    %c0_11 = arith.constant 0 : index
    %c0_12 = arith.constant 0 : index
    %28 = vector.load %arg3[%c0_11, %c0_12] : memref<64x1xf32, #tpu.memory_space<vmem>>, vector<64x1xf32>
    %29 = vector.shape_cast %28 : vector<64x1xf32> to vector<64x1xf32>
    %30 = vector.broadcast %29 : vector<64x1xf32> to vector<64x256xf32>
    %c0_13 = arith.constant 0 : index
    %c111 = arith.constant 111 : index
    %31 = vector.load %arg7[%c0_13, %c111] : memref<1x512xf32, #tpu.memory_space<vmem>>, vector<1x256xf32>
    %cst_14 = arith.constant 0.000000e+00 : f32
    %32 = vector.broadcast %cst_14 : f32 to vector<1x256xf32>
    %33 = arith.select %18, %31, %32 : vector<1x256xi1>, vector<1x256xf32>
    %c0_15 = arith.constant 0 : index
    %c0_16 = arith.constant 0 : index
    %34 = vector.load %arg2[%c0_15, %c0_16] : memref<64x9xf32, #tpu.memory_space<vmem>>, vector<64x1xf32>
    %35 = vector.broadcast %34 : vector<64x1xf32> to vector<64x256xf32>
    %36 = vector.broadcast %33 : vector<1x256xf32> to vector<64x256xf32>
    %37 = arith.mulf %35, %36 : vector<64x256xf32>
    %38 = arith.addf %30, %37 : vector<64x256xf32>
    %c0_17 = arith.constant 0 : index
    %c112 = arith.constant 112 : index
    %39 = vector.load %arg7[%c0_17, %c112] : memref<1x512xf32, #tpu.memory_space<vmem>>, vector<1x256xf32>
    %c0_18 = arith.constant 0 : index
    %c1 = arith.constant 1 : index
    %40 = vector.load %arg2[%c0_18, %c1] : memref<64x9xf32, #tpu.memory_space<vmem>>, vector<64x1xf32>
    %41 = vector.broadcast %40 : vector<64x1xf32> to vector<64x256xf32>
    %42 = vector.broadcast %39 : vector<1x256xf32> to vector<64x256xf32>
    %43 = arith.mulf %41, %42 : vector<64x256xf32>
    %44 = arith.addf %38, %43 : vector<64x256xf32>
    %c0_19 = arith.constant 0 : index
    %c113 = arith.constant 113 : index
    %45 = vector.load %arg7[%c0_19, %c113] : memref<1x512xf32, #tpu.memory_space<vmem>>, vector<1x256xf32>
    %cst_20 = arith.constant 0.000000e+00 : f32
    %46 = vector.broadcast %cst_20 : f32 to vector<1x256xf32>
    %47 = arith.select %20, %45, %46 : vector<1x256xi1>, vector<1x256xf32>
    %c0_21 = arith.constant 0 : index
    %c2 = arith.constant 2 : index
    %48 = vector.load %arg2[%c0_21, %c2] : memref<64x9xf32, #tpu.memory_space<vmem>>, vector<64x1xf32>
    %49 = vector.broadcast %48 : vector<64x1xf32> to vector<64x256xf32>
    %50 = vector.broadcast %47 : vector<1x256xf32> to vector<64x256xf32>
    %51 = arith.mulf %49, %50 : vector<64x256xf32>
    %52 = arith.addf %44, %51 : vector<64x256xf32>
    %c0_22 = arith.constant 0 : index
    %c127 = arith.constant 127 : index
    %53 = vector.load %arg7[%c0_22, %c127] : memref<1x512xf32, #tpu.memory_space<vmem>>, vector<1x256xf32>
    %cst_23 = arith.constant 0.000000e+00 : f32
    %54 = vector.broadcast %cst_23 : f32 to vector<1x256xf32>
    %55 = arith.select %18, %53, %54 : vector<1x256xi1>, vector<1x256xf32>
    %c0_24 = arith.constant 0 : index
    %c3 = arith.constant 3 : index
    %56 = vector.load %arg2[%c0_24, %c3] : memref<64x9xf32, #tpu.memory_space<vmem>>, vector<64x1xf32>
    %57 = vector.broadcast %56 : vector<64x1xf32> to vector<64x256xf32>
    %58 = vector.broadcast %55 : vector<1x256xf32> to vector<64x256xf32>
    %59 = arith.mulf %57, %58 : vector<64x256xf32>
    %60 = arith.addf %52, %59 : vector<64x256xf32>
    %c0_25 = arith.constant 0 : index
    %c128_26 = arith.constant 128 : index
    %61 = vector.load %arg7[%c0_25, %c128_26] : memref<1x512xf32, #tpu.memory_space<vmem>>, vector<1x256xf32>
    %c0_27 = arith.constant 0 : index
    %c4 = arith.constant 4 : index
    %62 = vector.load %arg2[%c0_27, %c4] : memref<64x9xf32, #tpu.memory_space<vmem>>, vector<64x1xf32>
    %63 = vector.broadcast %62 : vector<64x1xf32> to vector<64x256xf32>
    %64 = vector.broadcast %61 : vector<1x256xf32> to vector<64x256xf32>
    %65 = arith.mulf %63, %64 : vector<64x256xf32>
    %66 = arith.addf %60, %65 : vector<64x256xf32>
    %c0_28 = arith.constant 0 : index
    %c129 = arith.constant 129 : index
    %67 = vector.load %arg7[%c0_28, %c129] : memref<1x512xf32, #tpu.memory_space<vmem>>, vector<1x256xf32>
    %cst_29 = arith.constant 0.000000e+00 : f32
    %68 = vector.broadcast %cst_29 : f32 to vector<1x256xf32>
    %69 = arith.select %20, %67, %68 : vector<1x256xi1>, vector<1x256xf32>
    %c0_30 = arith.constant 0 : index
    %c5 = arith.constant 5 : index
    %70 = vector.load %arg2[%c0_30, %c5] : memref<64x9xf32, #tpu.memory_space<vmem>>, vector<64x1xf32>
    %71 = vector.broadcast %70 : vector<64x1xf32> to vector<64x256xf32>
    %72 = vector.broadcast %69 : vector<1x256xf32> to vector<64x256xf32>
    %73 = arith.mulf %71, %72 : vector<64x256xf32>
    %74 = arith.addf %66, %73 : vector<64x256xf32>
    %c0_31 = arith.constant 0 : index
    %c143 = arith.constant 143 : index
    %75 = vector.load %arg7[%c0_31, %c143] : memref<1x512xf32, #tpu.memory_space<vmem>>, vector<1x256xf32>
    %cst_32 = arith.constant 0.000000e+00 : f32
    %76 = vector.broadcast %cst_32 : f32 to vector<1x256xf32>
    %77 = arith.select %18, %75, %76 : vector<1x256xi1>, vector<1x256xf32>
    %c0_33 = arith.constant 0 : index
    %c6 = arith.constant 6 : index
    %78 = vector.load %arg2[%c0_33, %c6] : memref<64x9xf32, #tpu.memory_space<vmem>>, vector<64x1xf32>
    %79 = vector.broadcast %78 : vector<64x1xf32> to vector<64x256xf32>
    %80 = vector.broadcast %77 : vector<1x256xf32> to vector<64x256xf32>
    %81 = arith.mulf %79, %80 : vector<64x256xf32>
    %82 = arith.addf %74, %81 : vector<64x256xf32>
    %c0_34 = arith.constant 0 : index
    %c144 = arith.constant 144 : index
    %83 = vector.load %arg7[%c0_34, %c144] : memref<1x512xf32, #tpu.memory_space<vmem>>, vector<1x256xf32>
    %c0_35 = arith.constant 0 : index
    %c7 = arith.constant 7 : index
    %84 = vector.load %arg2[%c0_35, %c7] : memref<64x9xf32, #tpu.memory_space<vmem>>, vector<64x1xf32>
    %85 = vector.broadcast %84 : vector<64x1xf32> to vector<64x256xf32>
    %86 = vector.broadcast %83 : vector<1x256xf32> to vector<64x256xf32>
    %87 = arith.mulf %85, %86 : vector<64x256xf32>
    %88 = arith.addf %82, %87 : vector<64x256xf32>
    %c0_36 = arith.constant 0 : index
    %c145 = arith.constant 145 : index
    %89 = vector.load %arg7[%c0_36, %c145] : memref<1x512xf32, #tpu.memory_space<vmem>>, vector<1x256xf32>
    %cst_37 = arith.constant 0.000000e+00 : f32
    %90 = vector.broadcast %cst_37 : f32 to vector<1x256xf32>
    %91 = arith.select %20, %89, %90 : vector<1x256xi1>, vector<1x256xf32>
    %c0_38 = arith.constant 0 : index
    %c8 = arith.constant 8 : index
    %92 = vector.load %arg2[%c0_38, %c8] : memref<64x9xf32, #tpu.memory_space<vmem>>, vector<64x1xf32>
    %93 = vector.broadcast %92 : vector<64x1xf32> to vector<64x256xf32>
    %94 = vector.broadcast %91 : vector<1x256xf32> to vector<64x256xf32>
    %95 = arith.mulf %93, %94 : vector<64x256xf32>
    %96 = arith.addf %88, %95 : vector<64x256xf32>
    %cst_39 = arith.constant 0.000000e+00 : f32
    %97 = vector.broadcast %cst_39 : f32 to vector<64x256xf32>
    %98 = arith.maximumf %96, %97 : vector<64x256xf32>
    %cst_40 = arith.constant 0.000000e+00 : f32
    %99 = vector.broadcast %cst_40 : f32 to vector<64x128xf32>
    %c0_41 = arith.constant 0 : index
    %c0_42 = arith.constant 0 : index
    %100 = vector.load %arg8[%c0_41, %c0_42] : memref<64x512xf32, #tpu.memory_space<vmem>>, vector<64x128xf32>
    tpu.vector_store %arg8[%c0_41, %c0_42], %99 {strides = array<i32>} : memref<64x512xf32, #tpu.memory_space<vmem>>, vector<64x128xf32>,
    %cst_43 = arith.constant 0.000000e+00 : f32
    %101 = vector.broadcast %cst_43 : f32 to vector<64x128xf32>
    %c0_44 = arith.constant 0 : index
    %c384_45 = arith.constant 384 : index
    %102 = vector.load %arg8[%c0_44, %c384_45] : memref<64x512xf32, #tpu.memory_space<vmem>>, vector<64x128xf32>
    tpu.vector_store %arg8[%c0_44, %c384_45], %101 {strides = array<i32>} : memref<64x512xf32, #tpu.memory_space<vmem>>, vector<64x128xf32>,
    %c0_46 = arith.constant 0 : index
    %c128_47 = arith.constant 128 : index
    %103 = vector.load %arg8[%c0_46, %c128_47] : memref<64x512xf32, #tpu.memory_space<vmem>>, vector<64x256xf32>
    tpu.vector_store %arg8[%c0_46, %c128_47], %98 {strides = array<i32>} : memref<64x512xf32, #tpu.memory_space<vmem>>, vector<64x256xf32>,
    %c0_48 = arith.constant 0 : index
    %c0_49 = arith.constant 0 : index
    %104 = vector.load %arg5[%c0_48, %c0_49] : memref<64x1xf32, #tpu.memory_space<vmem>>, vector<64x1xf32>
    %105 = vector.shape_cast %104 : vector<64x1xf32> to vector<64x1xf32>
    %106 = vector.broadcast %105 : vector<64x1xf32> to vector<64x256xf32>
    %c0_50 = arith.constant 0 : index
    %c111_51 = arith.constant 111 : index
    %107 = vector.load %arg8[%c0_50, %c111_51] : memref<64x512xf32, #tpu.memory_space<vmem>>, vector<64x256xf32>
    %cst_52 = arith.constant 0.000000e+00 : f32
    %108 = vector.shape_cast %18 : vector<1x256xi1> to vector<1x256xi1>
    %109 = vector.broadcast %108 : vector<1x256xi1> to vector<64x256xi1>
    %110 = vector.broadcast %cst_52 : f32 to vector<64x256xf32>
    %111 = arith.select %109, %107, %110 : vector<64x256xi1>, vector<64x256xf32>
    %c0_53 = arith.constant 0 : index
    %c0_54 = arith.constant 0 : index
    %c0_55 = arith.constant 0 : index
    %112 = vector.load %arg4[%c0_53, %c0_54, %c0_55] : memref<9x64x64xf32, #tpu.memory_space<vmem>>, vector<1x64x64xf32>
    %113 = vector.shape_cast %112 : vector<1x64x64xf32> to vector<64x64xf32>
    %cst_56 = arith.constant dense<0.000000e+00> : vector<64x256xf32>
    %114 = tpu.matmul %113, %111, %cst_56 {dimension_numbers = #tpu.dot_dimension_numbers<[1], [0], [0], [1], [0, 0, 1, 1], [], []>} : vector<64x64xf32>, vector<64x256xf32>, vector<64x256xf32> -> vector<64x256xf32>
    %115 = arith.addf %106, %114 : vector<64x256xf32>
    %c0_57 = arith.constant 0 : index
    %c112_58 = arith.constant 112 : index
    %116 = vector.load %arg8[%c0_57, %c112_58] : memref<64x512xf32, #tpu.memory_space<vmem>>, vector<64x256xf32>
    %c1_59 = arith.constant 1 : index
    %c0_60 = arith.constant 0 : index
    %c0_61 = arith.constant 0 : index
    %117 = vector.load %arg4[%c1_59, %c0_60, %c0_61] : memref<9x64x64xf32, #tpu.memory_space<vmem>>, vector<1x64x64xf32>
    %118 = vector.shape_cast %117 : vector<1x64x64xf32> to vector<64x64xf32>
    %cst_62 = arith.constant dense<0.000000e+00> : vector<64x256xf32>
    %119 = tpu.matmul %118, %116, %cst_62 {dimension_numbers = #tpu.dot_dimension_numbers<[1], [0], [0], [1], [0, 0, 1, 1], [], []>} : vector<64x64xf32>, vector<64x256xf32>, vector<64x256xf32> -> vector<64x256xf32>
    %120 = arith.addf %115, %119 : vector<64x256xf32>
    %c0_63 = arith.constant 0 : index
    %c113_64 = arith.constant 113 : index
    %121 = vector.load %arg8[%c0_63, %c113_64] : memref<64x512xf32, #tpu.memory_space<vmem>>, vector<64x256xf32>
    %cst_65 = arith.constant 0.000000e+00 : f32
    %122 = vector.shape_cast %20 : vector<1x256xi1> to vector<1x256xi1>
    %123 = vector.broadcast %122 : vector<1x256xi1> to vector<64x256xi1>
    %124 = vector.broadcast %cst_65 : f32 to vector<64x256xf32>
    %125 = arith.select %123, %121, %124 : vector<64x256xi1>, vector<64x256xf32>
    %c2_66 = arith.constant 2 : index
    %c0_67 = arith.constant 0 : index
    %c0_68 = arith.constant 0 : index
    %126 = vector.load %arg4[%c2_66, %c0_67, %c0_68] : memref<9x64x64xf32, #tpu.memory_space<vmem>>, vector<1x64x64xf32>
    %127 = vector.shape_cast %126 : vector<1x64x64xf32> to vector<64x64xf32>
    %cst_69 = arith.constant dense<0.000000e+00> : vector<64x256xf32>
    %128 = tpu.matmul %127, %125, %cst_69 {dimension_numbers = #tpu.dot_dimension_numbers<[1], [0], [0], [1], [0, 0, 1, 1], [], []>} : vector<64x64xf32>, vector<64x256xf32>, vector<64x256xf32> -> vector<64x256xf32>
    %129 = arith.addf %120, %128 : vector<64x256xf32>
    %c0_70 = arith.constant 0 : index
    %c127_71 = arith.constant 127 : index
    %130 = vector.load %arg8[%c0_70, %c127_71] : memref<64x512xf32, #tpu.memory_space<vmem>>, vector<64x256xf32>
    %cst_72 = arith.constant 0.000000e+00 : f32
    %131 = vector.shape_cast %18 : vector<1x256xi1> to vector<1x256xi1>
    %132 = vector.broadcast %131 : vector<1x256xi1> to vector<64x256xi1>
    %133 = vector.broadcast %cst_72 : f32 to vector<64x256xf32>
    %134 = arith.select %132, %130, %133 : vector<64x256xi1>, vector<64x256xf32>
    %c3_73 = arith.constant 3 : index
    %c0_74 = arith.constant 0 : index
    %c0_75 = arith.constant 0 : index
    %135 = vector.load %arg4[%c3_73, %c0_74, %c0_75] : memref<9x64x64xf32, #tpu.memory_space<vmem>>, vector<1x64x64xf32>
    %136 = vector.shape_cast %135 : vector<1x64x64xf32> to vector<64x64xf32>
    %cst_76 = arith.constant dense<0.000000e+00> : vector<64x256xf32>
    %137 = tpu.matmul %136, %134, %cst_76 {dimension_numbers = #tpu.dot_dimension_numbers<[1], [0], [0], [1], [0, 0, 1, 1], [], []>} : vector<64x64xf32>, vector<64x256xf32>, vector<64x256xf32> -> vector<64x256xf32>
    %138 = arith.addf %129, %137 : vector<64x256xf32>
    %c0_77 = arith.constant 0 : index
    %c128_78 = arith.constant 128 : index
    %139 = vector.load %arg8[%c0_77, %c128_78] : memref<64x512xf32, #tpu.memory_space<vmem>>, vector<64x256xf32>
    %c4_79 = arith.constant 4 : index
    %c0_80 = arith.constant 0 : index
    %c0_81 = arith.constant 0 : index
    %140 = vector.load %arg4[%c4_79, %c0_80, %c0_81] : memref<9x64x64xf32, #tpu.memory_space<vmem>>, vector<1x64x64xf32>
    %141 = vector.shape_cast %140 : vector<1x64x64xf32> to vector<64x64xf32>
    %cst_82 = arith.constant dense<0.000000e+00> : vector<64x256xf32>
    %142 = tpu.matmul %141, %139, %cst_82 {dimension_numbers = #tpu.dot_dimension_numbers<[1], [0], [0], [1], [0, 0, 1, 1], [], []>} : vector<64x64xf32>, vector<64x256xf32>, vector<64x256xf32> -> vector<64x256xf32>
    %143 = arith.addf %138, %142 : vector<64x256xf32>
    %c0_83 = arith.constant 0 : index
    %c129_84 = arith.constant 129 : index
    %144 = vector.load %arg8[%c0_83, %c129_84] : memref<64x512xf32, #tpu.memory_space<vmem>>, vector<64x256xf32>
    %cst_85 = arith.constant 0.000000e+00 : f32
    %145 = vector.shape_cast %20 : vector<1x256xi1> to vector<1x256xi1>
    %146 = vector.broadcast %145 : vector<1x256xi1> to vector<64x256xi1>
    %147 = vector.broadcast %cst_85 : f32 to vector<64x256xf32>
    %148 = arith.select %146, %144, %147 : vector<64x256xi1>, vector<64x256xf32>
    %c5_86 = arith.constant 5 : index
    %c0_87 = arith.constant 0 : index
    %c0_88 = arith.constant 0 : index
    %149 = vector.load %arg4[%c5_86, %c0_87, %c0_88] : memref<9x64x64xf32, #tpu.memory_space<vmem>>, vector<1x64x64xf32>
    %150 = vector.shape_cast %149 : vector<1x64x64xf32> to vector<64x64xf32>
    %cst_89 = arith.constant dense<0.000000e+00> : vector<64x256xf32>
    %151 = tpu.matmul %150, %148, %cst_89 {dimension_numbers = #tpu.dot_dimension_numbers<[1], [0], [0], [1], [0, 0, 1, 1], [], []>} : vector<64x64xf32>, vector<64x256xf32>, vector<64x256xf32> -> vector<64x256xf32>
    %152 = arith.addf %143, %151 : vector<64x256xf32>
    %c0_90 = arith.constant 0 : index
    %c143_91 = arith.constant 143 : index
    %153 = vector.load %arg8[%c0_90, %c143_91] : memref<64x512xf32, #tpu.memory_space<vmem>>, vector<64x256xf32>
    %cst_92 = arith.constant 0.000000e+00 : f32
    %154 = vector.shape_cast %18 : vector<1x256xi1> to vector<1x256xi1>
    %155 = vector.broadcast %154 : vector<1x256xi1> to vector<64x256xi1>
    %156 = vector.broadcast %cst_92 : f32 to vector<64x256xf32>
    %157 = arith.select %155, %153, %156 : vector<64x256xi1>, vector<64x256xf32>
    %c6_93 = arith.constant 6 : index
    %c0_94 = arith.constant 0 : index
    %c0_95 = arith.constant 0 : index
    %158 = vector.load %arg4[%c6_93, %c0_94, %c0_95] : memref<9x64x64xf32, #tpu.memory_space<vmem>>, vector<1x64x64xf32>
    %159 = vector.shape_cast %158 : vector<1x64x64xf32> to vector<64x64xf32>
    %cst_96 = arith.constant dense<0.000000e+00> : vector<64x256xf32>
    %160 = tpu.matmul %159, %157, %cst_96 {dimension_numbers = #tpu.dot_dimension_numbers<[1], [0], [0], [1], [0, 0, 1, 1], [], []>} : vector<64x64xf32>, vector<64x256xf32>, vector<64x256xf32> -> vector<64x256xf32>
    %161 = arith.addf %152, %160 : vector<64x256xf32>
    %c0_97 = arith.constant 0 : index
    %c144_98 = arith.constant 144 : index
    %162 = vector.load %arg8[%c0_97, %c144_98] : memref<64x512xf32, #tpu.memory_space<vmem>>, vector<64x256xf32>
    %c7_99 = arith.constant 7 : index
    %c0_100 = arith.constant 0 : index
    %c0_101 = arith.constant 0 : index
    %163 = vector.load %arg4[%c7_99, %c0_100, %c0_101] : memref<9x64x64xf32, #tpu.memory_space<vmem>>, vector<1x64x64xf32>
    %164 = vector.shape_cast %163 : vector<1x64x64xf32> to vector<64x64xf32>
    %cst_102 = arith.constant dense<0.000000e+00> : vector<64x256xf32>
    %165 = tpu.matmul %164, %162, %cst_102 {dimension_numbers = #tpu.dot_dimension_numbers<[1], [0], [0], [1], [0, 0, 1, 1], [], []>} : vector<64x64xf32>, vector<64x256xf32>, vector<64x256xf32> -> vector<64x256xf32>
    %166 = arith.addf %161, %165 : vector<64x256xf32>
    %c0_103 = arith.constant 0 : index
    %c145_104 = arith.constant 145 : index
    %167 = vector.load %arg8[%c0_103, %c145_104] : memref<64x512xf32, #tpu.memory_space<vmem>>, vector<64x256xf32>
    %cst_105 = arith.constant 0.000000e+00 : f32
    %168 = vector.shape_cast %20 : vector<1x256xi1> to vector<1x256xi1>
    %169 = vector.broadcast %168 : vector<1x256xi1> to vector<64x256xi1>
    %170 = vector.broadcast %cst_105 : f32 to vector<64x256xf32>
    %171 = arith.select %169, %167, %170 : vector<64x256xi1>, vector<64x256xf32>
    %c8_106 = arith.constant 8 : index
    %c0_107 = arith.constant 0 : index
    %c0_108 = arith.constant 0 : index
    %172 = vector.load %arg4[%c8_106, %c0_107, %c0_108] : memref<9x64x64xf32, #tpu.memory_space<vmem>>, vector<1x64x64xf32>
    %173 = vector.shape_cast %172 : vector<1x64x64xf32> to vector<64x64xf32>
    %cst_109 = arith.constant dense<0.000000e+00> : vector<64x256xf32>
    %174 = tpu.matmul %173, %171, %cst_109 {dimension_numbers = #tpu.dot_dimension_numbers<[1], [0], [0], [1], [0, 0, 1, 1], [], []>} : vector<64x64xf32>, vector<64x256xf32>, vector<64x256xf32> -> vector<64x256xf32>
    %175 = arith.addf %166, %174 : vector<64x256xf32>
    %cst_110 = arith.constant 0.000000e+00 : f32
    %176 = vector.broadcast %cst_110 : f32 to vector<64x256xf32>
    %177 = arith.maximumf %175, %176 : vector<64x256xf32>
    %c0_111 = arith.constant 0 : index
    %c0_112 = arith.constant 0 : index
    %c0_113 = arith.constant 0 : index
    %178 = vector.load %arg6[%c0_111, %c0_112, %c0_113] : memref<1x64x256xf32, #tpu.memory_space<vmem>>, vector<1x64x256xf32>
    %179 = vector.shape_cast %178 : vector<1x64x256xf32> to vector<64x256xf32>
    %180 = vector.shape_cast %177 : vector<64x256xf32> to vector<1x64x256xf32>
    tpu.vector_store %arg6[%c0_111, %c0_112, %c0_113], %180 {strides = array<i32>} : memref<1x64x256xf32, #tpu.memory_space<vmem>>, vector<1x64x256xf32>,
    return
  }
  func.func @transform_0(%arg0: i32) -> (i32, i32, i32) {
    %c0_i32 = arith.constant 0 : i32
    %c0_i32_0 = arith.constant 0 : i32
    %c0_i32_1 = arith.constant 0 : i32
    return %arg0, %c0_i32, %c0_i32_0 : i32, i32, i32
  }
  func.func @transform_1(%arg0: i32) -> (i32, i32) {
    %c0_i32 = arith.constant 0 : i32
    %c0_i32_0 = arith.constant 0 : i32
    %c0_i32_1 = arith.constant 0 : i32
    return %c0_i32, %c0_i32_0 : i32, i32
  }
  func.func @transform_2(%arg0: i32) -> (i32, i32) {
    %c0_i32 = arith.constant 0 : i32
    %c0_i32_0 = arith.constant 0 : i32
    %c0_i32_1 = arith.constant 0 : i32
    return %c0_i32, %c0_i32_0 : i32, i32
  }
  func.func @transform_3(%arg0: i32) -> (i32, i32, i32) {
    %c0_i32 = arith.constant 0 : i32
    %c0_i32_0 = arith.constant 0 : i32
    %c0_i32_1 = arith.constant 0 : i32
    %c0_i32_2 = arith.constant 0 : i32
    return %c0_i32, %c0_i32_0, %c0_i32_1 : i32, i32, i32
  }
  func.func @transform_4(%arg0: i32) -> (i32, i32) {
    %c0_i32 = arith.constant 0 : i32
    %c0_i32_0 = arith.constant 0 : i32
    %c0_i32_1 = arith.constant 0 : i32
    return %c0_i32, %c0_i32_0 : i32, i32
  }
  func.func @transform_5(%arg0: i32) -> (i32, i32, i32) {
    %c0_i32 = arith.constant 0 : i32
    %c0_i32_0 = arith.constant 0 : i32
    %c0_i32_1 = arith.constant 0 : i32
    return %arg0, %c0_i32, %c0_i32_0 : i32, i32, i32
  }
}

</mosaic_0001>

<bundles_post_ra>
// kernel: ode_func_forward.1
= control target key start
LH: loop header
LB: loop body
LE: loop exit
PB: predicated region body
PF: predicated region fallthrough
CT: control target
= control target key end

     0   :  { %10 = vsyncpa [#allocation5], 0  ;;  %s4965_s18 = smov 0   ;;  %s6949_s0 = inlined_call_operand.vmem [shape: f32[2,1,256], index: 0, kind: input, shape index: {}]   ;;  %s6950_s1 = inlined_call_operand.vmem [shape: f32[64,9], index: 1, kind: input, shape index: {}]   ;;  %s6951_s2 = inlined_call_operand.vmem [shape: f32[64,1], index: 2, kind: input, shape index: {}]   ;;  %s6952_s3 = inlined_call_operand.hbm [shape: f32[9,64,64], index: 3, kind: input, shape index: {}]   ;;  %s6953_s4 = inlined_call_operand.vmem [shape: f32[64,1], index: 4, kind: input, shape index: {}]   ;;  %s6954_s5 = inlined_call_operand.vmem [shape: f32[2,64,256], index: 5, kind: output, shape index: {}]  }
   0x1 LB: > { %s4971_s19 = sadd.s32 4294967295, %s4912_s18   ;;  %p3811_p0 = scmp.ge.s32.totalorder %s4912_s18, 1  ;;  %s4912_s18 = sphi %s4965_s18, %s16_s18  }
   0x2   : > { %p157_p1 = scmp.lt.s32.totalorder %s4912_s18, 3  ;;  %s4914_s20 = smov [#allocation4]  }
   0x3   : > { %s175_s21 = sshll.u32 %s4914_s20, 4  ;;  %p6955_p3 = scmp.eq.s32.totalorder %s4971_s19, 0  ;;  %s176_s21 = int_to_ptr.vmem [resolvable:$true] %s175_s21 }
   0x4   : > { %p4975_p2 = pnand %p3811_p0, %p157_p1  ;;  %s4874_s26 = scalar_lea.hbm %s6952_s3, 9216 }
   0x5   : > { %p4875_p6 = scmp.ne.s32.totalorder %s6952_s3, %s4874_s26  ;;  %p4881_p10 = scmp.lt.u32.totalorder %s4874_s26, %s6952_s3 }
   0x6   : > { %s7011_s22 = scalar_select %p4975_p2, 1, 0 }
   0x7   : > { %p4338_p4 = pneg %p4975_p2 }
   0x9   : > { %p4984_p5 = pnand %p6955_p3, %p4338_p4 }
   0xb   : > { %p4876_p7 = pneg %p4984_p5 }
   0xd   : > { %p4877_p8 = pnand %p4876_p7, %p4875_p6 }
   0xf   : > { %p4878_p9 = pneg %p4877_p8 }
  0x11   : > { %p4883_p11 = pnand %p4881_p10, %p4878_p9 }
  0x13   : > { %4886 = shalt.err (!%p4883_p11)
}
  0x14   : > { %s4887_s6 = scalar_lea.vmem %s176_s21, 9216  ;;  %p4895_p1 = scmp.lt.s32.totalorder %s176_s21, %s176_s21 }
  0x15   : > { %p4888_p12 = scmp.ne.s32.totalorder %s176_s21, %s4887_s6  ;;  %p4896_p4 = scmp.lt.s32.totalorder %s4887_s6, %s4887_s6 }
  0x17   : > { %p4890_p13 = pnand %p4888_p12, %p4876_p7  ;;  %p4897_p3 = por %p4896_p4, %p4895_p1 }
  0x19   : > { %p4891_p0 = pneg %p4890_p13 }
  0x1b   : > { %p4898_p2 = pnand %p4897_p3, %p4891_p0 }
  0x1d   : > { %4901 = shalt.err (!%p4898_p2)
}
  0x1e   : > { %s4915_s7 = smov 128   ;;  %s4916_s8 = smov 8  }
  0x1f   : > { %4341 = dma.hbm_to_vmem [thread:$0]  (!%p4984_p5), %s6952_s3, 9216, %s176_s21, [#allocation5], %s4915_s7, %s4915_s7, %s4916_s8  }
  0x20   : > { %p7013_p6 = scmp.ne.s32.totalorder %s7011_s22, 0 }
  0x22   : > { %201 = sbr.rel (%p7013_p6) target bundleno = 1210 (0x4ba), region = 40 }
  0x29   : > { %p7014_p8 = scmp.eq.s32.totalorder %s4971_s19, 0 }
  0x2b   : > { %4907 = dma.done.wait (%p7014_p8), [#allocation5], 9216   ;;  %p7015_p7 = pmov %p7014_p8 }
  0x2c   : > { %p228_p2 = scmp.lt.s32.totalorder %s4971_s19, 1  ;;  %v6959_v0 = vlaneseq  ;;  %v6960_v1 = vmov 0   ;;  %v6957_v2 = vmov 0.0   ;;  %v4919_v3 = vmov 1   ;;  %v280_v4 = vld [vmem:[%s6951_s2 + $0x10] sm:$0xff]  ;;  %v281_v6 = vld [vmem:[%s6951_s2 + $0x18] sm:$0xff] }
  0x2d   : > { %4909 = vsyncadd (%p7015_p7), [#allocation5], 4294958080  ;;  %4373 = vset.pattern.permute.xlu1 %v6960_v1  ;;  %2581 = vmatprep.mubr.f32.mxu0 %v6957_v2  ;;  %v283_v8 = vld [vmem:[%s6951_s2 + $0x28] sm:$0xff]  ;;  %v285_v13 = vld [vmem:[%s6951_s2 + $0x38] sm:$0xff]  ;;  %s4920_s25 = smov 17   ;;  %v4922_v22 = vmov 2  }
  0x2e   : > { %s7249_s19 = smov (!%p228_p2, %s4971_s19), 1  ;;  %vm270_vm0 = vcmp.lt.s32.totalorder %v6959_v0, 128  ;;  %4375 = vset.pattern.permute.xlu0 %v4919_v3  ;;  %1657 = vmatprep.mubr.f32.mxu1 %v6957_v2  ;;  %vm275_vm1 = vcmp.lt.s32.totalorder %v6959_v0, 256  ;;  %v5032_v7 = vshrl.u32 %v6959_v0, 7  ;;  %v5055_v15 = vld [vmem:[%s6950_s1 + $0x8] sm:$0xff]  ;;  %v5070_v18 = vld [vmem:[%s6950_s1] sm:$0xff] }
  0x2f   : > { %272 = vst.msk [vmem:[#allocation2] sm:$0x1] %vm270_vm0, %v6957_v2  ;;  %273 = vst.msk [vmem:[#allocation2 + $0x3] sm:$0x1] %vm270_vm0, %v6957_v2  ;;  %s3816_s11 = sshll.u32 %s7249_s19, 1  ;;  %298 = vperm.xlu1 %4373, %v280_v4   ;;  %v5078_v19 = vld [vmem:[%s6950_s1 + $0x10] sm:$0xff] }
  0x30   : > { %s231_s14 = scalar_lea.vmem %s6949_s0, %s3816_s11  ;;  %v5038_v9 = vsub.s32 0, %v5032_v7  ;;  %v5041_v11 = vsub.s32 1, %v5032_v7  ;;  %v338_v14 = vsub.s32 2, %v5032_v7  ;;  %v5083_v20 = vld [vmem:[%s6950_s1 + $0x20] sm:$0xff]  ;;  %v5090_v21 = vld [vmem:[%s6950_s1 + $0x30] sm:$0xff]  ;;  %s4921_s11 = smov 15  }
  0x31   : > { %v274_v5 = vld [vmem:[%s231_s14] sm:$0x3]  ;;  %v5105_v23 = vld [vmem:[%s6950_s1 + $0x18] sm:$0xff]  ;;  %v5112_v24 = vld [vmem:[%s6950_s1 + $0x28] sm:$0xff]  ;;  %s4923_s20 = smov 1   ;;  %v4924_v26 = vmov 3  }
  0x32   : > { %277 = vst.msk [vmem:[#allocation2 + $0x1] sm:$0x3] %vm275_vm1, %v274_v5  ;;  %v5119_v25 = vld [vmem:[%s6950_s1 + $0x38] sm:$0xff]  ;;  %s4925_s21 = smov 16   ;;  %s4927_s22 = smov 127   ;;  %vm346_vm2 = vcmask 138240  }
  0x33   : > { %303 = vperm.xlu1 %4373, %v281_v6   ;;  %s4929_s23 = smov 113   ;;  %s4933_s24 = smov 111   ;;  %vm627_vm5 = vcmask 121856   ;;  %vm712_vm8 = vcmask 7168   ;;  %vm572_vm9 = vcmask 130048   ;;  %vm887_vm10 = vcmask 1039360  }
  0x34   : > { %s4934_s26 = smov 112   ;;  %vm972_vm11 = vcmask 924672   ;;  %vm1237_vm12 = vcmask 908288   ;;  %vm1182_vm13 = vcmask 916480   ;;  %vm1568_vm14 = vcmask 523264   ;;  %s3989_s28 = sshll.u32 %s7249_s19, 7 }
  0x35   : > { %s6928_s6 = scalar_lea.vmem %s6954_s5, %s3989_s28 }
  0x37   : > { %313 = vperm.xlu1 %4373, %v283_v8  }
  0x39   : > { %v326_v10 = vld [vmem:[#allocation2] sm:$0x7] }
  0x3a   : > { %v5044_v12 = vrot.slane %v326_v10, %v5038_v9  ;;  %v5058_v16 = vrot.slane %v326_v10, %v5041_v11  ;;  %v5063_v17 = vrot.slane %v326_v10, %v338_v14 }
  0x3b   : > { %323 = vperm.xlu1 %4373, %v285_v13  }
  0x3c   : > { %340 = vrot.lane.b32.xlu0 %v5044_v12, %s4920_s25 }
  0x3f   : > { %342 = vrot.lane.b32.xlu1 %v5058_v16, %s4920_s25 }
  0x40   : > { %446 = vperm.xlu0 %4375, %v5055_v15  }
  0x43   : > { %363 = vperm.xlu1 %4373, %v5070_v18  }
  0x44   : > { %344 = vrot.lane.b32.xlu0 %v5063_v17, %s4920_s25 }
  0x47   : > { %373 = vperm.xlu1 %4373, %v5078_v19  }
  0x48   : > { %458 = vperm.xlu0 %4375, %v5083_v20  }
  0x4b   : > { %383 = vperm.xlu1 %4373, %v5083_v20  }
  0x4c   : > { %466 = vperm.xlu0 %4375, %v5090_v21  }
  0x4f   : > { %393 = vperm.xlu1 %4373, %v5090_v21  }
  0x50   : > { %621 = vrot.lane.b32.xlu0 %v5044_v12, %s4921_s11 }
  0x51   : > { %4377 = vset.pattern.permute.xlu0 %v4922_v22 }
  0x53   : > { %4374 = vset.pattern.permute.xlu1 %v4919_v3 }
  0x54   : > { %625 = vrot.lane.b32.xlu0 %v5063_v17, %s4921_s11  ;;  %442 = vperm.xlu1 %4374, %v5070_v18  }
  0x58   : > { %639 = vperm.xlu0 %4377, %v5055_v15   ;;  %450 = vperm.xlu1 %4374, %v5078_v19  }
  0x5c   : > { %651 = vperm.xlu0 %4377, %v5083_v20   ;;  %454 = vperm.xlu1 %4374, %v5105_v23  }
  0x60   : > { %659 = vperm.xlu0 %4377, %v5090_v21   ;;  %462 = vperm.xlu1 %4374, %v5112_v24  }
  0x64   : > { %706 = vrot.lane.b32.xlu0 %v5044_v12, %s4923_s20  ;;  %470 = vperm.xlu1 %4374, %v5119_v25  }
  0x65   : > { %4379 = vset.pattern.permute.xlu0 %v4924_v26 }
  0x68   : > { %710 = vrot.lane.b32.xlu0 %v5063_v17, %s4923_s20  ;;  %623 = vrot.lane.b32.xlu1 %v5058_v16, %s4921_s11 }
  0x69   : > { %4376 = vset.pattern.permute.xlu1 %v4922_v22 }
  0x6c   : > { %724 = vperm.xlu0 %4379, %v5055_v15   ;;  %635 = vperm.xlu1 %4376, %v5070_v18  }
  0x70   : > { %643 = vperm.xlu1 %4376, %v5078_v19  }
  0x74   : > { %647 = vperm.xlu1 %4376, %v5105_v23  }
  0x78   : > { %655 = vperm.xlu1 %4376, %v5112_v24  }
  0x7c   : > { %663 = vperm.xlu1 %4376, %v5119_v25  }
  0x80   : > { %708 = vrot.lane.b32.xlu1 %v5058_v16, %s4923_s20 }
  0x81   : > { %4378 = vset.pattern.permute.xlu1 %v4924_v26 }
  0x84   : > { %720 = vperm.xlu1 %4378, %v5070_v18  }
  0x88   : > { %728 = vperm.xlu1 %4378, %v5078_v19  }
  0xae   : > { %v5138_v27 = vpop.permute.xlu1 %298  ;;  %v5156_v36 = vpop.permute.xlu0 %340 }
  0xb2   : > { %v5140_v28 = vpop.permute.xlu1 %303 }
  0xb3   : > { %7016 = vst [vmem:[#allocation7_spill] sm:$0xff] %v5140_v28 }
  0xb6   : > { %v5142_v29 = vpop.permute.xlu1 %313 }
  0xb7   : > { %7017 = vst [vmem:[#allocation8_spill] sm:$0xff] %v5142_v29 }
  0xba   : > { %v5144_v30 = vpop.permute.xlu1 %323 }
  0xbb   : > { %7018 = vst [vmem:[#allocation9_spill] sm:$0xff] %v5144_v30 }
  0xbe   : > { %v5146_v31 = vpop.permute.xlu1 %342 }
  0xbf   : > { %v447_v40 = vpop.permute.xlu0 %446 }
  0xc0   : > { %v479_v41 = vmul.f32 %v447_v40, %v5044_v12  ;;  %v481_v44 = vmul.f32 %v447_v40, %v5063_v17  ;;  %v480_v45 = vmul.f32 %v447_v40, %v5058_v16 }
  0xc2   : > { %v5148_v32 = vpop.permute.xlu1 %363 }
  0xc3   : > { %v5178_v51 = vpop.permute.xlu0 %344 }
  0xc6   : > { %v5150_v33 = vpop.permute.xlu1 %373 }
  0xc7   : > { %v459_v54 = vpop.permute.xlu0 %458 }
  0xc8   : > { %v489_v55 = vmul.f32 %v459_v54, %v5058_v16  ;;  %v488_v56 = vmul.f32 %v459_v54, %v5044_v12  ;;  %v490_v59 = vmul.f32 %v459_v54, %v5063_v17  ;;  %v4931_v54 = vmov 6  }
  0xca   : > { %v5152_v34 = vpop.permute.xlu1 %383 }
  0xcb   : > { %v467_v62 = vpop.permute.xlu0 %466 }
  0xcc   : > { %v495_v63 = vmul.f32 %v467_v62, %v5058_v16  ;;  %v494_v3 = vmul.f32 %v467_v62, %v5044_v12  ;;  %v496_v6 = vmul.f32 %v467_v62, %v5063_v17 }
  0xce   : > { %v5154_v35 = vpop.permute.xlu1 %393 }
  0xcf   : > { %v5227_v26 = vpop.permute.xlu0 %621 }
  0xd3   : > { %v443_v37 = vpop.permute.xlu1 %442  ;;  %v5237_v40 = vpop.permute.xlu0 %625 }
  0xd4   : > { %v477_v38 = vmul.f32 %v443_v37, %v5058_v16  ;;  %v476_v39 = vmul.f32 %v443_v37, %v5044_v12  ;;  %v478_v42 = vmul.f32 %v443_v37, %v5063_v17 }
  0xd6   : > { %526 = vrot.lane.b32.xlu1 %v477_v38, %s4925_s21  ;;  %524 = vrot.lane.b32.xlu0 %v476_v39, %s4925_s21  ;;  %v4928_v38 = vmov 5  }
  0xd7   : > { %v451_v43 = vpop.permute.xlu1 %450 }
  0xd8   : > { %v483_v46 = vmul.f32 %v451_v43, %v5058_v16  ;;  %v482_v47 = vmul.f32 %v451_v43, %v5044_v12  ;;  %v484_v50 = vmul.f32 %v451_v43, %v5063_v17  ;;  %v5251_v43 = vpop.permute.xlu0 %639 }
  0xda   : > { %530 = vrot.lane.b32.xlu1 %v479_v41, %s4925_s21  ;;  %528 = vrot.lane.b32.xlu0 %v478_v42, %s4925_s21 }
  0xdb   : > { %v455_v48 = vpop.permute.xlu1 %454 }
  0xdc   : > { %v485_v49 = vmul.f32 %v455_v48, %v5044_v12  ;;  %v487_v52 = vmul.f32 %v455_v48, %v5063_v17  ;;  %v486_v53 = vmul.f32 %v455_v48, %v5058_v16 }
  0xde   : > { %534 = vrot.lane.b32.xlu1 %v481_v44, %s4925_s21  ;;  %532 = vrot.lane.b32.xlu0 %v480_v45, %s4925_s21  ;;  %v5257_v45 = vpop.permute.xlu0 %651 }
  0xdf   : > { %v463_v57 = vpop.permute.xlu1 %462 }
  0xe0   : > { %v491_v58 = vmul.f32 %v463_v57, %v5044_v12  ;;  %v493_v60 = vmul.f32 %v463_v57, %v5063_v17  ;;  %v492_v61 = vmul.f32 %v463_v57, %v5058_v16 }
  0xe2   : > { %538 = vrot.lane.b32.xlu1 %v483_v46, %s4925_s21  ;;  %536 = vrot.lane.b32.xlu0 %v482_v47, %s4925_s21  ;;  %v4930_v46 = vmov 7  }
  0xe3   : > { %v471_v4 = vpop.permute.xlu1 %470 }
  0xe4   : > { %v497_v5 = vmul.f32 %v471_v4, %v5044_v12  ;;  %v499_v8 = vmul.f32 %v471_v4, %v5063_v17  ;;  %v498_v10 = vmul.f32 %v471_v4, %v5058_v16  ;;  %v4926_v12 = vmov 4   ;;  %v867_v16 = vld [vmem:[#allocation2 + $0x1] sm:$0x7] }
  0xe5   : > { %v5223_v17 = vrot.slane %v867_v16, %v5041_v11  ;;  %v5233_v37 = vrot.slane %v867_v16, %v5038_v9  ;;  %v5244_v41 = vrot.slane %v867_v16, %v338_v14  ;;  %v5266_v14 = vpop.permute.xlu0 %659 }
  0xe6   : > { %542 = vrot.lane.b32.xlu1 %v485_v49, %s4925_s21  ;;  %540 = vrot.lane.b32.xlu0 %v484_v50, %s4925_s21 }
  0xe7   : > { %v5216_v13 = vpop.permute.xlu1 %623 }
  0xe9   : > { %v5272_v48 = vpop.permute.xlu0 %706 }
  0xea   : > { %546 = vrot.lane.b32.xlu1 %v487_v52, %s4925_s21  ;;  %544 = vrot.lane.b32.xlu0 %v486_v53, %s4925_s21 }
  0xeb   : > { %v5225_v22 = vpop.permute.xlu1 %635 }
  0xed   : > { %v5279_v50 = vpop.permute.xlu0 %710 }
  0xee   : > { %550 = vrot.lane.b32.xlu1 %v489_v55, %s4925_s21  ;;  %548 = vrot.lane.b32.xlu0 %v488_v56, %s4925_s21 }
  0xef   : > { %v5235_v39 = vpop.permute.xlu1 %643 }
  0xf1   : > { %v5288_v53 = vpop.permute.xlu0 %724 }
  0xf2   : > { %554 = vrot.lane.b32.xlu1 %v491_v58, %s4925_s21  ;;  %552 = vrot.lane.b32.xlu0 %v490_v59, %s4925_s21 }
  0xf3   : > { %v5249_v42 = vpop.permute.xlu1 %647 }
  0xf6   : > { %558 = vrot.lane.b32.xlu1 %v493_v60, %s4925_s21  ;;  %556 = vrot.lane.b32.xlu0 %v492_v61, %s4925_s21  ;;  %v6962_v61 = vmov 8  }
  0xf7   : > { %v5255_v44 = vpop.permute.xlu1 %655 }
  0xfa   : > { %562 = vrot.lane.b32.xlu1 %v495_v63, %s4925_s21  ;;  %560 = vrot.lane.b32.xlu0 %v494_v3, %s4925_s21 }
  0xfb   : > { %v5264_v7 = vpop.permute.xlu1 %663 }
  0xfe   : > { %566 = vrot.lane.b32.xlu1 %v497_v5, %s4925_s21  ;;  %564 = vrot.lane.b32.xlu0 %v496_v6, %s4925_s21 }
  0xff   : > { %v5270_v47 = vpop.permute.xlu1 %708 }
 0x102   : > { %570 = vrot.lane.b32.xlu1 %v499_v8, %s4925_s21  ;;  %568 = vrot.lane.b32.xlu0 %v498_v10, %s4925_s21 }
 0x103   : > { %v5277_v49 = vpop.permute.xlu1 %720 }
 0x106   : > { %732 = vperm.xlu1 %4378, %v5105_v23   ;;  %736 = vperm.xlu0 %4379, %v5083_v20  }
 0x107   : > { %v5286_v52 = vpop.permute.xlu1 %728 }
 0x10a   : > { %740 = vperm.xlu1 %4378, %v5112_v24   ;;  %744 = vperm.xlu0 %4379, %v5090_v21  }
 0x10e   : > { %748 = vperm.xlu1 %4378, %v5119_v25   ;;  %4380 = vset.pattern.permute.xlu0 %v4926_v12 }
 0x10f   : > { %793 = vperm.xlu0 %4380, %v5070_v18  }
 0x112   : > { %4381 = vset.pattern.permute.xlu1 %v4926_v12 }
 0x113   : > { %797 = vperm.xlu1 %4381, %v5055_v15   ;;  %805 = vperm.xlu0 %4380, %v5105_v23  }
 0x117   : > { %801 = vperm.xlu1 %4381, %v5078_v19   ;;  %813 = vperm.xlu0 %4380, %v5112_v24  }
 0x11b   : > { %809 = vperm.xlu1 %4381, %v5083_v20   ;;  %821 = vperm.xlu0 %4380, %v5119_v25  }
 0x11f   : > { %817 = vperm.xlu1 %4381, %v5090_v21   ;;  %883 = vrot.lane.b32.xlu0 %v5223_v17, %s4927_s22 }
 0x120   : > { %4382 = vset.pattern.permute.xlu0 %v4928_v38 }
 0x123   : > { %881 = vrot.lane.b32.xlu1 %v5233_v37, %s4927_s22  ;;  %895 = vperm.xlu0 %4382, %v5070_v18  }
 0x124   : > { %4383 = vset.pattern.permute.xlu1 %v4928_v38 }
 0x127   : > { %885 = vrot.lane.b32.xlu1 %v5244_v41, %s4927_s22  ;;  %907 = vperm.xlu0 %4382, %v5105_v23  }
 0x12b   : > { %899 = vperm.xlu1 %4383, %v5055_v15   ;;  %915 = vperm.xlu0 %4382, %v5112_v24  }
 0x12f   : > { %903 = vperm.xlu1 %4383, %v5078_v19   ;;  %923 = vperm.xlu0 %4382, %v5119_v25  }
 0x133   : > { %911 = vperm.xlu1 %4383, %v5083_v20   ;;  %968 = vrot.lane.b32.xlu0 %v5223_v17, %s4929_s23 }
 0x134   : > { %4385 = vset.pattern.permute.xlu0 %v4930_v46 }
 0x137   : > { %919 = vperm.xlu1 %4383, %v5090_v21   ;;  %1056 = vperm.xlu0 %4385, %v5055_v15  }
 0x13b   : > { %966 = vrot.lane.b32.xlu1 %v5233_v37, %s4929_s23  ;;  %1068 = vperm.xlu0 %4385, %v5083_v20  }
 0x13c   : > { %4384 = vset.pattern.permute.xlu1 %v4930_v46 }
 0x13f   : > { %1052 = vperm.xlu1 %4384, %v5070_v18   ;;  %1076 = vperm.xlu0 %4385, %v5090_v21  }
 0x143   : > { %1060 = vperm.xlu1 %4384, %v5078_v19   ;;  %970 = vrot.lane.b32.xlu0 %v5244_v41, %s4929_s23 }
 0x144   : > { %4387 = vset.pattern.permute.xlu0 %v4931_v54 }
 0x147   : > { %1064 = vperm.xlu1 %4384, %v5105_v23   ;;  %984 = vperm.xlu0 %4387, %v5055_v15  }
 0x148   : > { %v5292_v55 = vpop.permute.xlu1 %526  ;;  %v5294_v56 = vpop.permute.xlu0 %524 }
 0x14b   : > { %1072 = vperm.xlu1 %4384, %v5112_v24   ;;  %996 = vperm.xlu0 %4387, %v5083_v20  }
 0x14c   : > { %v5298_v57 = vpop.permute.xlu1 %530  ;;  %v5300_v58 = vpop.permute.xlu0 %528 }
 0x14f   : > { %1080 = vperm.xlu1 %4384, %v5119_v25   ;;  %1004 = vperm.xlu0 %4387, %v5090_v21  }
 0x150   : > { %v5304_v59 = vpop.permute.xlu1 %534  ;;  %v5306_v60 = vpop.permute.xlu0 %532 }
 0x153   : > { %4386 = vset.pattern.permute.xlu1 %v4931_v54  ;;  %4389 = vset.pattern.permute.xlu0 %v6962_v61 }
 0x154   : > { %v5309_v62 = vpop.permute.xlu1 %538  ;;  %980 = vperm.xlu1 %4386, %v5070_v18   ;;  %v5312_v63 = vpop.permute.xlu0 %536  ;;  %1249 = vperm.xlu0 %4389, %v5055_v15  }
 0x158   : > { %988 = vperm.xlu1 %4386, %v5078_v19   ;;  %v5316_v3 = vpop.permute.xlu1 %542  ;;  %v5318_v4 = vpop.permute.xlu0 %540  ;;  %1235 = vrot.lane.b32.xlu0 %v5244_v41, %s4933_s24 }
 0x15c   : > { %992 = vperm.xlu1 %4386, %v5105_v23   ;;  %1257 = vperm.xlu0 %4389, %v5105_v23   ;;  %v5324_v5 = vpop.permute.xlu1 %546  ;;  %v5326_v6 = vpop.permute.xlu0 %544 }
 0x160   : > { %1000 = vperm.xlu1 %4386, %v5112_v24   ;;  %v5329_v8 = vpop.permute.xlu1 %550  ;;  %v5331_v10 = vpop.permute.xlu0 %548 }
 0x164   : > { %4388 = vset.pattern.permute.xlu1 %v6962_v61  ;;  %v5335_v12 = vpop.permute.xlu1 %554  ;;  %v5337_v16 = vpop.permute.xlu0 %552 }
 0x165   : > { %1245 = vperm.xlu1 %4388, %v5070_v18  }
 0x168   : > { %v5343_v38 = vpop.permute.xlu1 %558  ;;  %v5345_v46 = vpop.permute.xlu0 %556 }
 0x169   : > { %1231 = vrot.lane.b32.xlu1 %v5233_v37, %s4933_s24  ;;  %7019 = vst [vmem:[#allocation10_spill] sm:$0xff] %v5343_v38 }
 0x16c   : > { %v5348_v2 = vpop.permute.xlu1 %562  ;;  %v5350_v0 = vpop.permute.xlu0 %560 }
 0x16d   : > { %1233 = vrot.lane.b32.xlu1 %v5223_v17, %s4933_s24  ;;  %7020 = vst [vmem:[#allocation11_spill] sm:$0xff] %v5348_v2  ;;  %7021 = vst [vmem:[#allocation12_spill] sm:$0xff] %v5350_v0 }
 0x170   : > { %v5352_v18 = vpop.permute.xlu1 %566  ;;  %v5354_v1 = vpop.permute.xlu0 %564 }
 0x171   : > { %1253 = vperm.xlu1 %4388, %v5078_v19   ;;  %7022 = vst [vmem:[#allocation13_spill] sm:$0xff] %v5352_v18  ;;  %7023 = vst [vmem:[#allocation14_spill] sm:$0xff] %v5354_v1 }
 0x174   : > { %v5356_v61 = vpop.permute.xlu1 %570  ;;  %v5358_v30 = vpop.permute.xlu0 %568 }
 0x175   : > { %4390 = vset.pattern.permute.xlu1 %v4931_v54  ;;  %7024 = vst [vmem:[#allocation15_spill] sm:$0xff] %v5356_v61  ;;  %7025 = vst [vmem:[#allocation16_spill] sm:$0xff] %v5358_v30 }
 0x185   : > { %v5360_v29 = vpop.permute.xlu1 %732  ;;  %v5362_v28 = vpop.permute.xlu0 %736 }
 0x186   : > { %7026 = vst [vmem:[#allocation17_spill] sm:$0xff] %v5360_v29  ;;  %7027 = vst [vmem:[#allocation18_spill] sm:$0xff] %v5362_v28 }
 0x189   : > { %v5364_v38 = vpop.permute.xlu1 %740  ;;  %v5366_v19 = vpop.permute.xlu0 %744 }
 0x18a   : > { %7028 = vst [vmem:[#allocation19_spill] sm:$0xff] %v5364_v38  ;;  %7029 = vst [vmem:[#allocation20_spill] sm:$0xff] %v5366_v19 }
 0x18d   : > { %v5368_v2 = vpop.permute.xlu1 %748 }
 0x18e   : > { %7030 = vst [vmem:[#allocation21_spill] sm:$0xff] %v5368_v2  ;;  %v5370_v0 = vpop.permute.xlu0 %793 }
 0x18f   : > { %7031 = vst [vmem:[#allocation22_spill] sm:$0xff] %v5370_v0 }
 0x192   : > { %v5372_v54 = vpop.permute.xlu1 %797  ;;  %v5374_v18 = vpop.permute.xlu0 %805 }
 0x193   : > { %7032 = vst [vmem:[#allocation23_spill] sm:$0xff] %v5372_v54  ;;  %7033 = vst [vmem:[#allocation24_spill] sm:$0xff] %v5374_v18 }
 0x196   : > { %v5376_v1 = vpop.permute.xlu1 %801  ;;  %v5378_v61 = vpop.permute.xlu0 %813 }
 0x197   : > { %7034 = vst [vmem:[#allocation25_spill] sm:$0xff] %v5376_v1  ;;  %7035 = vst [vmem:[#allocation26_spill] sm:$0xff] %v5378_v61 }
 0x19a   : > { %v5380_v30 = vpop.permute.xlu1 %809  ;;  %v5382_v29 = vpop.permute.xlu0 %821 }
 0x19b   : > { %7036 = vst [vmem:[#allocation27_spill] sm:$0xff] %v5380_v30  ;;  %7037 = vst [vmem:[#allocation28_spill] sm:$0xff] %v5382_v29 }
 0x19e   : > { %v5384_v28 = vpop.permute.xlu1 %817  ;;  %v5386_v38 = vpop.permute.xlu0 %883 }
 0x19f   : > { %7038 = vst [vmem:[#allocation29_spill] sm:$0xff] %v5384_v28  ;;  %7039 = vst [vmem:[#allocation30_spill] sm:$0xff] %v5386_v38 }
 0x1a2   : > { %v5388_v19 = vpop.permute.xlu1 %881  ;;  %v5390_v2 = vpop.permute.xlu0 %895 }
 0x1a3   : > { %7040 = vst [vmem:[#allocation31_spill] sm:$0xff] %v5388_v19  ;;  %7041 = vst [vmem:[#allocation32_spill] sm:$0xff] %v5390_v2 }
 0x1a6   : > { %v5392_v0 = vpop.permute.xlu1 %885  ;;  %v5394_v54 = vpop.permute.xlu0 %907 }
 0x1a7   : > { %7042 = vst [vmem:[#allocation33_spill] sm:$0xff] %v5392_v0  ;;  %7043 = vst [vmem:[#allocation34_spill] sm:$0xff] %v5394_v54 }
 0x1aa   : > { %v5396_v18 = vpop.permute.xlu1 %899  ;;  %v5400_v61 = vpop.permute.xlu0 %915 }
 0x1ab   : > { %7044 = vst [vmem:[#allocation35_spill] sm:$0xff] %v5396_v18  ;;  %7046 = vst [vmem:[#allocation37_spill] sm:$0xff] %v5400_v61 }
 0x1ae   : > { %v5398_v1 = vpop.permute.xlu1 %903  ;;  %v5404_v29 = vpop.permute.xlu0 %923 }
 0x1af   : > { %7045 = vst [vmem:[#allocation36_spill] sm:$0xff] %v5398_v1  ;;  %7048 = vst [vmem:[#allocation39_spill] sm:$0xff] %v5404_v29 }
 0x1b2   : > { %v5402_v30 = vpop.permute.xlu1 %911  ;;  %v5410_v19 = vpop.permute.xlu0 %968 }
 0x1b3   : > { %7047 = vst [vmem:[#allocation38_spill] sm:$0xff] %v5402_v30 }
 0x1b6   : > { %v5406_v28 = vpop.permute.xlu1 %919  ;;  %v1057_v18 = vpop.permute.xlu0 %1056 }
 0x1b7   : > { %7049 = vst [vmem:[#allocation40_spill] sm:$0xff] %v5406_v28  ;;  %v1089_v30 = vmul.f32 %v1057_v18, %v5233_v37  ;;  %v1090_v28 = vmul.f32 %v1057_v18, %v5223_v17  ;;  %v1091_v61 = vmul.f32 %v1057_v18, %v5244_v41 }
 0x1ba   : > { %v5408_v38 = vpop.permute.xlu1 %966 }
 0x1be   : > { %v1053_v2 = vpop.permute.xlu1 %1052 }
 0x1bf   : > { %v1086_v0 = vmul.f32 %v1053_v2, %v5233_v37  ;;  %v1087_v54 = vmul.f32 %v1053_v2, %v5223_v17  ;;  %v1088_v29 = vmul.f32 %v1053_v2, %v5244_v41  ;;  %v7050_v2 = vmov 8  }
 0x1c1   : > { %1134 = vrot.lane.b32.xlu1 %v1086_v0, %s4934_s26  ;;  %1136 = vrot.lane.b32.xlu0 %v1087_v54, %s4934_s26  ;;  %v7051_v54 = vmov 0  }
 0x1c2   : > { %v1061_v1 = vpop.permute.xlu1 %1060 }
 0x1c3   : > { %v1092_v0 = vmul.f32 %v1061_v1, %v5233_v37 }
 0x1c5   : > { %1138 = vrot.lane.b32.xlu1 %v1088_v29, %s4934_s26  ;;  %1140 = vrot.lane.b32.xlu0 %v1089_v30, %s4934_s26  ;;  %v1093_v29 = vmul.f32 %v1061_v1, %v5223_v17  ;;  %v1094_v30 = vmul.f32 %v1061_v1, %v5244_v41  ;;  %v278_v1 = vld [vmem:[%s6951_s2] sm:$0xff] }
 0x1c9   : > { %1142 = vrot.lane.b32.xlu1 %v1090_v28, %s4934_s26  ;;  %1144 = vrot.lane.b32.xlu0 %v1091_v61, %s4934_s26  ;;  %v1065_v28 = vpop.permute.xlu1 %1064 }
 0x1ca   : > { %v1095_v61 = vmul.f32 %v1065_v28, %v5233_v37  ;;  %v1097_v18 = vmul.f32 %v1065_v28, %v5244_v41 }
 0x1cd   : > { %1008 = vperm.xlu1 %4390, %v5119_v25   ;;  %1261 = vperm.xlu0 %4389, %v5083_v20   ;;  %v1096_v20 = vmul.f32 %v1065_v28, %v5223_v17  ;;  %v282_v28 = vld [vmem:[%s6951_s2 + $0x20] sm:$0xff] }
 0x1d1   : > { %4391 = vset.pattern.permute.xlu1 %v7050_v2  ;;  %1146 = vrot.lane.b32.xlu0 %v1092_v0, %s4934_s26  ;;  %v1069_v0 = vpop.permute.xlu0 %1068 }
 0x1d2   : > { %1265 = vperm.xlu1 %4391, %v5112_v24   ;;  %v1099_v2 = vmul.f32 %v1069_v0, %v5223_v17 }
 0x1d5   : > { %1150 = vrot.lane.b32.xlu0 %v1094_v30, %s4934_s26  ;;  %v1073_v30 = vpop.permute.xlu1 %1072 }
 0x1d6   : > { %1148 = vrot.lane.b32.xlu1 %v1093_v29, %s4934_s26  ;;  %v279_v29 = vld [vmem:[%s6951_s2 + $0x8] sm:$0xff] }
 0x1d9   : > { %1154 = vrot.lane.b32.xlu0 %v1096_v20, %s4934_s26  ;;  %v284_v20 = vld [vmem:[%s6951_s2 + $0x30] sm:$0xff] }
 0x1da   : > { %1152 = vrot.lane.b32.xlu1 %v1095_v61, %s4934_s26  ;;  %v1103_v61 = vmul.f32 %v1073_v30, %v5244_v41 }
 0x1dd   : > { %1269 = vperm.xlu0 %4389, %v5090_v21   ;;  %v1101_v21 = vmul.f32 %v1073_v30, %v5233_v37 }
 0x1de   : > { %1156 = vrot.lane.b32.xlu1 %v1097_v18, %s4934_s26  ;;  %v1077_v18 = vpop.permute.xlu0 %1076 }
 0x1e1   : > { %4392 = vset.pattern.permute.xlu0 %v7051_v54 }
 0x1e2   : > { %1273 = vperm.xlu1 %4391, %v5119_v25   ;;  %288 = vperm.xlu0 %4392, %v278_v1   ;;  %v1105_v1 = vmul.f32 %v1077_v18, %v5223_v17 }
 0x1e6   : > { %1160 = vrot.lane.b32.xlu1 %v1099_v2, %s4934_s26  ;;  %293 = vperm.xlu0 %4392, %v279_v29  }
 0x1e7   : > { %4873 = vset.pattern.permute.xlu1 %v7051_v54  ;;  %v1081_v54 = vpop.permute.xlu1 %1080 }
 0x1e8   : > { %v1107_v2 = vmul.f32 %v1081_v54, %v5233_v37  ;;  %v1109_v29 = vmul.f32 %v1081_v54, %v5244_v41 }
 0x1ea   : > { %1164 = vrot.lane.b32.xlu1 %v1101_v21, %s4934_s26  ;;  %308 = vperm.xlu0 %4392, %v282_v28   ;;  %v1098_v21 = vmul.f32 %v1069_v0, %v5233_v37  ;;  %v1102_v28 = vmul.f32 %v1073_v30, %v5223_v17 }
 0x1ee   : > { %1168 = vrot.lane.b32.xlu1 %v1103_v61, %s4934_s26  ;;  %318 = vperm.xlu0 %4392, %v284_v20   ;;  %v1108_v61 = vmul.f32 %v1081_v54, %v5223_v17  ;;  %v5485_v20 = vpop.permute.xlu1 %980 }
 0x1ef   : > { %7052 = vst [vmem:[#allocation41_spill] sm:$0xff] %v5485_v20  ;;  %v628_v20 = vsel %vm627_vm5, %v5227_v26, %v5216_v13 }
 0x1f2   : > { %1172 = vrot.lane.b32.xlu1 %v1105_v1, %s4934_s26  ;;  %368 = vperm.xlu0 %4392, %v5055_v15   ;;  %v1100_v15 = vmul.f32 %v1069_v0, %v5244_v41  ;;  %v5490_v30 = vpop.permute.xlu1 %988 }
 0x1f6   : > { %1176 = vrot.lane.b32.xlu1 %v1107_v2, %s4934_s26  ;;  %378 = vperm.xlu0 %4392, %v5105_v23   ;;  %v1104_v23 = vmul.f32 %v1077_v18, %v5233_v37  ;;  %v5494_v37 = vpop.permute.xlu1 %992 }
 0x1f7   : > { %7053 = vst [vmem:[#allocation42_spill] sm:$0xff] %v5494_v37 }
 0x1fa   : > { %1180 = vrot.lane.b32.xlu1 %v1109_v29, %s4934_s26  ;;  %388 = vperm.xlu0 %4392, %v5112_v24   ;;  %v1106_v24 = vmul.f32 %v1077_v18, %v5244_v41  ;;  %v5498_v41 = vpop.permute.xlu1 %1000  ;;  %v7055_v18 = vlaneseq }
 0x1fb   : > { %7054 = vst [vmem:[#allocation43_spill] sm:$0xff] %v5498_v41 }
 0x1fc   : > { %v238_v29 = vand.u32 127, %v7055_v18  ;;  %v347_v18 = vsel %vm346_vm2, %v5156_v36, %v5146_v31  ;;  %v7065_v36 = vmov 0 }
 0x1fe   : > { %398 = vperm.xlu0 %4392, %v5119_v25   ;;  %v5482_v25 = vpop.permute.xlu0 %970  ;;  %v5503_v17 = vpop.permute.xlu1 %1245  ;;  %v239_v54 = vadd.s32 128, %v238_v29 }
 0x1ff   : > { %7057 = vst [vmem:[#allocation45_spill] sm:$0xff] %v5503_v17  ;;  %v348_v17 = vsel %vm346_vm2, %v5146_v31, %v5178_v51  ;;  %v7068_v31 = vmov 0  ;;  %v629_v51 = vsel %vm627_vm5, %v5216_v13, %v5237_v40 }
 0x202   : > { %1158 = vrot.lane.b32.xlu0 %v1098_v21, %s4934_s26  ;;  %v5488_v0 = vpop.permute.xlu0 %984 }
 0x206   : > { %1162 = vrot.lane.b32.xlu0 %v1100_v15, %s4934_s26  ;;  %v5492_v1 = vpop.permute.xlu0 %996 }
 0x20a   : > { %1166 = vrot.lane.b32.xlu0 %v1102_v28, %s4934_s26  ;;  %v5496_v2 = vpop.permute.xlu0 %1004  ;;  %v5507_v28 = vpop.permute.xlu1 %1231 }
 0x20e   : > { %1170 = vrot.lane.b32.xlu0 %v1104_v23, %s4934_s26  ;;  %v5501_v21 = vpop.permute.xlu0 %1249  ;;  %v244_v23 = vand.u32 15, %v238_v29  ;;  %v5525_v29 = vpop.permute.xlu1 %1233 }
 0x20f   : > { %7056 = vst [vmem:[#allocation44_spill] sm:$0xff] %v5501_v21  ;;  %v7061_v21 = vmov 0 }
 0x210   : > { %vm5509_vm3 = vcmp.ge.s32.totalorder %v244_v23, 1  ;;  %vm5531_vm6 = vcmp.lt.s32.totalorder %v244_v23, 15 }
 0x211   : > { %v7066_v36 = vsel %vm5531_vm6, 4294967295, %v7065_v36  ;;  %vm6448_vm0 = vmpackc.low %vm5509_vm3, %vm5509_vm3 }
 0x212   : > { %1174 = vrot.lane.b32.xlu0 %v1106_v24, %s4934_s26  ;;  %v5505_v15 = vpop.permute.xlu0 %1235  ;;  %v251_v24 = vand.u32 15, %v239_v54  ;;  %v351_v54 = vsel %vm5509_vm3, %v347_v18, 0.0  ;;  %7067 = vst [vmem:[#allocation49_spill] sm:$0xff] %v7066_v36  ;;  %v5555_v26 = vpop.permute.xlu1 %1253 }
 0x213   : > { %v5546_v18 = vrot.slane %v351_v54, %v5038_v9  ;;  %7074 = vst [vmem:[#allocation54_spill] sm:$0xff] %v5555_v26  ;;  %v713_v54 = vsel %vm712_vm8, %v5272_v48, %v5270_v47  ;;  %v577_v48 = vsel %vm572_vm9, %v5312_v63, %v5309_v62 }
 0x214   : > { %vm5516_vm4 = vcmp.ge.s32.totalorder %v251_v24, 1  ;;  %vm5538_vm7 = vcmp.lt.s32.totalorder %v251_v24, 15 }
 0x215   : > { %v7062_v21 = vsel %vm5516_vm4, 4294967295, %v7061_v21  ;;  %v352_v37 = vsel %vm5516_vm4, %v348_v17, 0.0  ;;  %v7069_v31 = vsel %vm5538_vm7, 4294967295, %v7068_v31  ;;  %7071 = vst [vmem:[#allocation51_spill] sm:$0xff] %v5546_v18  ;;  %v413_v24 = vmul.f32 %v5546_v18, %v5150_v33  ;;  %vm6435_vm15 = vmpackc.low %vm5516_vm4, %vm5516_vm4 }
 0x216   : > { %1178 = vrot.lane.b32.xlu0 %v1108_v61, %s4934_s26  ;;  %v7058_v61 = vmov 0  ;;  %7063 = vst [vmem:[#allocation47_spill] sm:$0xff] %v7062_v21  ;;  %v5523_v41 = vpop.permute.xlu0 %1257  ;;  %7070 = vst [vmem:[#allocation50_spill] sm:$0xff] %v7069_v31  ;;  %v5549_v17 = vrot.slane %v352_v37, %v5038_v9  ;;  %v633_v40 = vsel %vm5538_vm7, %v629_v51, 0.0  ;;  %v5605_v63 = vmul.f32 %v5546_v18, %v5154_v35  ;;  %v7149_v21 = vld [vmem:[#allocation39_spill] sm:$0xff] }
 0x217   : > { %v7059_v61 = vsel %vm5509_vm3, 4294967295, %v7058_v61  ;;  %7064 = vst [vmem:[#allocation48_spill] sm:$0xff] %v5523_v41  ;;  %v632_v41 = vsel %vm5531_vm6, %v628_v20, 0.0  ;;  %v714_v20 = vsel %vm712_vm8, %v5270_v47, %v5279_v50  ;;  %v673_v26 = vrot.slane %v633_v40, %v5038_v9  ;;  %vm6506_vm1 = vmpackc.low %vm5538_vm7, %vm5538_vm7 }
 0x218   : > { %7060 = vst [vmem:[#allocation46_spill] sm:$0xff] %v7059_v61  ;;  %7072 = vst [vmem:[#allocation52_spill] sm:$0xff] %v5549_v17  ;;  %v414_v13 = vmul.f32 %v5549_v17, %v5150_v33  ;;  %v669_v37 = vrot.slane %v632_v41, %v5038_v9  ;;  %v5577_v33 = vmul.f32 %v5549_v17, %v5148_v32  ;;  %v717_v40 = vsel %vm5509_vm3, %v713_v54, 0.0 }
 0x219   : > { %v429_v41 = vadd.f32 %v413_v24, %v5138_v27  ;;  %v5588_v50 = vmul.f32 %v5546_v18, %v5152_v34  ;;  %v578_v24 = vsel %vm572_vm9, %v5309_v62, %v5318_v4  ;;  %7076 = vst [vmem:[#allocation56_spill] sm:$0xff] %v5605_v63  ;;  %v754_v63 = vrot.slane %v717_v40, %v5038_v9 }
 0x21a   : > { %7075 = vst [vmem:[#allocation55_spill] sm:$0xff] %v5577_v33  ;;  %v430_v51 = vadd.f32 %v414_v13, %v5138_v27  ;;  %v5601_v27 = vmul.f32 %v5549_v17, %v5152_v34  ;;  %v5609_v13 = vmul.f32 %v5549_v17, %v5154_v35  ;;  %v5612_v54 = vmul.f32 %v669_v37, %v5251_v43 }
 0x21b   : > { %v5618_v62 = vmul.f32 %v669_v37, %v5257_v45  ;;  %v5621_v34 = vmul.f32 %v673_v26, %v5257_v45  ;;  %v609_v4 = vadd.f32 %v577_v48, %v429_v41  ;;  %v5636_v45 = vmul.f32 %v673_v26, %v5225_v22 }
 0x21c   : > { %7077 = vst [vmem:[#allocation57_spill] sm:$0xff] %v5612_v54  ;;  %v610_v17 = vadd.f32 %v578_v24, %v430_v51  ;;  %v678_v54 = vmul.f32 %v669_v37, %v5235_v39  ;;  %v5639_v41 = vmul.f32 %v669_v37, %v5249_v42  ;;  %v5642_v48 = vmul.f32 %v673_v26, %v5249_v42 }
 0x21d   : > { %v5645_v40 = vmul.f32 %v669_v37, %v5255_v44  ;;  %v679_v51 = vmul.f32 %v673_v26, %v5235_v39  ;;  %v5651_v24 = vmul.f32 %v673_v26, %v5255_v44  ;;  %v5665_v39 = vmul.f32 %v754_v63, %v5288_v53 }
 0x21e   : > { %7080 = vst [vmem:[#allocation60_spill] sm:$0xff] %v5639_v41  ;;  %7081 = vst [vmem:[#allocation61_spill] sm:$0xff] %v5642_v48  ;;  %v694_v41 = vadd.f32 %v678_v54, %v609_v4  ;;  %v5662_v48 = vmul.f32 %v754_v63, %v5277_v49  ;;  %v5679_v54 = vsel %vm572_vm9, %v5294_v56, %v5292_v55 }
 0x21f   : > { %7082 = vst [vmem:[#allocation62_spill] sm:$0xff] %v5645_v40  ;;  %7083 = vst [vmem:[#allocation63_spill] sm:$0xff] %v5651_v24  ;;  %v695_v44 = vadd.f32 %v679_v51, %v610_v17  ;;  %v763_v24 = vmul.f32 %v754_v63, %v5286_v52  ;;  %v7097_v51 = vld [vmem:[#allocation30_spill] sm:$0xff] }
 0x220   : > { %7086 = vst [vmem:[#allocation66_spill] sm:$0xff] %v5665_v39 }
 0x221   : > { %v779_v56 = vadd.f32 %v763_v24, %v694_v41  ;;  %v7096_v41 = vld [vmem:[#allocation12_spill] sm:$0xff]  ;;  %v7099_v24 = vld [vmem:[#allocation14_spill] sm:$0xff] }
 0x233   : > { %v5551_v23 = vpop.permute.xlu0 %1136  ;;  %v5597_v33 = vpop.permute.xlu1 %1134 }
 0x234   : > { %7073 = vst [vmem:[#allocation53_spill] sm:$0xff] %v5551_v23  ;;  %v5572_v23 = vmul.f32 %v5546_v18, %v5148_v32  ;;  %v718_v32 = vsel %vm5516_vm4, %v714_v20, 0.0  ;;  %v5615_v20 = vmul.f32 %v673_v26, %v5251_v43  ;;  %v5624_v18 = vmul.f32 %v669_v37, %v5266_v14 }
 0x235   : > { %v758_v35 = vrot.slane %v718_v32, %v5038_v9  ;;  %v5630_v43 = vmul.f32 %v673_v26, %v5266_v14  ;;  %v791_v32 = vld [vmem:[#allocation2 + $0x1] sm:$0x3] }
 0x236   : > { %7078 = vst [vmem:[#allocation58_spill] sm:$0xff] %v5615_v20  ;;  %v5633_v20 = vmul.f32 %v669_v37, %v5225_v22  ;;  %v5654_v22 = vmul.f32 %v669_v37, %v5264_v7  ;;  %v832_v17 = vrot.slane %v791_v32, %v5041_v11 }
 0x237   : > { %v5584_v47 = vpop.permute.xlu0 %1140  ;;  %7079 = vst [vmem:[#allocation59_spill] sm:$0xff] %v5630_v43  ;;  %v5657_v43 = vmul.f32 %v673_v26, %v5264_v7  ;;  %v5659_v42 = vpop.permute.xlu1 %1138  ;;  %v5668_v40 = vmul.f32 %v758_v35, %v5288_v53  ;;  %v764_v37 = vmul.f32 %v758_v35, %v5286_v52  ;;  %v828_v7 = vrot.slane %v791_v32, %v5038_v9  ;;  %v7098_v32 = vld [vmem:[#allocation31_spill] sm:$0xff] }
 0x238   : > { %7084 = vst [vmem:[#allocation64_spill] sm:$0xff] %v5654_v22  ;;  %v5674_v26 = vmul.f32 %v758_v35, %v5277_v49  ;;  %v5684_v53 = vsel %vm572_vm9, %v5292_v55, %v5300_v58  ;;  %v5692_v49 = vsel %vm572_vm9, %v5298_v57, %v5306_v60  ;;  %v5697_v52 = vsel %vm572_vm9, %v5306_v60, %v5304_v59 }
 0x239   : > { %7085 = vst [vmem:[#allocation65_spill] sm:$0xff] %v5657_v43  ;;  %7087 = vst [vmem:[#allocation67_spill] sm:$0xff] %v5668_v40  ;;  %v5702_v55 = vsel %vm572_vm9, %v5316_v3, %v5326_v6  ;;  %v780_v11 = vadd.f32 %v764_v37, %v695_v44  ;;  %v5707_v58 = vsel %vm572_vm9, %v5326_v6, %v5324_v5  ;;  %v7093_v3 = vld [vmem:[#allocation10_spill] sm:$0xff]  ;;  %v7095_v6 = vld [vmem:[#allocation11_spill] sm:$0xff] }
 0x23a   : > { %7088 = vst [vmem:[#allocation68_spill] sm:$0xff] %v5692_v49  ;;  %7089 = vst [vmem:[#allocation69_spill] sm:$0xff] %v5697_v52  ;;  %v5712_v57 = vsel %vm572_vm9, %v5331_v10, %v5329_v8  ;;  %v5717_v59 = vsel %vm572_vm9, %v5329_v8, %v5337_v16  ;;  %v5722_v60 = vsel %vm572_vm9, %v5335_v12, %v5345_v46  ;;  %v7100_v44 = vld [vmem:[#allocation16_spill] sm:$0xff]  ;;  %v7101_v37 = vld [vmem:[#allocation13_spill] sm:$0xff] }
 0x23b   : > { %v5648_v14 = vpop.permute.xlu0 %1144  ;;  %7090 = vst [vmem:[#allocation70_spill] sm:$0xff] %v5702_v55  ;;  %7091 = vst [vmem:[#allocation71_spill] sm:$0xff] %v5707_v58  ;;  %v5727_v5 = vsel %vm572_vm9, %v5345_v46, %v7093_v3  ;;  %v5732_v10 = vsel %vm572_vm9, %v7096_v41, %v7095_v6  ;;  %v888_v8 = vsel %vm887_vm10, %v7098_v32, %v7097_v51  ;;  %v5737_v16 = vpop.permute.xlu1 %1142  ;;  %v7103_v3 = vld [vmem:[#allocation15_spill] sm:$0xff]  ;;  %v7105_v43 = vld [vmem:[#allocation17_spill] sm:$0xff] }
 0x23c   : > { %7092 = vst [vmem:[#allocation72_spill] sm:$0xff] %v5722_v60  ;;  %7094 = vst [vmem:[#allocation10_spill] sm:$0xff] %v5727_v5  ;;  %v5742_v12 = vsel %vm572_vm9, %v7095_v6, %v7099_v24  ;;  %v5747_v46 = vsel %vm572_vm9, %v7101_v37, %v7100_v44  ;;  %v5752_v41 = vsel %vm572_vm9, %v7100_v44, %v7103_v3  ;;  %v7108_v6 = vld [vmem:[#allocation18_spill] sm:$0xff]  ;;  %v7109_v37 = vld [vmem:[#allocation33_spill] sm:$0xff] }
 0x23d   : > { %7102 = vst [vmem:[#allocation11_spill] sm:$0xff] %v5747_v46  ;;  %7104 = vst [vmem:[#allocation12_spill] sm:$0xff] %v5752_v41  ;;  %v5755_v22 = vmul.f32 %v754_v63, %v7105_v43  ;;  %v5760_v5 = vmul.f32 %v758_v35, %v7105_v43  ;;  %v5763_v24 = vmul.f32 %v754_v63, %v7108_v6  ;;  %v7110_v44 = vld [vmem:[#allocation19_spill] sm:$0xff]  ;;  %v892_v43 = vsel %vm5531_vm6, %v888_v8, 0.0  ;;  %v7118_v40 = vld [vmem:[#allocation25_spill] sm:$0xff] }
 0x23e   : > { %v5766_v60 = vmul.f32 %v758_v35, %v7108_v6  ;;  %v889_v46 = vsel %vm887_vm10, %v7097_v51, %v7109_v37  ;;  %v5772_v3 = vmul.f32 %v754_v63, %v7110_v44  ;;  %v5775_v41 = vmul.f32 %v758_v35, %v7110_v44  ;;  %v7116_v6 = vld [vmem:[#allocation21_spill] sm:$0xff] }
 0x23f   : > { %7106 = vst [vmem:[#allocation30_spill] sm:$0xff] %v5755_v22  ;;  %7107 = vst [vmem:[#allocation31_spill] sm:$0xff] %v5760_v5  ;;  %v7113_v22 = vld [vmem:[#allocation20_spill] sm:$0xff]  ;;  %v5786_v55 = vmul.f32 %v754_v63, %v7116_v6  ;;  %v839_v51 = vmul.f32 %v828_v7, %v7118_v40  ;;  %v840_v37 = vmul.f32 %v832_v17, %v7118_v40 }
 0x240   : > { %7111 = vst [vmem:[#allocation14_spill] sm:$0xff] %v5772_v3  ;;  %7112 = vst [vmem:[#allocation16_spill] sm:$0xff] %v5775_v41  ;;  %v5778_v58 = vmul.f32 %v754_v63, %v7113_v22  ;;  %v5783_v5 = vmul.f32 %v758_v35, %v7113_v22  ;;  %v5793_v44 = vmul.f32 %v758_v35, %v7116_v6  ;;  %v7121_v41 = vld [vmem:[#allocation22_spill] sm:$0xff]  ;;  %v893_v22 = vsel %vm5538_vm7, %v889_v46, 0.0 }
 0x241   : > { %7117 = vst [vmem:[#allocation17_spill] sm:$0xff] %v5786_v55  ;;  %v5796_v39 = vmul.f32 %v828_v7, %v7121_v41  ;;  %v5799_v8 = vmul.f32 %v832_v17, %v7121_v41  ;;  %v7122_v55 = vld [vmem:[#allocation23_spill] sm:$0xff]  ;;  %v929_v6 = vrot.slane %v892_v43, %v5038_v9  ;;  %v7128_v41 = vld [vmem:[#allocation26_spill] sm:$0xff]  ;;  %v855_v49 = vadd.f32 %v839_v51, %v779_v56 }
 0x242   : > { %7114 = vst [vmem:[#allocation13_spill] sm:$0xff] %v5778_v58  ;;  %7115 = vst [vmem:[#allocation15_spill] sm:$0xff] %v5783_v5  ;;  %v5806_v5 = vmul.f32 %v828_v7, %v7122_v55  ;;  %v5809_v40 = vmul.f32 %v832_v17, %v7122_v55  ;;  %v5819_v52 = vmul.f32 %v828_v7, %v7128_v41 }
 0x243   : > { %7120 = vst [vmem:[#allocation33_spill] sm:$0xff] %v5793_v44  ;;  %v5822_v46 = vmul.f32 %v832_v17, %v7128_v41  ;;  %v933_v55 = vrot.slane %v893_v22, %v5038_v9  ;;  %v973_v56 = vsel %vm972_vm11, %v5408_v38, %v5410_v19  ;;  %v7142_v38 = vld [vmem:[#allocation36_spill] sm:$0xff] }
 0x244   : > { %7123 = vst [vmem:[#allocation19_spill] sm:$0xff] %v5806_v5  ;;  %7124 = vst [vmem:[#allocation20_spill] sm:$0xff] %v5809_v40  ;;  %v856_v5 = vadd.f32 %v840_v37, %v780_v11  ;;  %v7131_v40 = vld [vmem:[#allocation27_spill] sm:$0xff]  ;;  %v7136_v37 = vld [vmem:[#allocation29_spill] sm:$0xff] }
 0x245   : > { %7129 = vst [vmem:[#allocation22_spill] sm:$0xff] %v5819_v52  ;;  %7130 = vst [vmem:[#allocation23_spill] sm:$0xff] %v5822_v46  ;;  %v5829_v43 = vmul.f32 %v828_v7, %v7131_v40  ;;  %v5849_v22 = vmul.f32 %v832_v17, %v7136_v37 }
 0x247   : > { %7138 = vst [vmem:[#allocation29_spill] sm:$0xff] %v5849_v22  ;;  %v977_v22 = vsel %vm5509_vm3, %v973_v56, 0.0  ;;  %v1238_v56 = vsel %vm1237_vm12, %v5507_v28, %v5525_v29 }
 0x24c   : > { %v5687_v4 = vpop.permute.xlu0 %1261  ;;  %v5790_v3 = vpop.permute.xlu1 %1008 }
 0x24d   : > { %7119 = vst [vmem:[#allocation18_spill] sm:$0xff] %v5790_v3  ;;  %v7125_v3 = vld [vmem:[#allocation24_spill] sm:$0xff] }
 0x24e   : > { %v5812_v35 = vmul.f32 %v828_v7, %v7125_v3  ;;  %v5816_v44 = vmul.f32 %v832_v17, %v7125_v3  ;;  %v5832_v3 = vmul.f32 %v832_v17, %v7131_v40  ;;  %v7139_v40 = vld [vmem:[#allocation32_spill] sm:$0xff] }
 0x24f   : > { %v5852_v41 = vmul.f32 %v929_v6, %v7139_v40 }
 0x250   : > { %v5757_v32 = vpop.permute.xlu0 %1146  ;;  %7126 = vst [vmem:[#allocation21_spill] sm:$0xff] %v5812_v35  ;;  %7127 = vst [vmem:[#allocation25_spill] sm:$0xff] %v5816_v44  ;;  %v974_v35 = vsel %vm972_vm11, %v5410_v19, %v5482_v25  ;;  %v7132_v44 = vld [vmem:[#allocation28_spill] sm:$0xff]  ;;  %v5846_v25 = vmul.f32 %v828_v7, %v7136_v37  ;;  %v938_v19 = vmul.f32 %v929_v6, %v7142_v38 }
 0x251   : > { %v5835_v52 = vmul.f32 %v828_v7, %v7132_v44  ;;  %v5843_v51 = vmul.f32 %v832_v17, %v7132_v44  ;;  %v5854_v46 = vpop.permute.xlu1 %1265  ;;  %v978_v44 = vsel %vm5516_vm4, %v974_v35, 0.0  ;;  %v7144_v17 = vld [vmem:[#allocation35_spill] sm:$0xff]  ;;  %v5881_v35 = vmul.f32 %v929_v6, %v7149_v21 }
 0x252   : > { %7137 = vst [vmem:[#allocation28_spill] sm:$0xff] %v5846_v25  ;;  %v5867_v37 = vmul.f32 %v929_v6, %v7144_v17  ;;  %v5892_v61 = vrot.slane %v978_v44, %v5038_v9  ;;  %v7156_v44 = vld [vmem:[#allocation40_spill] sm:$0xff] }
 0x253   : > { %7133 = vst [vmem:[#allocation24_spill] sm:$0xff] %v5835_v52  ;;  %7135 = vst [vmem:[#allocation27_spill] sm:$0xff] %v5843_v51  ;;  %v7140_v52 = vld [vmem:[#allocation34_spill] sm:$0xff]  ;;  %v5870_v51 = vmul.f32 %v933_v55, %v7144_v17  ;;  %v5889_v17 = vmul.f32 %v933_v55, %v7149_v21  ;;  %v5913_v28 = vmul.f32 %v933_v55, %v7156_v44 }
 0x254   : > { %v5803_v63 = vpop.permute.xlu0 %1150  ;;  %v5857_v58 = vmul.f32 %v929_v6, %v7140_v52  ;;  %v5864_v7 = vmul.f32 %v933_v55, %v7140_v52  ;;  %7150 = vst [vmem:[#allocation39_spill] sm:$0xff] %v5881_v35  ;;  %7153 = vst [vmem:[#allocation75_spill] sm:$0xff] %v5892_v61  ;;  %v954_v35 = vadd.f32 %v938_v19, %v855_v49  ;;  %v1242_v49 = vsel %vm5531_vm6, %v1238_v56, 0.0  ;;  %v7161_v56 = vld [vmem:[#allocation55_spill] sm:$0xff] }
 0x255   : > { %7145 = vst [vmem:[#allocation36_spill] sm:$0xff] %v5870_v51  ;;  %7152 = vst [vmem:[#allocation74_spill] sm:$0xff] %v5889_v17  ;;  %v5910_v17 = vmul.f32 %v929_v6, %v7156_v44  ;;  %v1149_v51 = vpop.permute.xlu1 %1148  ;;  %v7162_v44 = vld [vmem:[#allocation41_spill] sm:$0xff]  ;;  %v5954_v31 = vrot.slane %v1242_v49, %v5038_v9 }
 0x256   : > { %7141 = vst [vmem:[#allocation32_spill] sm:$0xff] %v5857_v58  ;;  %7143 = vst [vmem:[#allocation34_spill] sm:$0xff] %v5864_v7  ;;  %v7146_v58 = vld [vmem:[#allocation37_spill] sm:$0xff]  ;;  %v5886_v7 = vmul.f32 %v933_v55, %v7139_v40  ;;  %v5904_v40 = vrot.slane %v977_v22, %v5038_v9 }
 0x257   : > { %v5875_v25 = vmul.f32 %v929_v6, %v7146_v58  ;;  %7157 = vst [vmem:[#allocation40_spill] sm:$0xff] %v5913_v28 }
 0x258   : > { %v5840_v11 = vpop.permute.xlu0 %1154  ;;  %v5941_v19 = vmul.f32 %v5904_v40, %v5496_v2  ;;  %v1019_v36 = vmul.f32 %v5904_v40, %v7162_v44 }
 0x259   : > { %7134 = vst [vmem:[#allocation26_spill] sm:$0xff] %v5840_v11  ;;  %v939_v11 = vmul.f32 %v933_v55, %v7142_v38  ;;  %7147 = vst [vmem:[#allocation35_spill] sm:$0xff] %v5875_v25  ;;  %v5878_v38 = vmul.f32 %v933_v55, %v7146_v58  ;;  %v1239_v58 = vsel %vm1237_vm12, %v5525_v29, %v5505_v15 }
 0x25a   : > { %v1023_v15 = vmul.f32 %v5904_v40, %v5490_v30  ;;  %v1024_v29 = vmul.f32 %v5892_v61, %v5490_v30  ;;  %v5937_v30 = vmul.f32 %v5892_v61, %v5492_v1 }
 0x25b   : > { %7148 = vst [vmem:[#allocation37_spill] sm:$0xff] %v5878_v38  ;;  %v955_v38 = vadd.f32 %v939_v11, %v856_v5  ;;  %v1243_v5 = vsel %vm5538_vm7, %v1239_v58, 0.0  ;;  %v5933_v11 = vmul.f32 %v5904_v40, %v5492_v1  ;;  %v1020_v1 = vmul.f32 %v5892_v61, %v7162_v44  ;;  %v7164_v44 = vld [vmem:[#allocation43_spill] sm:$0xff] }
 0x25c   : > { %v5883_v52 = vpop.permute.xlu0 %1269  ;;  %v5957_v28 = vrot.slane %v1243_v5, %v5038_v9  ;;  %v5971_v49 = vmul.f32 %v5904_v40, %v7164_v44  ;;  %v5975_v9 = vmul.f32 %v5892_v61, %v7164_v44  ;;  %v7167_v5 = vld [vmem:[#allocation54_spill] sm:$0xff] }
 0x25d   : > { %7151 = vst [vmem:[#allocation73_spill] sm:$0xff] %v5883_v52  ;;  %v7154_v52 = vld [vmem:[#allocation38_spill] sm:$0xff] }
 0x25e   : > { %v5901_v25 = vmul.f32 %v929_v6, %v7154_v52  ;;  %7155 = vst [vmem:[#allocation38_spill] sm:$0xff] %v5904_v40  ;;  %v5907_v21 = vmul.f32 %v933_v55, %v7154_v52  ;;  %v5925_v6 = vmul.f32 %v5904_v40, %v5488_v0  ;;  %v5929_v55 = vmul.f32 %v5892_v61, %v5488_v0 }
 0x25f   : > { %v5945_v52 = vmul.f32 %v5892_v61, %v5496_v2  ;;  %7165 = vst [vmem:[#allocation55_spill] sm:$0xff] %v5971_v49  ;;  %7166 = vst [vmem:[#allocation41_spill] sm:$0xff] %v5975_v9 }
 0x260   : > { %7158 = vst [vmem:[#allocation76_spill] sm:$0xff] %v5925_v6  ;;  %7159 = vst [vmem:[#allocation77_spill] sm:$0xff] %v5929_v55  ;;  %v1039_v55 = vadd.f32 %v1023_v15, %v954_v35  ;;  %v1040_v6 = vadd.f32 %v1024_v29, %v955_v38  ;;  %v5977_v38 = vpop.permute.xlu1 %1152  ;;  %v1188_v35 = vsel %vm1182_vm13, %v1149_v51, %v5803_v63 }
 0x261   : > { %v289_v22 = vpop.permute.xlu0 %288  ;;  %7160 = vst [vmem:[#allocation78_spill] sm:$0xff] %v5945_v52  ;;  %v7163_v52 = vld [vmem:[#allocation42_spill] sm:$0xff] }
 0x262   : > { %v425_v0 = vadd.f32 %v5572_v23, %v289_v22  ;;  %v426_v58 = vadd.f32 %v7161_v56, %v289_v22  ;;  %v5963_v22 = vmul.f32 %v5904_v40, %v7163_v52  ;;  %v5967_v56 = vmul.f32 %v5892_v61, %v7163_v52  ;;  %v7170_v61 = vld [vmem:[#allocation45_spill] sm:$0xff]  ;;  %v7171_v40 = vld [vmem:[#allocation44_spill] sm:$0xff] }
 0x263   : > { %v1288_v52 = vmul.f32 %v5954_v31, %v7167_v5  ;;  %v1284_v63 = vmul.f32 %v5954_v31, %v7170_v61  ;;  %v6007_v9 = vmul.f32 %v5954_v31, %v7171_v40 }
 0x264   : > { %v605_v2 = vadd.f32 %v5679_v54, %v425_v0  ;;  %v606_v23 = vadd.f32 %v5684_v53, %v426_v58  ;;  %v1187_v53 = vsel %vm1182_vm13, %v5757_v32, %v1149_v51  ;;  %v1289_v0 = vmul.f32 %v5957_v28, %v7167_v5  ;;  %v7168_v58 = vld [vmem:[#allocation48_spill] sm:$0xff] }
 0x265   : > { %v5979_v54 = vpop.permute.xlu0 %293  ;;  %v5993_v44 = vmul.f32 %v5954_v31, %v7168_v58  ;;  %v5997_v32 = vmul.f32 %v5957_v28, %v7168_v58  ;;  %v6011_v58 = vmul.f32 %v5957_v28, %v7171_v40  ;;  %v6026_v40 = vsel %vm1182_vm13, %v5584_v47, %v5737_v16 }
 0x266   : > { %v690_v15 = vadd.f32 %v5633_v20, %v605_v2  ;;  %v691_v29 = vadd.f32 %v5636_v45, %v606_v23  ;;  %v1285_v20 = vmul.f32 %v5957_v28, %v7170_v61  ;;  %v1219_v2 = vadd.f32 %v1187_v53, %v1039_v55 }
 0x267   : > { %7169 = vst [vmem:[#allocation42_spill] sm:$0xff] %v5997_v32  ;;  %v1220_v23 = vadd.f32 %v1188_v35, %v1040_v6 }
 0x268   : > { %v775_v45 = vadd.f32 %v5662_v48, %v690_v15  ;;  %v776_v51 = vadd.f32 %v5674_v26, %v691_v29  ;;  %v7172_v26 = vld [vmem:[#allocation53_spill] sm:$0xff]  ;;  %v1304_v47 = vadd.f32 %v1288_v52, %v1219_v2 }
 0x269   : > { %v309_v5 = vpop.permute.xlu0 %308  ;;  %v1183_v6 = vsel %vm1182_vm13, %v5597_v33, %v7172_v26  ;;  %v1184_v55 = vsel %vm1182_vm13, %v7172_v26, %v5659_v42  ;;  %v6035_v33 = vsel %vm1182_vm13, %v5737_v16, %v5648_v14  ;;  %v6039_v42 = vmul.f32 %v5954_v31, %v5687_v4  ;;  %v7173_v16 = vld [vmem:[#allocation56_spill] sm:$0xff] }
 0x26a   : > { %v851_v49 = vadd.f32 %v5796_v39, %v775_v45  ;;  %v852_v32 = vadd.f32 %v5799_v8, %v776_v51  ;;  %v433_v61 = vadd.f32 %v5588_v50, %v309_v5  ;;  %v434_v48 = vadd.f32 %v5601_v27, %v309_v5  ;;  %v1157_v39 = vpop.permute.xlu1 %1156 }
 0x26b   : > { %v1305_v35 = vadd.f32 %v1289_v0, %v1220_v23  ;;  %v6049_v14 = vmul.f32 %v5954_v31, %v5854_v46 }
 0x26c   : > { %v950_v8 = vadd.f32 %v5852_v41, %v851_v49  ;;  %v951_v50 = vadd.f32 %v5886_v7, %v852_v32  ;;  %v613_v27 = vadd.f32 %v5712_v57, %v433_v61  ;;  %v614_v53 = vadd.f32 %v5717_v59, %v434_v48  ;;  %v7175_v48 = vld [vmem:[#allocation52_spill] sm:$0xff] }
 0x26d   : > { %v319_v15 = vpop.permute.xlu0 %318  ;;  %v6045_v59 = vmul.f32 %v5957_v28, %v5687_v4 }
 0x26e   : > { %v1035_v29 = vadd.f32 %v1019_v36, %v950_v8  ;;  %v1036_v41 = vadd.f32 %v1020_v1, %v951_v50  ;;  %v698_v7 = vadd.f32 %v5618_v62, %v613_v27  ;;  %v699_v57 = vadd.f32 %v5621_v34, %v614_v53  ;;  %v6059_v4 = vpop.permute.xlu1 %1273  ;;  %v7176_v8 = vld [vmem:[#allocation26_spill] sm:$0xff] }
 0x26f   : > { %v437_v49 = vadd.f32 %v7173_v16, %v319_v15  ;;  %v438_v52 = vadd.f32 %v5609_v13, %v319_v15  ;;  %v6055_v1 = vmax.f32 %v1304_v47, 0.0  ;;  %v6057_v34 = vmax.f32 %v1305_v35, 0.0  ;;  %v7174_v13 = vld [vmem:[#allocation51_spill] sm:$0xff]  ;;  %v7179_v47 = vld [vmem:[#allocation68_spill] sm:$0xff]  ;;  %v7180_v15 = vld [vmem:[#allocation69_spill] sm:$0xff] }
 0x270   : > { %v1215_v0 = vadd.f32 %v1183_v6, %v1035_v29  ;;  %v1216_v32 = vadd.f32 %v1184_v55, %v1036_v41  ;;  %v783_v36 = vadd.f32 %v5763_v24, %v698_v7  ;;  %v784_v62 = vadd.f32 %v5766_v60, %v699_v57 }
 0x271   : > { %v617_v45 = vadd.f32 %v5732_v10, %v437_v49  ;;  %v618_v51 = vadd.f32 %v5742_v12, %v438_v52  ;;  %v369_v2 = vpop.permute.xlu0 %368  ;;  %v6067_v60 = vmul.f32 %v5957_v28, %v5854_v46  ;;  %v6081_v50 = vsel %vm1182_vm13, %v5977_v38, %v7176_v8  ;;  %v7177_v46 = vld [vmem:[#allocation59_spill] sm:$0xff]  ;;  %v7181_v49 = vld [vmem:[#allocation28_spill] sm:$0xff] }
 0x272   : > { %v1300_v23 = vadd.f32 %v1284_v63, %v1215_v0  ;;  %v1301_v5 = vadd.f32 %v1285_v20, %v1216_v32  ;;  %v411_v61 = vmul.f32 %v7174_v13, %v369_v2  ;;  %v412_v26 = vmul.f32 %v7175_v48, %v369_v2  ;;  %v6093_v7 = vpop.permute.xlu1 %1160  ;;  %v7182_v0 = vld [vmem:[#allocation57_spill] sm:$0xff] }
 0x273   : > { %v702_v24 = vadd.f32 %v5624_v18, %v617_v45  ;;  %v859_v6 = vadd.f32 %v5829_v43, %v783_v36  ;;  %v860_v55 = vadd.f32 %v5832_v3, %v784_v62  ;;  %v703_v27 = vadd.f32 %v7177_v46, %v618_v51  ;;  %v7178_v18 = vld [vmem:[#allocation13_spill] sm:$0xff]  ;;  %v7183_v36 = vld [vmem:[#allocation58_spill] sm:$0xff]  ;;  %v7184_v45 = vld [vmem:[#allocation7_spill] sm:$0xff] }
 0x274   : > { %v6072_v10 = vmax.f32 %v1300_v23, 0.0  ;;  %v6074_v12 = vmax.f32 %v1301_v5, 0.0  ;;  %v427_v63 = vadd.f32 %v411_v61, %v5979_v54  ;;  %v428_v20 = vadd.f32 %v412_v26, %v5979_v54  ;;  %v7185_v5 = vld [vmem:[#allocation15_spill] sm:$0xff]  ;;  %v7186_v26 = vld [vmem:[#allocation66_spill] sm:$0xff] }
 0x275   : > { %v787_v53 = vadd.f32 %v7178_v18, %v702_v24  ;;  %v379_v43 = vpop.permute.xlu0 %378  ;;  %v6087_v3 = vpack.i.bf16 %v6057_v34, %v6055_v1  ;;  %v958_v57 = vadd.f32 %v5901_v25, %v859_v6  ;;  %v959_v16 = vadd.f32 %v5907_v21, %v860_v55  ;;  %v7187_v6 = vld [vmem:[#allocation67_spill] sm:$0xff] }
 0x276   : > { %v607_v35 = vadd.f32 %v7179_v47, %v427_v63  ;;  %v608_v29 = vadd.f32 %v7180_v15, %v428_v20  ;;  %v415_v54 = vmul.f32 %v7174_v13, %v379_v43  ;;  %v416_v41 = vmul.f32 %v7175_v48, %v379_v43  ;;  %v7188_v63 = vld [vmem:[#allocation70_spill] sm:$0xff]  ;;  %v7189_v46 = vld [vmem:[#allocation71_spill] sm:$0xff]  ;;  %v7192_v15 = vld [vmem:[#allocation60_spill] sm:$0xff] }
 0x277   : > { %v6097_v38 = vpack.i.bf16 %v6074_v12, %v6072_v10  ;;  %v863_v52 = vadd.f32 %v7181_v49, %v787_v53  ;;  %v1190_v23 = vsel %vm1182_vm13, %v7176_v8, %v1157_v39  ;;  %v788_v61 = vadd.f32 %v7185_v5, %v703_v27  ;;  %v7190_v43 = vld [vmem:[#allocation19_spill] sm:$0xff]  ;;  %v6124_v49 = vpop.permute.xlu1 %1164 }
 0x278   : > { %v692_v32 = vadd.f32 %v7182_v0, %v607_v35  ;;  %v693_v62 = vadd.f32 %v7183_v36, %v608_v29  ;;  %v431_v51 = vadd.f32 %v415_v54, %v7184_v45  ;;  %v432_v2 = vadd.f32 %v416_v41, %v7184_v45  ;;  %v7191_v35 = vld [vmem:[#allocation20_spill] sm:$0xff]  ;;  %v7193_v54 = vld [vmem:[#allocation61_spill] sm:$0xff] }
 0x279   : > { %4394 = vrot.lane.b32.xlu0 %v6097_v38, %s4920_s25  ;;  %v389_v25 = vpop.permute.xlu0 %388  ;;  %v962_v21 = vadd.f32 %v5910_v17, %v863_v52  ;;  %v1043_v8 = vadd.f32 %v5933_v11, %v958_v57  ;;  %v1044_v27 = vadd.f32 %v5937_v30, %v959_v16  ;;  %v7194_v52 = vld [vmem:[#allocation8_spill] sm:$0xff]  ;;  %v7195_v36 = vmov 0.0   ;;  %v7196_v57 = vld [vmem:[#allocation29_spill] sm:$0xff] }
 0x27a   : > { %v777_v24 = vadd.f32 %v7186_v26, %v692_v32  ;;  %v778_v55 = vadd.f32 %v7187_v6, %v693_v62  ;;  %v611_v20 = vadd.f32 %v7188_v63, %v431_v51  ;;  %v612_v18 = vadd.f32 %v7189_v46, %v432_v2  ;;  %v7197_v45 = vld [vmem:[#allocation36_spill] sm:$0xff]  ;;  %v7198_v2 = vld [vmem:[#allocation30_spill] sm:$0xff] }
 0x27b   : > { %v419_v53 = vmul.f32 %v7174_v13, %v389_v25  ;;  %v420_v39 = vmul.f32 %v7175_v48, %v389_v25  ;;  %v6131_v30 = vadd.f32 %v5941_v19, %v962_v21  ;;  %v864_v16 = vadd.f32 %v7196_v57, %v788_v61  ;;  %v7199_v25 = vld [vmem:[#allocation31_spill] sm:$0xff]  ;;  %v7202_v19 = vld [vmem:[#allocation76_spill] sm:$0xff] }
 0x27c   : > { %v853_v47 = vadd.f32 %v7190_v43, %v777_v24  ;;  %v854_v17 = vadd.f32 %v7191_v35, %v778_v55  ;;  %v696_v29 = vadd.f32 %v7192_v15, %v611_v20  ;;  %v697_v41 = vadd.f32 %v7193_v54, %v612_v18  ;;  %v7200_v24 = vld [vmem:[#allocation72_spill] sm:$0xff]  ;;  %v7201_v55 = vld [vmem:[#allocation10_spill] sm:$0xff]  ;;  %v7203_v18 = vld [vmem:[#allocation77_spill] sm:$0xff] }
 0x27d   : > { %v435_v0 = vadd.f32 %v419_v53, %v7194_v52  ;;  %v436_v32 = vadd.f32 %v420_v39, %v7194_v52  ;;  %4404 = vrot.lane.b32.xlu0 %v7195_v36, %s4920_s25  ;;  %v399_v11 = vpop.permute.xlu0 %398  ;;  %v7204_v53 = vld [vmem:[#allocation21_spill] sm:$0xff] }
 0x27e   : > { %v952_v62 = vadd.f32 %v5867_v37, %v853_v47  ;;  %v953_v51 = vadd.f32 %v7197_v45, %v854_v17  ;;  %v781_v5 = vadd.f32 %v7198_v2, %v696_v29  ;;  %v782_v26 = vadd.f32 %v7199_v25, %v697_v41  ;;  %v7205_v39 = vld [vmem:[#allocation25_spill] sm:$0xff]  ;;  %v7206_v47 = vld [vmem:[#allocation62_spill] sm:$0xff]  ;;  %v7207_v17 = vld [vmem:[#allocation63_spill] sm:$0xff] }
 0x27f   : > { %v615_v6 = vadd.f32 %v7200_v24, %v435_v0  ;;  %v616_v63 = vadd.f32 %v7201_v55, %v436_v32  ;;  %v423_v20 = vmul.f32 %v7174_v13, %v399_v11  ;;  %v424_v46 = vmul.f32 %v7175_v48, %v399_v11  ;;  %v7208_v29 = vld [vmem:[#allocation9_spill] sm:$0xff]  ;;  %v7209_v0 = vld [vmem:[#allocation32_spill] sm:$0xff]  ;;  %v7210_v11 = vld [vmem:[#allocation34_spill] sm:$0xff] }
 0x280   : > { %v1037_v21 = vadd.f32 %v7202_v19, %v952_v62  ;;  %v1038_v61 = vadd.f32 %v7203_v18, %v953_v51  ;;  %v857_v37 = vadd.f32 %v7204_v53, %v781_v5  ;;  %v858_v43 = vadd.f32 %v7205_v39, %v782_v26  ;;  %v1169_v62 = vpop.permute.xlu1 %1168  ;;  %v7211_v45 = vld [vmem:[#allocation14_spill] sm:$0xff]  ;;  %v7212_v2 = vld [vmem:[#allocation16_spill] sm:$0xff]  ;;  %v7213_v25 = vld [vmem:[#allocation11_spill] sm:$0xff] }
 0x281   : > { %v700_v35 = vadd.f32 %v7206_v47, %v615_v6  ;;  %v701_v15 = vadd.f32 %v7207_v17, %v616_v63  ;;  %v439_v54 = vadd.f32 %v423_v20, %v7208_v29  ;;  %v440_v41 = vadd.f32 %v424_v46, %v7208_v29  ;;  %v1159_v52 = vpop.permute.xlu0 %1158  ;;  %v7214_v24 = vld [vmem:[#allocation12_spill] sm:$0xff]  ;;  %v7216_v19 = vld [vmem:[#allocation65_spill] sm:$0xff]  ;;  %v7217_v53 = vld [vmem:[#allocation22_spill] sm:$0xff] }
 0x282   : > { %v1217_v13 = vadd.f32 %v6026_v40, %v1037_v21  ;;  %v1218_v48 = vadd.f32 %v6035_v33, %v1038_v61  ;;  %v956_v32 = vadd.f32 %v7209_v0, %v857_v37  ;;  %v957_v57 = vadd.f32 %v7210_v11, %v858_v43  ;;  %v7215_v20 = vld [vmem:[#allocation64_spill] sm:$0xff] }
 0x283   : > { %v785_v51 = vadd.f32 %v7211_v45, %v700_v35  ;;  %v786_v5 = vadd.f32 %v7212_v2, %v701_v15  ;;  %v619_v26 = vadd.f32 %v7213_v25, %v439_v54  ;;  %v620_v6 = vadd.f32 %v7214_v24, %v440_v41  ;;  %v7219_v17 = vld [vmem:[#allocation40_spill] sm:$0xff]  ;;  %v7220_v54 = vld [vmem:[#allocation42_spill] sm:$0xff]  ;;  %v7224_v45 = vld [vmem:[#allocation37_spill] sm:$0xff] }
 0x284   : > { %v1302_v55 = vadd.f32 %v6007_v9, %v1217_v13  ;;  %v1303_v63 = vadd.f32 %v6011_v58, %v1218_v48  ;;  %v1041_v40 = vadd.f32 %v5963_v22, %v956_v32  ;;  %v1042_v33 = vadd.f32 %v5967_v56, %v957_v57  ;;  %v7218_v22 = vld [vmem:[#allocation17_spill] sm:$0xff]  ;;  %v7221_v13 = vld [vmem:[#allocation23_spill] sm:$0xff]  ;;  %v1173_v0 = vpop.permute.xlu1 %1172 }
 0x285   : > { %v704_v46 = vadd.f32 %v7215_v20, %v619_v26  ;;  %v705_v21 = vadd.f32 %v7216_v19, %v620_v6  ;;  %v1191_v18 = vsel %vm1182_vm13, %v1159_v52, %v6093_v7  ;;  %v1163_v61 = vpop.permute.xlu0 %1162  ;;  %v861_v37 = vadd.f32 %v7217_v53, %v785_v51  ;;  %v7222_v32 = vld [vmem:[#allocation33_spill] sm:$0xff]  ;;  %v7225_v2 = vld [vmem:[#allocation55_spill] sm:$0xff]  ;;  %v7227_v20 = vld [vmem:[#allocation24_spill] sm:$0xff] }
 0x286   : > { %v6167_v39 = vmax.f32 %v1302_v55, 0.0  ;;  %v6169_v43 = vmax.f32 %v1303_v63, 0.0  ;;  %v1221_v9 = vadd.f32 %v6081_v50, %v1041_v40  ;;  %v1222_v58 = vadd.f32 %v1190_v23, %v1042_v33  ;;  %v7223_v50 = vld [vmem:[#allocation35_spill] sm:$0xff]  ;;  %v7226_v6 = vld [vmem:[#allocation41_spill] sm:$0xff] }
 0x287   : > { %v789_v47 = vadd.f32 %v7218_v22, %v704_v46  ;;  %v1223_v56 = vadd.f32 %v1191_v18, %v1043_v8  ;;  %v1192_v35 = vsel %vm1182_vm13, %v6093_v7, %v1163_v61  ;;  %v963_v15 = vadd.f32 %v7219_v17, %v864_v16  ;;  %v7228_v18 = vld [vmem:[#allocation27_spill] sm:$0xff]  ;;  %v7230_v22 = vld [vmem:[#allocation38_spill] sm:$0xff] }
 0x288   : > { %v1306_v29 = vadd.f32 %v5993_v44, %v1221_v9  ;;  %v1307_v41 = vadd.f32 %v7220_v54, %v1222_v58  ;;  %v1224_v52 = vadd.f32 %v1192_v35, %v1044_v27  ;;  %v862_v48 = vadd.f32 %v7221_v13, %v786_v5  ;;  %v1177_v53 = vpop.permute.xlu1 %1176  ;;  %v7229_v58 = vld [vmem:[#allocation18_spill] sm:$0xff] }
 0x289   : > { %v790_v11 = vadd.f32 %v7222_v32, %v705_v21  ;;  %v960_v23 = vadd.f32 %v7223_v50, %v861_v37  ;;  %v1167_v57 = vpop.permute.xlu0 %1166  ;;  %v6183_v8 = vpack.c.bf16 %v6169_v43, %v6074_v12  ;;  %v6187_v7 = vpack.i.bf16 %v6169_v43, %v6167_v39  ;;  %v7232_v54 = vld [vmem:[#allocation78_spill] sm:$0xff] }
 0x28a   : > { %v6189_v44 = vmax.f32 %v1306_v29, 0.0  ;;  %v6191_v16 = vmax.f32 %v1307_v41, 0.0  ;;  %v1309_v27 = vadd.f32 %v6045_v59, %v1224_v52  ;;  %v961_v51 = vadd.f32 %v7224_v45, %v862_v48  ;;  %v7233_v52 = vld [vmem:[#allocation39_spill] sm:$0xff]  ;;  %v7234_v48 = vld [vmem:[#allocation74_spill] sm:$0xff] }
 0x28b   : > { %v1045_v5 = vadd.f32 %v7225_v2, %v960_v23  ;;  %v1193_v25 = vsel %vm1182_vm13, %v6124_v49, %v1167_v57  ;;  %v1194_v26 = vsel %vm1182_vm13, %v1167_v57, %v1169_v62  ;;  %4079 = vmatprep.subr.bf16.mxu0 %v6183_v8  ;;  %4399 = vrot.lane.b32.xlu1 %v6187_v7, %s4920_s25 }
 0x28c   : > { %v1308_v24 = vadd.f32 %v6039_v42, %v1223_v56  ;;  %v1046_v55 = vadd.f32 %v7226_v6, %v961_v51  ;;  %v6206_v59 = vpack.c.bf16 %v6167_v39, %v6072_v10  ;;  %v6210_v63 = vpack.c.bf16 %v6191_v16, %v6057_v34  ;;  %v7231_v56 = vld [vmem:[#allocation73_spill] sm:$0xff] }
 0x28d   : > { %v6212_v49 = vmax.f32 %v1309_v27, 0.0  ;;  %v1225_v62 = vadd.f32 %v1193_v25, %v1045_v5  ;;  %v1171_v40 = vpop.permute.xlu0 %1170  ;;  %v6216_v33 = vpack.i.bf16 %v6191_v16, %v6189_v44  ;;  %v865_v42 = vadd.f32 %v7227_v20, %v789_v47  ;;  %v1181_v5 = vpop.permute.xlu1 %1180 }
 0x28e   : > { %v1226_v46 = vadd.f32 %v1194_v26, %v1046_v55  ;;  %4081 = vmatpush1.bf16.msra.mxu0 %v6206_v59  ;;  %v1195_v19 = vsel %vm1182_vm13, %v1171_v40, %v1173_v0  ;;  %v6223_v21 = vpack.c.bf16 %v6189_v44, %v6055_v1  ;;  %v866_v61 = vadd.f32 %v7228_v18, %v790_v11 }
 0x28f   : > { %v1310_v37 = vadd.f32 %v6049_v14, %v1225_v62  ;;  %v1227_v9 = vadd.f32 %v1195_v19, %v6131_v30  ;;  %4409 = vrot.lane.b32.xlu1 %v6087_v3, %s4920_s25  ;;  %4083 = vmatprep.subr.bf16.mxu0 %v6210_v63  ;;  %v1033_v47 = vmul.f32 %v7230_v22, %v7229_v58  ;;  %v1324_v17 = vmax.f32 %v1308_v24, 0.0 }
 0x290   : > { %v1296_v35 = vmul.f32 %v5954_v31, %v7231_v56  ;;  %v1311_v29 = vadd.f32 %v6067_v60, %v1226_v46  ;;  %4414 = vrot.lane.b32.xlu0 %v6216_v33, %s4920_s25  ;;  %v1048_v30 = vadd.f32 %v7232_v54, %v963_v15  ;;  %v964_v13 = vadd.f32 %v7233_v52, %v865_v42  ;;  %v7235_v60 = vld [vmem:[#allocation75_spill] sm:$0xff] }
 0x291   : > { %v1326_v14 = vmax.f32 %v1310_v37, 0.0  ;;  %v1175_v41 = vpop.permute.xlu0 %1174  ;;  %v965_v32 = vadd.f32 %v7234_v48, %v866_v61  ;;  %v6244_v57 = vpack.i.bf16 %v6212_v49, %v1324_v17  ;;  %v1034_v27 = vmul.f32 %v7235_v60, %v7229_v58 }
 0x292   : > { %v1327_v11 = vmax.f32 %v1311_v29, 0.0  ;;  %v1312_v50 = vadd.f32 %v1296_v35, %v1227_v9  ;;  %4085 = vmatpush1.bf16.msra.mxu0 %v6223_v21  ;;  %v1196_v23 = vsel %vm1182_vm13, %v1173_v0, %v1175_v41  ;;  %v1297_v15 = vmul.f32 %v5957_v28, %v7231_v56  ;;  %v2485_v35 = vld [vmem:[#allocation4 + $0x100] sm:$0xff] }
 0x293   : > { %v1228_v45 = vadd.f32 %v1196_v23, %v1048_v30  ;;  %4419 = vrot.lane.b32.xlu1 %v7195_v36, %s4920_s25  ;;  %v6252_v51 = vpack.c.bf16 %v1326_v14, %v1324_v17  ;;  %v1298_v2 = vmul.f32 %v5954_v31, %v6059_v4  ;;  %v1049_v26 = vadd.f32 %v1033_v47, %v964_v13 }
 0x294   : > { %4424 = vrot.lane.b32.xlu0 %v6244_v57, %s4920_s25  ;;  %v6259_v0 = vpack.c.bf16 %v1327_v11, %v6212_v49  ;;  %v1050_v24 = vadd.f32 %v1034_v27, %v965_v32  ;;  %v6261_v55 = vpack.i.bf16 %v1327_v11, %v1326_v14  ;;  %v1299_v62 = vmul.f32 %v5957_v28, %v6059_v4 }
 0x295   : > { %v1313_v25 = vadd.f32 %v1297_v15, %v1228_v45  ;;  %v1179_v6 = vpop.permute.xlu0 %1178  ;;  %v1328_v40 = vmax.f32 %v1312_v50, 0.0  ;;  %v6273_v18 = vpack.i.bf16 %v6167_v39, %v6072_v10  ;;  %v6299_v47 = vpack.i.bf16 %v7195_v36, %v6169_v43 }
 0x296   : > { %4087 = vmatprep.subr.bf16.mxu0 %v6259_v0  ;;  %v1197_v31 = vsel %vm1182_vm13, %v1177_v53, %v1179_v6  ;;  %v1198_v20 = vsel %vm1182_vm13, %v1179_v6, %v1181_v5  ;;  %v6279_v53 = vpack.i.bf16 %v1326_v14, %v1324_v17  ;;  %v6303_v56 = vpack.i.bf16 %v7195_v36, %v6074_v12  ;;  %v2488_v14 = vld [vmem:[#allocation4 + $0x118] sm:$0xff] }
 0x297   : > { %v1329_v42 = vmax.f32 %v1313_v25, 0.0  ;;  %4089 = vmatpush1.bf16.msra.mxu0 %v6252_v51  ;;  %v1229_v46 = vadd.f32 %v1197_v31, %v1049_v26  ;;  %v1230_v19 = vadd.f32 %v1198_v20, %v1050_v24  ;;  %4429 = vrot.lane.b32.xlu1 %v6261_v55, %s4920_s25  ;;  %v6312_v17 = vpack.i.bf16 %v7195_v36, %v6057_v34 }
 0x298   : > { %4434 = vrot.lane.b32.xlu0 %v7195_v36, %s4920_s25  ;;  %v6321_v12 = vpack.i.bf16 %v6189_v44, %v6055_v1  ;;  %v6325_v43 = vpack.i.bf16 %v7195_v36, %v6191_v16  ;;  %v6332_v34 = vpack.i.bf16 %v7195_v36, %v1327_v11  ;;  %v6336_v29 = vpack.i.bf16 %v7195_v36, %v6212_v49  ;;  %v2486_v16 = vld [vmem:[#allocation4 + $0x108] sm:$0xff]  ;;  %v2487_v49 = vld [vmem:[#allocation4 + $0x110] sm:$0xff] }
 0x299   : > { %v1314_v28 = vadd.f32 %v1298_v2, %v1229_v46  ;;  %v1315_v4 = vadd.f32 %v1299_v62, %v1230_v19  ;;  %v6277_v61 = vpack.i.bf16 %v1329_v42, %v1328_v40  ;;  %v6343_v1 = vpack.i.bf16 %v7195_v36, %v1329_v42 }
 0x29b   : > { %v1330_v37 = vmax.f32 %v1314_v28, 0.0  ;;  %v1331_v9 = vmax.f32 %v1315_v4, 0.0  ;;  %4439 = vrot.lane.b32.xlu1 %v6277_v61, %s4920_s25 }
 0x29d   : > { %v6283_v58 = vpack.c.bf16 %v1331_v9, %v1329_v42  ;;  %v6285_v22 = vpack.i.bf16 %v1331_v9, %v1330_v37  ;;  %v6287_v10 = vpack.c.bf16 %v1330_v37, %v1328_v40  ;;  %v6289_v39 = vpack.i.bf16 %v1330_v37, %v1328_v40 }
 0x29e   : > { %v6350_v44 = vpack.i.bf16 %v7195_v36, %v1331_v9 }
 0x29f   : > { %4449 = vrot.lane.b32.xlu1 %v7195_v36, %s4920_s25  ;;  %4091 = vmatprep.subr.bf16.mxu0 %v6283_v58 }
 0x2a0   : > { %4444 = vrot.lane.b32.xlu0 %v6285_v22, %s4920_s25  ;;  %4093 = vmatpush1.bf16.msra.mxu0 %v6287_v10 }
 0x2a3   : > { %4459 = vrot.lane.b32.xlu1 %v6299_v47, %s4927_s22  ;;  %3899 = vmatmul.mubr.msk.f32.vlgmr.msra.gmra.mrb[0].mxu0 %vm1568_vm14, %v2485_v35 }
 0x2a4   : > { %4454 = vrot.lane.b32.xlu0 %v6303_v56, %s4927_s22  ;;  %2587 = vmatprep.mubr.f32.mxu0 %v7195_v36 }
 0x2a7   : > { %4469 = vrot.lane.b32.xlu1 %v6312_v17, %s4927_s22  ;;  %3900 = vmatmul.mubr.msk.f32.gmra.mrb[2].mxu0 %vm1568_vm14, %v2486_v16 }
 0x2a8   : > { %4464 = vrot.lane.b32.xlu0 %v6273_v18, %s4927_s22  ;;  %2593 = vmatprep.mubr.f32.mxu0 %v7195_v36 }
 0x2ab   : > { %4479 = vrot.lane.b32.xlu1 %v6321_v12, %s4927_s22  ;;  %3901 = vmatmul.mubr.msk.f32.gmra.mrb[4].mxu0 %vm1568_vm14, %v2487_v49 }
 0x2ac   : > { %4474 = vrot.lane.b32.xlu0 %v6325_v43, %s4927_s22  ;;  %2599 = vmatprep.mubr.f32.mxu0 %v7195_v36 }
 0x2af   : > { %4489 = vrot.lane.b32.xlu1 %v6332_v34, %s4927_s22  ;;  %3902 = vmatmul.mubr.msk.f32.gmra.mrb[6].mxu0 %vm1568_vm14, %v2488_v14 }
 0x2b0   : > { %4484 = vrot.lane.b32.xlu0 %v6336_v29, %s4927_s22  ;;  %2887 = vmatprep.mubr.f32.mxu0 %v7195_v36 }
 0x2b3   : > { %4499 = vrot.lane.b32.xlu1 %v6343_v1, %s4927_s22 }
 0x2b4   : > { %4494 = vrot.lane.b32.xlu0 %v6279_v53, %s4927_s22 }
 0x2b7   : > { %4509 = vrot.lane.b32.xlu1 %v6289_v39, %s4927_s22 }
 0x2b8   : > { %4504 = vrot.lane.b32.xlu0 %v6350_v44, %s4927_s22 }
 0x2bb   : > { %4519 = vrot.lane.b32.xlu1 %v6187_v7, %s4925_s21 }
 0x2bc   : > { %4514 = vrot.lane.b32.xlu0 %v6097_v38, %s4925_s21 }
 0x2bf   : > { %4529 = vrot.lane.b32.xlu1 %v6087_v3, %s4925_s21 }
 0x2c0   : > { %4524 = vrot.lane.b32.xlu0 %v7195_v36, %s4925_s21 }
 0x2c3   : > { %4539 = vrot.lane.b32.xlu1 %v7195_v36, %s4925_s21 }
 0x2c4   : > { %4534 = vrot.lane.b32.xlu0 %v6216_v33, %s4925_s21 }
 0x2c7   : > { %4549 = vrot.lane.b32.xlu1 %v6261_v55, %s4925_s21 }
 0x2c8   : > { %4544 = vrot.lane.b32.xlu0 %v6244_v57, %s4925_s21 }
 0x2cb   : > { %4559 = vrot.lane.b32.xlu1 %v6277_v61, %s4925_s21 }
 0x2cc   : > { %4554 = vrot.lane.b32.xlu0 %v7195_v36, %s4925_s21 }
 0x2cf   : > { %4569 = vrot.lane.b32.xlu1 %v7195_v36, %s4925_s21 }
 0x2d0   : > { %4564 = vrot.lane.b32.xlu0 %v6285_v22, %s4925_s21 }
 0x2d3   : > { %4579 = vrot.lane.b32.xlu1 %v6299_v47, %s4929_s23 }
 0x2d4   : > { %4574 = vrot.lane.b32.xlu0 %v6303_v56, %s4929_s23 }
 0x2d7   : > { %4589 = vrot.lane.b32.xlu1 %v6312_v17, %s4929_s23 }
 0x2d8   : > { %4584 = vrot.lane.b32.xlu0 %v6273_v18, %s4929_s23 }
 0x2db   : > { %4599 = vrot.lane.b32.xlu1 %v6321_v12, %s4929_s23 }
 0x2dc   : > { %4594 = vrot.lane.b32.xlu0 %v6325_v43, %s4929_s23 }
 0x2df   : > { %4609 = vrot.lane.b32.xlu1 %v6332_v34, %s4929_s23 }
 0x2e0   : > { %4604 = vrot.lane.b32.xlu0 %v6336_v29, %s4929_s23 }
 0x2e3   : > { %4619 = vrot.lane.b32.xlu1 %v6343_v1, %s4929_s23 }
 0x2e4   : > { %4614 = vrot.lane.b32.xlu0 %v6279_v53, %s4929_s23 }
 0x2e7   : > { %4629 = vrot.lane.b32.xlu1 %v6289_v39, %s4929_s23 }
 0x2e8   : > { %4624 = vrot.lane.b32.xlu0 %v6350_v44, %s4929_s23 }
 0x2eb   : > { %4639 = vrot.lane.b32.xlu1 %v6187_v7, %s4921_s11  ;;  %v4395_v54 = vpop.permute.xlu0 %4394 }
 0x2ec   : > { %4634 = vrot.lane.b32.xlu0 %v6097_v38, %s4921_s11  ;;  %v4397_v41 = vunpack.i.h.bf16 %v4395_v54  ;;  %v4396_v52 = vunpack.i.l.bf16 %v4395_v54 }
 0x2ee   : > { %v1513_v27 = vsel %vm346_vm2, %v4396_v52, %v4397_v41 }
 0x2ef   : > { %4649 = vrot.lane.b32.xlu1 %v6087_v3, %s4921_s11  ;;  %v4405_v30 = vpop.permute.xlu0 %4404 }
 0x2f0   : > { %4644 = vrot.lane.b32.xlu0 %v7195_v36, %s4921_s11  ;;  %v4407_v13 = vunpack.i.h.bf16 %v4405_v30  ;;  %v4406_v48 = vunpack.i.l.bf16 %v4405_v30 }
 0x2f2   : > { %v1512_v45 = vsel %vm346_vm2, %v4406_v48, %v4396_v52 }
 0x2f3   : > { %4659 = vrot.lane.b32.xlu1 %v7195_v36, %s4921_s11 }
 0x2f4   : > { %4654 = vrot.lane.b32.xlu0 %v6216_v33, %s4921_s11 }
 0x2f7   : > { %4669 = vrot.lane.b32.xlu1 %v6261_v55, %s4921_s11 }
 0x2f8   : > { %4664 = vrot.lane.b32.xlu0 %v6244_v57, %s4921_s11 }
 0x2fb   : > { %4679 = vrot.lane.b32.xlu1 %v6277_v61, %s4921_s11 }
 0x2fc   : > { %4674 = vrot.lane.b32.xlu0 %v7195_v36, %s4921_s11 }
 0x2fd   : > { %v4400_v32 = vpop.permute.xlu1 %4399 }
 0x2fe   : > { %v4402_v11 = vunpack.i.h.bf16 %v4400_v32  ;;  %v4401_v50 = vunpack.i.l.bf16 %v4400_v32 }
 0x2ff   : > { %4689 = vrot.lane.b32.xlu1 %v7195_v36, %s4921_s11 }
 0x300   : > { %4684 = vrot.lane.b32.xlu0 %v6285_v22, %s4921_s11  ;;  %v1515_v15 = vsel %vm346_vm2, %v4401_v50, %v4402_v11  ;;  %v1514_v2 = vsel %vm346_vm2, %v4407_v13, %v4401_v50 }
 0x301   : > { %v4410_v26 = vpop.permute.xlu1 %4409  ;;  %v3990_v24 = vpack.c.bf16 %v1515_v15, %v1513_v27  ;;  %v3993_v6 = vpack.c.bf16 %v1514_v2, %v1512_v45 }
 0x302   : > { %v4412_v62 = vunpack.i.h.bf16 %v4410_v26  ;;  %v4411_v40 = vunpack.i.l.bf16 %v4410_v26  ;;  %v4415_v31 = vpop.permute.xlu0 %4414 }
 0x303   : > { %v4417_v20 = vunpack.i.h.bf16 %v4415_v31  ;;  %v4416_v42 = vunpack.i.l.bf16 %v4415_v31  ;;  %3992 = vmatprep.subr.msk.bf16.mxu1 %vm6435_vm15, %v3990_v24  ;;  %4699 = vrot.lane.b32.xlu1 %v6299_v47, %s4934_s26 }
 0x304   : > { %v1517_v46 = vsel %vm346_vm2, %v4411_v40, %v4412_v62  ;;  %4694 = vrot.lane.b32.xlu0 %v6303_v56, %s4934_s26  ;;  %3995 = vmatpush1.bf16.msk.msra.mxu1 %vm6448_vm0, %v3993_v6 }
 0x305   : > { %v1519_v19 = vsel %vm346_vm2, %v4416_v42, %v4417_v20  ;;  %v4420_v28 = vpop.permute.xlu1 %4419 }
 0x306   : > { %v4422_v4 = vunpack.i.h.bf16 %v4420_v28  ;;  %v4421_v37 = vunpack.i.l.bf16 %v4420_v28  ;;  %v4425_v9 = vpop.permute.xlu0 %4424  ;;  %v3996_v35 = vpack.c.bf16 %v1519_v19, %v1517_v46 }
 0x307   : > { %4709 = vrot.lane.b32.xlu1 %v6312_v17, %s4934_s26  ;;  %v4427_v14 = vunpack.i.h.bf16 %v4425_v9  ;;  %v4426_v54 = vunpack.i.l.bf16 %v4425_v9 }
 0x308   : > { %v1516_v16 = vsel %vm346_vm2, %v4421_v37, %v4411_v40  ;;  %v1518_v49 = vsel %vm346_vm2, %v4422_v4, %v4416_v42  ;;  %3998 = vmatprep.subr.msk.bf16.mxu1 %vm6435_vm15, %v3996_v35  ;;  %4704 = vrot.lane.b32.xlu0 %v6273_v18, %s4934_s26 }
 0x309   : > { %v4430_v30 = vpop.permute.xlu1 %4429  ;;  %v3999_v41 = vpack.c.bf16 %v1518_v49, %v1516_v16  ;;  %v1521_v50 = vsel %vm346_vm2, %v4426_v54, %v4427_v14 }
 0x30a   : > { %v4432_v52 = vunpack.i.h.bf16 %v4430_v30  ;;  %v4431_v13 = vunpack.i.l.bf16 %v4430_v30  ;;  %v4435_v48 = vpop.permute.xlu0 %4434 }
 0x30b   : > { %v4437_v32 = vunpack.i.h.bf16 %v4435_v48  ;;  %v4436_v11 = vunpack.i.l.bf16 %v4435_v48  ;;  %4001 = vmatpush1.bf16.msk.msra.mxu1 %vm6448_vm0, %v3999_v41  ;;  %4719 = vrot.lane.b32.xlu1 %v6321_v12, %s4934_s26 }
 0x30c   : > { %v1523_v23 = vsel %vm346_vm2, %v4431_v13, %v4432_v52  ;;  %4714 = vrot.lane.b32.xlu0 %v6325_v43, %s4934_s26 }
 0x30d   : > { %v4002_v27 = vpack.c.bf16 %v1523_v23, %v1521_v50  ;;  %v1522_v15 = vsel %vm346_vm2, %v4437_v32, %v4431_v13  ;;  %v1520_v45 = vsel %vm346_vm2, %v4436_v11, %v4426_v54  ;;  %v4440_v2 = vpop.permute.xlu1 %4439  ;;  %v1560_v23 = vld [vmem:[#allocation4] sm:$0xff] }
 0x30e   : > { %v4005_v5 = vpack.c.bf16 %v1522_v15, %v1520_v45  ;;  %v4442_v26 = vunpack.i.h.bf16 %v4440_v2  ;;  %v4441_v24 = vunpack.i.l.bf16 %v4440_v2  ;;  %v2489_v13 = vld [vmem:[#allocation4 + $0x120] sm:$0xff]  ;;  %v3551_v2 = vld [vmem:[#allocation4 + $0x210] sm:$0xff] }
 0x30f   : > { %4004 = vmatprep.subr.msk.bf16.mxu1 %vm6435_vm15, %v4002_v27  ;;  %4729 = vrot.lane.b32.xlu1 %v6332_v34, %s4934_s26 }
 0x310   : > { %4724 = vrot.lane.b32.xlu0 %v6336_v29, %s4934_s26  ;;  %4007 = vmatpush1.bf16.msk.msra.mxu1 %vm6448_vm0, %v4005_v5  ;;  %v1525_v19 = vsel %vm346_vm2, %v4441_v24, %v4442_v26 }
 0x311   : > { %v4450_v6 = vpop.permute.xlu1 %4449 }
 0x312   : > { %v4452_v62 = vunpack.i.h.bf16 %v4450_v6  ;;  %v4451_v40 = vunpack.i.l.bf16 %v4450_v6  ;;  %v4445_v31 = vpop.permute.xlu0 %4444 }
 0x313   : > { %v4447_v20 = vunpack.i.h.bf16 %v4445_v31  ;;  %v4446_v42 = vunpack.i.l.bf16 %v4445_v31  ;;  %4739 = vrot.lane.b32.xlu1 %v6343_v1, %s4934_s26 }
 0x314   : > { %v1524_v46 = vsel %vm346_vm2, %v4451_v40, %v4441_v24  ;;  %4734 = vrot.lane.b32.xlu0 %v6279_v53, %s4934_s26 }
 0x315   : > { %v1526_v28 = vsel %vm346_vm2, %v4452_v62, %v4446_v42  ;;  %v1527_v4 = vsel %vm346_vm2, %v4446_v42, %v4447_v20  ;;  %v4460_v37 = vpop.permute.xlu1 %4459  ;;  %vm6522_vm2 = vmpackc.low %vm5531_vm6, %vm5531_vm6  ;;  %v1561_v20 = vld [vmem:[#allocation4 + $0x8] sm:$0xff] }
 0x316   : > { %v4008_v9 = vpack.c.bf16 %v1527_v4, %v1525_v19  ;;  %v4011_v35 = vpack.c.bf16 %v1526_v28, %v1524_v46  ;;  %v4462_v16 = vunpack.i.h.bf16 %v4460_v37  ;;  %v4461_v49 = vunpack.i.l.bf16 %v4460_v37  ;;  %v4455_v14 = vpop.permute.xlu0 %4454 }
 0x317   : > { %v4457_v54 = vunpack.i.h.bf16 %v4455_v14  ;;  %v4456_v30 = vunpack.i.l.bf16 %v4455_v14  ;;  %4749 = vrot.lane.b32.xlu1 %v6289_v39, %s4934_s26 }
 0x318   : > { %v2745_v41 = vsel %vm887_vm10, %v4461_v49, %v4462_v16  ;;  %4744 = vrot.lane.b32.xlu0 %v6350_v44, %s4934_s26  ;;  %4010 = vmatprep.subr.msk.bf16.mxu1 %vm6435_vm15, %v4008_v9 }
 0x319   : > { %v2743_v48 = vsel %vm887_vm10, %v4456_v30, %v4457_v54  ;;  %4013 = vmatpush1.bf16.msk.msra.mxu1 %vm6448_vm0, %v4011_v35  ;;  %v4470_v32 = vpop.permute.xlu1 %4469  ;;  %v1562_v54 = vld [vmem:[#allocation4 + $0x10] sm:$0xff] }
 0x31a   : > { %v4094_v11 = vpack.c.bf16 %v2745_v41, %v2743_v48  ;;  %v4465_v50 = vpop.permute.xlu0 %4464  ;;  %v4472_v5 = vunpack.i.h.bf16 %v4470_v32  ;;  %v4471_v26 = vunpack.i.l.bf16 %v4470_v32 }
 0x31b   : > { %v4467_v27 = vunpack.i.h.bf16 %v4465_v50  ;;  %v4466_v15 = vunpack.i.l.bf16 %v4465_v50  ;;  %4759 = vrot.lane.b32.xlu1 %v6187_v7, %s4923_s20 }
 0x31c   : > { %4754 = vrot.lane.b32.xlu0 %v6097_v38, %s4923_s20  ;;  %4096 = vmatprep.subr.msk.bf16.mxu0 %vm6506_vm1, %v4094_v11  ;;  %v2747_v28 = vsel %vm887_vm10, %v4471_v26, %v4472_v5 }
 0x31d   : > { %v2744_v24 = vsel %vm887_vm10, %v4467_v27, %v4461_v49  ;;  %v2742_v6 = vsel %vm887_vm10, %v4466_v15, %v4456_v30  ;;  %v4480_v7 = vpop.permute.xlu1 %4479  ;;  %3835 = vmatmul.mubr.msk.f32.vlgmr.msra.gmra.mrb[0].mxu1 %vm1568_vm14, %v1560_v23  ;;  %v1563_v23 = vld [vmem:[#allocation4 + $0x18] sm:$0xff] }
 0x31e   : > { %v4097_v38 = vpack.c.bf16 %v2744_v24, %v2742_v6  ;;  %v4482_v62 = vunpack.i.h.bf16 %v4480_v7  ;;  %v4481_v40 = vunpack.i.l.bf16 %v4480_v7  ;;  %v4475_v31 = vpop.permute.xlu0 %4474  ;;  %1663 = vmatprep.mubr.f32.mxu1 %v7195_v36 }
 0x31f   : > { %v4477_v42 = vunpack.i.h.bf16 %v4475_v31  ;;  %v4476_v46 = vunpack.i.l.bf16 %v4475_v31  ;;  %4769 = vrot.lane.b32.xlu1 %v6087_v3, %s4923_s20 }
 0x320   : > { %v2746_v19 = vsel %vm887_vm10, %v4481_v40, %v4471_v26  ;;  %4764 = vrot.lane.b32.xlu0 %v7195_v36, %s4923_s20  ;;  %4099 = vmatpush1.bf16.msk.msra.mxu0 %vm6522_vm2, %v4097_v38 }
 0x321   : > { %v2748_v4 = vsel %vm887_vm10, %v4482_v62, %v4476_v46  ;;  %v2749_v37 = vsel %vm887_vm10, %v4476_v46, %v4477_v42  ;;  %v4490_v9 = vpop.permute.xlu1 %4489  ;;  %3836 = vmatmul.mubr.msk.f32.gmra.mrb[2].mxu1 %vm1568_vm14, %v1561_v20 }
 0x322   : > { %v4100_v35 = vpack.c.bf16 %v2749_v37, %v2747_v28  ;;  %v4103_v16 = vpack.c.bf16 %v2748_v4, %v2746_v19  ;;  %v4492_v3 = vunpack.i.h.bf16 %v4490_v9  ;;  %v4491_v49 = vunpack.i.l.bf16 %v4490_v9  ;;  %v4485_v14 = vpop.permute.xlu0 %4484  ;;  %1669 = vmatprep.mubr.f32.mxu1 %v7195_v36 }
 0x323   : > { %v4487_v30 = vunpack.i.h.bf16 %v4485_v14  ;;  %v4486_v41 = vunpack.i.l.bf16 %v4485_v14  ;;  %4779 = vrot.lane.b32.xlu1 %v7195_v36, %s4923_s20 }
 0x324   : > { %v2753_v52 = vsel %vm887_vm10, %v4491_v49, %v4492_v3  ;;  %4774 = vrot.lane.b32.xlu0 %v6216_v33, %s4923_s20  ;;  %4102 = vmatprep.subr.msk.bf16.mxu0 %vm6506_vm1, %v4100_v35  ;;  %v1565_v35 = vld [vmem:[#allocation4 + $0x28] sm:$0xff] }
 0x325   : > { %v2751_v48 = vsel %vm887_vm10, %v4486_v41, %v4487_v30  ;;  %4105 = vmatpush1.bf16.msk.msra.mxu0 %vm6522_vm2, %v4103_v16  ;;  %v4500_v32 = vpop.permute.xlu1 %4499  ;;  %3837 = vmatmul.mubr.msk.f32.gmra.mrb[4].mxu1 %vm1568_vm14, %v1562_v54 }
 0x326   : > { %v4106_v11 = vpack.c.bf16 %v2753_v52, %v2751_v48  ;;  %v4495_v50 = vpop.permute.xlu0 %4494  ;;  %1675 = vmatprep.mubr.f32.mxu1 %v7195_v36  ;;  %v4502_v33 = vunpack.i.h.bf16 %v4500_v32  ;;  %v4501_v45 = vunpack.i.l.bf16 %v4500_v32  ;;  %v2791_v52 = vld [vmem:[#allocation4 + $0x140] sm:$0xff]  ;;  %v1566_v48 = vld [vmem:[#allocation4 + $0x30] sm:$0xff] }
 0x327   : > { %v4497_v27 = vunpack.i.h.bf16 %v4495_v50  ;;  %v4496_v15 = vunpack.i.l.bf16 %v4495_v50  ;;  %4789 = vrot.lane.b32.xlu1 %v6261_v55, %s4923_s20  ;;  %v1564_v55 = vld [vmem:[#allocation4 + $0x20] sm:$0xff] }
 0x328   : > { %4784 = vrot.lane.b32.xlu0 %v6244_v57, %s4923_s20  ;;  %4108 = vmatprep.subr.msk.bf16.mxu0 %vm6506_vm1, %v4106_v11  ;;  %v2755_v20 = vsel %vm887_vm10, %v4501_v45, %v4502_v33 }
 0x329   : > { %v2752_v5 = vsel %vm887_vm10, %v4497_v27, %v4491_v49  ;;  %v2750_v26 = vsel %vm887_vm10, %v4496_v15, %v4486_v41  ;;  %v4510_v24 = vpop.permute.xlu1 %4509  ;;  %3838 = vmatmul.mubr.msk.f32.gmra.mrb[6].mxu1 %vm1568_vm14, %v1563_v23 }
 0x32a   : > { %v4109_v6 = vpack.c.bf16 %v2752_v5, %v2750_v26  ;;  %v4512_v7 = vunpack.i.h.bf16 %v4510_v24  ;;  %v4511_v38 = vunpack.i.l.bf16 %v4510_v24  ;;  %v4505_v62 = vpop.permute.xlu0 %4504  ;;  %1681 = vmatprep.mubr.f32.mxu1 %v7195_v36 }
 0x32b   : > { %v4507_v57 = vunpack.i.h.bf16 %v4505_v62  ;;  %v4506_v40 = vunpack.i.l.bf16 %v4505_v62  ;;  %4799 = vrot.lane.b32.xlu1 %v6277_v61, %s4923_s20 }
 0x32c   : > { %v2754_v31 = vsel %vm887_vm10, %v4511_v38, %v4501_v45  ;;  %4794 = vrot.lane.b32.xlu0 %v7195_v36, %s4923_s20  ;;  %4111 = vmatpush1.bf16.msk.msra.mxu0 %vm6522_vm2, %v4109_v6 }
 0x32d   : > { %v2756_v42 = vsel %vm887_vm10, %v4512_v7, %v4506_v40  ;;  %v2757_v46 = vsel %vm887_vm10, %v4506_v40, %v4507_v57  ;;  %v4520_v19 = vpop.permute.xlu1 %4519  ;;  %3839 = vmatmul.mubr.msk.f32.gmra.mrb[8].mxu1 %vm1568_vm14, %v1564_v55 }
 0x32e   : > { %v4112_v28 = vpack.c.bf16 %v2757_v46, %v2755_v20  ;;  %v4115_v4 = vpack.c.bf16 %v2756_v42, %v2754_v31  ;;  %v4522_v61 = vunpack.i.h.bf16 %v4520_v19  ;;  %v4521_v37 = vunpack.i.l.bf16 %v4520_v19  ;;  %v4515_v9 = vpop.permute.xlu0 %4514  ;;  %1687 = vmatprep.mubr.f32.mxu1 %v7195_v36 }
 0x32f   : > { %v4517_v16 = vunpack.i.h.bf16 %v4515_v9  ;;  %v4516_v3 = vunpack.i.l.bf16 %v4515_v9  ;;  %4809 = vrot.lane.b32.xlu1 %v7195_v36, %s4923_s20 }
 0x330   : > { %4804 = vrot.lane.b32.xlu0 %v6285_v22, %s4923_s20  ;;  %4114 = vmatprep.subr.msk.bf16.mxu0 %vm6506_vm1, %v4112_v28  ;;  %v1782_v49 = vsel %vm572_vm9, %v4521_v37, %v4522_v61 }
 0x331   : > { %4117 = vmatpush1.bf16.msk.msra.mxu0 %vm6522_vm2, %v4115_v4  ;;  %v4530_v14 = vpop.permute.xlu1 %4529  ;;  %v1780_v54 = vsel %vm572_vm9, %v4516_v3, %v4517_v16  ;;  %3840 = vmatmul.mubr.msk.f32.gmra.mrb[10].mxu1 %vm1568_vm14, %v1565_v35  ;;  %v2794_v35 = vld [vmem:[#allocation4 + $0x158] sm:$0xff] }
 0x332   : > { %v4525_v30 = vpop.permute.xlu0 %4524  ;;  %v4014_v41 = vpack.c.bf16 %v1782_v49, %v1780_v54  ;;  %1693 = vmatprep.mubr.f32.mxu1 %v7195_v36  ;;  %v4532_v11 = vunpack.i.h.bf16 %v4530_v14  ;;  %v4531_v50 = vunpack.i.l.bf16 %v4530_v14 }
 0x333   : > { %v4527_v22 = vunpack.i.h.bf16 %v4525_v30  ;;  %v4526_v32 = vunpack.i.l.bf16 %v4525_v30  ;;  %4819 = vrot.lane.b32.xlu1 %v6299_v47, %s4933_s24  ;;  %v1567_v47 = vld [vmem:[#allocation4 + $0x38] sm:$0xff] }
 0x334   : > { %4814 = vrot.lane.b32.xlu0 %v6303_v56, %s4933_s24  ;;  %4015 = vmatprep.subr.bf16.mxu1 %v4014_v41  ;;  %v2792_v56 = vld [vmem:[#allocation4 + $0x148] sm:$0xff]  ;;  %v1784_v55 = vsel %vm572_vm9, %v4531_v50, %v4532_v11 }
 0x335   : > { %v1781_v23 = vsel %vm572_vm9, %v4527_v22, %v4521_v37  ;;  %v1779_v27 = vsel %vm572_vm9, %v4526_v32, %v4516_v3  ;;  %v4540_v15 = vpop.permute.xlu1 %4539  ;;  %3923 = vmatmul.mubr.msk.f32.vlgmr.msra.gmra.mrb[0].mxu0 %vm1568_vm14, %v2791_v52  ;;  %3841 = vmatmul.mubr.msk.f32.gmra.mrb[12].mxu1 %vm1568_vm14, %v1566_v48 }
 0x336   : > { %v4016_v33 = vpack.c.bf16 %v1781_v23, %v1779_v27  ;;  %v4542_v45 = vunpack.i.h.bf16 %v4540_v15  ;;  %v4541_v5 = vunpack.i.l.bf16 %v4540_v15  ;;  %v4535_v26 = vpop.permute.xlu0 %4534  ;;  %1699 = vmatprep.mubr.f32.mxu1 %v7195_v36  ;;  %2893 = vmatprep.mubr.f32.mxu0 %v7195_v36 }
 0x337   : > { %v4537_v24 = vunpack.i.h.bf16 %v4535_v26  ;;  %v4536_v6 = vunpack.i.l.bf16 %v4535_v26  ;;  %4829 = vrot.lane.b32.xlu1 %v6312_v17, %s4933_s24  ;;  %v2796_v26 = vld [vmem:[#allocation4 + $0x168] sm:$0xff] }
 0x338   : > { %v1783_v7 = vsel %vm572_vm9, %v4541_v5, %v4531_v50  ;;  %4824 = vrot.lane.b32.xlu0 %v6273_v18, %s4933_s24  ;;  %4017 = vmatpush1.bf16.msra.mxu1 %v4016_v33  ;;  %v2793_v18 = vld [vmem:[#allocation4 + $0x150] sm:$0xff] }
 0x339   : > { %v1785_v38 = vsel %vm572_vm9, %v4542_v45, %v4536_v6  ;;  %v4550_v62 = vpop.permute.xlu1 %4549  ;;  %v1786_v57 = vsel %vm572_vm9, %v4536_v6, %v4537_v24  ;;  %3842 = vmatmul.mubr.msk.f32.gmra.mrb[14].mxu1 %vm1568_vm14, %v1567_v47  ;;  %3924 = vmatmul.mubr.msk.f32.gmra.mrb[2].mxu0 %vm1568_vm14, %v2792_v56 }
 0x33a   : > { %v4020_v40 = vpack.c.bf16 %v1785_v38, %v1783_v7  ;;  %v4552_v31 = vunpack.i.h.bf16 %v4550_v62  ;;  %v4551_v17 = vunpack.i.l.bf16 %v4550_v62  ;;  %v4545_v20 = vpop.permute.xlu0 %4544  ;;  %v4018_v42 = vpack.c.bf16 %v1786_v57, %v1784_v55  ;;  %1899 = vmatprep.mubr.f32.mxu1 %v7195_v36  ;;  %2899 = vmatprep.mubr.f32.mxu0 %v7195_v36  ;;  %v1364_v7 = vld [vmem:[%s6953_s4] sm:$0xff] }
 0x33b   : > { %v4547_v46 = vunpack.i.h.bf16 %v4545_v20  ;;  %v4546_v19 = vunpack.i.l.bf16 %v4545_v20  ;;  %4839 = vrot.lane.b32.xlu1 %v6321_v12, %s4933_s24  ;;  %v1723_v55 = vld [vmem:[#allocation4 + $0x40] sm:$0xff] }
 0x33c   : > { %4834 = vrot.lane.b32.xlu0 %v6325_v43, %s4933_s24  ;;  %4019 = vmatprep.subr.bf16.mxu1 %v4018_v42  ;;  %v1790_v28 = vsel %vm572_vm9, %v4551_v17, %v4552_v31 }
 0x33d   : > { %4021 = vmatpush1.bf16.msra.mxu1 %v4020_v40  ;;  %v4560_v4 = vpop.permute.xlu1 %4559  ;;  %v1788_v61 = vsel %vm572_vm9, %v4546_v19, %v4547_v46  ;;  %3925 = vmatmul.mubr.msk.f32.gmra.mrb[4].mxu0 %vm1568_vm14, %v2793_v18  ;;  %v1367_v18 = vld [vmem:[%s6953_s4 + $0x18] sm:$0xff] }
 0x33e   : > { %v4555_v37 = vpop.permute.xlu0 %4554  ;;  %v4022_v9 = vpack.c.bf16 %v1790_v28, %v1788_v61  ;;  %2905 = vmatprep.mubr.f32.mxu0 %v7195_v36  ;;  %v4562_v12 = vunpack.i.h.bf16 %v4560_v4  ;;  %v4561_v43 = vunpack.i.l.bf16 %v4560_v4  ;;  %v1724_v61 = vld [vmem:[#allocation4 + $0x48] sm:$0xff] }
 0x33f   : > { %v4557_v16 = vunpack.i.h.bf16 %v4555_v37  ;;  %v4556_v3 = vunpack.i.l.bf16 %v4555_v37  ;;  %4849 = vrot.lane.b32.xlu1 %v6332_v34, %s4933_s24  ;;  %v2795_v34 = vld [vmem:[#allocation4 + $0x160] sm:$0xff]  ;;  %v2798_v37 = vld [vmem:[#allocation4 + $0x178] sm:$0xff] }
 0x340   : > { %4844 = vrot.lane.b32.xlu0 %v6336_v29, %s4933_s24  ;;  %4023 = vmatprep.subr.bf16.mxu1 %v4022_v9  ;;  %v1792_v23 = vsel %vm572_vm9, %v4561_v43, %v4562_v12 }
 0x341   : > { %v1789_v49 = vsel %vm572_vm9, %v4557_v16, %v4551_v17  ;;  %v1787_v14 = vsel %vm572_vm9, %v4556_v3, %v4546_v19  ;;  %v4570_v54 = vpop.permute.xlu1 %4569  ;;  %3926 = vmatmul.mubr.msk.f32.gmra.mrb[6].mxu0 %vm1568_vm14, %v2794_v35 }
 0x342   : > { %v4024_v30 = vpack.c.bf16 %v1789_v49, %v1787_v14  ;;  %v4572_v41 = vunpack.i.h.bf16 %v4570_v54  ;;  %v4571_v52 = vunpack.i.l.bf16 %v4570_v54  ;;  %v4565_v48 = vpop.permute.xlu0 %4564  ;;  %2911 = vmatprep.mubr.f32.mxu0 %v7195_v36  ;;  %v1369_v14 = vld [vmem:[%s6953_s4 + $0x28] sm:$0xff] }
 0x343   : > { %v4567_v22 = vunpack.i.h.bf16 %v4565_v48  ;;  %v4566_v32 = vunpack.i.l.bf16 %v4565_v48  ;;  %4859 = vrot.lane.b32.xlu1 %v6343_v1, %s4933_s24 }
 0x344   : > { %v1791_v29 = vsel %vm572_vm9, %v4571_v52, %v4561_v43  ;;  %4854 = vrot.lane.b32.xlu0 %v6279_v53, %s4933_s24  ;;  %4025 = vmatpush1.bf16.msra.mxu1 %v4024_v30 }
 0x345   : > { %v1793_v11 = vsel %vm572_vm9, %v4572_v41, %v4566_v32  ;;  %v4580_v50 = vpop.permute.xlu1 %4579  ;;  %v1794_v27 = vsel %vm572_vm9, %v4566_v32, %v4567_v22  ;;  %3927 = vmatmul.mubr.msk.f32.gmra.mrb[8].mxu0 %vm1568_vm14, %v2795_v34  ;;  %v1725_v34 = vld [vmem:[#allocation4 + $0x50] sm:$0xff] }
 0x346   : > { %v4028_v15 = vpack.c.bf16 %v1793_v11, %v1791_v29  ;;  %v4582_v33 = vunpack.i.h.bf16 %v4580_v50  ;;  %v4581_v45 = vunpack.i.l.bf16 %v4580_v50  ;;  %v4575_v5 = vpop.permute.xlu0 %4574  ;;  %v4026_v1 = vpack.c.bf16 %v1794_v27, %v1792_v23  ;;  %2917 = vmatprep.mubr.f32.mxu0 %v7195_v36  ;;  %v1371_v23 = vld [vmem:[%s6953_s4 + $0x38] sm:$0xff] }
 0x347   : > { %v4577_v47 = vunpack.i.h.bf16 %v4575_v5  ;;  %v4576_v53 = vunpack.i.l.bf16 %v4575_v5  ;;  %4869 = vrot.lane.b32.xlu1 %v6289_v39, %s4933_s24  ;;  %v2797_v39 = vld [vmem:[#allocation4 + $0x170] sm:$0xff] }
 0x348   : > { %v3003_v56 = vsel %vm972_vm11, %v4581_v45, %v4582_v33  ;;  %4864 = vrot.lane.b32.xlu0 %v6350_v44, %s4933_s24  ;;  %4027 = vmatprep.subr.bf16.mxu1 %v4026_v1  ;;  %v1726_v33 = vld [vmem:[#allocation4 + $0x58] sm:$0xff] }
 0x349   : > { %v3001_v24 = vsel %vm972_vm11, %v4576_v53, %v4577_v47  ;;  %4029 = vmatpush1.bf16.msra.mxu1 %v4028_v15  ;;  %v4590_v6 = vpop.permute.xlu1 %4589  ;;  %3928 = vmatmul.mubr.msk.f32.gmra.mrb[10].mxu0 %vm1568_vm14, %v2796_v26 }
 0x34a   : > { %v4118_v38 = vpack.c.bf16 %v3003_v56, %v3001_v24  ;;  %v4585_v62 = vpop.permute.xlu0 %4584  ;;  %2923 = vmatprep.mubr.f32.mxu0 %v7195_v36  ;;  %v4592_v44 = vunpack.i.h.bf16 %v4590_v6  ;;  %v4591_v31 = vunpack.i.l.bf16 %v4590_v6 }
 0x34b   : > { %v4587_v57 = vunpack.i.h.bf16 %v4585_v62  ;;  %v4586_v40 = vunpack.i.l.bf16 %v4585_v62  ;;  %v1727_v62 = vld [vmem:[#allocation4 + $0x60] sm:$0xff] }
 0x34c   : > { %1374 = vperm.xlu0 %4392, %v1364_v7   ;;  %4120 = vmatprep.subr.msk.bf16.mxu0 %vm6435_vm15, %v4118_v38  ;;  %v3005_v3 = vsel %vm972_vm11, %v4591_v31, %v4592_v44 }
 0x34d   : > { %v3002_v17 = vsel %vm972_vm11, %v4587_v57, %v4581_v45  ;;  %v3000_v20 = vsel %vm972_vm11, %v4586_v40, %v4576_v53  ;;  %v4600_v42 = vpop.permute.xlu1 %4599  ;;  %3843 = vmatmul.mubr.msk.f32.vlgmr.msra.gmra.mrb[0].mxu1 %vm1568_vm14, %v1723_v55  ;;  %3929 = vmatmul.mubr.msk.f32.gmra.mrb[12].mxu0 %vm1568_vm14, %v2797_v39 }
 0x34e   : > { %v4121_v46 = vpack.c.bf16 %v3002_v17, %v3000_v20  ;;  %v4602_v19 = vunpack.i.h.bf16 %v4600_v42  ;;  %v4601_v28 = vunpack.i.l.bf16 %v4600_v42  ;;  %v4595_v4 = vpop.permute.xlu0 %4594  ;;  %1905 = vmatprep.mubr.f32.mxu1 %v7195_v36  ;;  %2929 = vmatprep.mubr.f32.mxu0 %v7195_v36 }
 0x34f   : > { %v4597_v9 = vunpack.i.h.bf16 %v4595_v4  ;;  %v4596_v35 = vunpack.i.l.bf16 %v4595_v4 }
 0x350   : > { %v3004_v16 = vsel %vm972_vm11, %v4601_v28, %v4591_v31  ;;  %1389 = vperm.xlu0 %4392, %v1367_v18   ;;  %4123 = vmatpush1.bf16.msk.msra.mxu0 %vm6448_vm0, %v4121_v46  ;;  %v1728_v28 = vld [vmem:[#allocation4 + $0x68] sm:$0xff] }
 0x351   : > { %v3006_v12 = vsel %vm972_vm11, %v4602_v19, %v4596_v35  ;;  %v3007_v43 = vsel %vm972_vm11, %v4596_v35, %v4597_v9  ;;  %v4610_v49 = vpop.permute.xlu1 %4609  ;;  %3844 = vmatmul.mubr.msk.f32.gmra.mrb[2].mxu1 %vm1568_vm14, %v1724_v61  ;;  %3930 = vmatmul.mubr.msk.f32.gmra.mrb[14].mxu0 %vm1568_vm14, %v2798_v37  ;;  %v1365_v9 = vld [vmem:[%s6953_s4 + $0x8] sm:$0xff] }
 0x352   : > { %v4124_v54 = vpack.c.bf16 %v3007_v43, %v3005_v3  ;;  %v4127_v30 = vpack.c.bf16 %v3006_v12, %v3004_v16  ;;  %v4612_v41 = vunpack.i.h.bf16 %v4610_v49  ;;  %v4611_v52 = vunpack.i.l.bf16 %v4610_v49  ;;  %v4605_v48 = vpop.permute.xlu0 %4604  ;;  %1911 = vmatprep.mubr.f32.mxu1 %v7195_v36  ;;  %3145 = vmatprep.mubr.f32.mxu0 %v7195_v36  ;;  %v3049_v3 = vld [vmem:[#allocation4 + $0x180] sm:$0xff]  ;;  %v1729_v49 = vld [vmem:[#allocation4 + $0x70] sm:$0xff] }
 0x353   : > { %v4607_v22 = vunpack.i.h.bf16 %v4605_v48  ;;  %v4606_v32 = vunpack.i.l.bf16 %v4605_v48  ;;  %1379 = vperm.xlu1 %4873, %v1365_v9   ;;  %v3053_v9 = vld [vmem:[#allocation4 + $0x1a0] sm:$0xff] }
 0x354   : > { %v3011_v29 = vsel %vm972_vm11, %v4611_v52, %v4612_v41  ;;  %1399 = vperm.xlu0 %4392, %v1369_v14   ;;  %4126 = vmatprep.subr.msk.bf16.mxu0 %vm6435_vm15, %v4124_v54 }
 0x355   : > { %v3009_v11 = vsel %vm972_vm11, %v4606_v32, %v4607_v22  ;;  %4129 = vmatpush1.bf16.msk.msra.mxu0 %vm6448_vm0, %v4127_v30  ;;  %v4620_v50 = vpop.permute.xlu1 %4619  ;;  %3845 = vmatmul.mubr.msk.f32.gmra.mrb[4].mxu1 %vm1568_vm14, %v1725_v34  ;;  %v1366_v30 = vld [vmem:[%s6953_s4 + $0x10] sm:$0xff] }
 0x356   : > { %v4130_v27 = vpack.c.bf16 %v3011_v29, %v3009_v11  ;;  %v4615_v15 = vpop.permute.xlu0 %4614  ;;  %1917 = vmatprep.mubr.f32.mxu1 %v7195_v36  ;;  %v4622_v1 = vunpack.i.h.bf16 %v4620_v50  ;;  %v4621_v26 = vunpack.i.l.bf16 %v4620_v50 }
 0x357   : > { %v4617_v45 = vunpack.i.h.bf16 %v4615_v15  ;;  %v4616_v5 = vunpack.i.l.bf16 %v4615_v15  ;;  %1384 = vperm.xlu1 %4873, %v1366_v30  }
 0x358   : > { %1409 = vperm.xlu0 %4392, %v1371_v23   ;;  %4132 = vmatprep.subr.msk.bf16.mxu0 %vm6435_vm15, %v4130_v27  ;;  %v3013_v40 = vsel %vm972_vm11, %v4621_v26, %v4622_v1  ;;  %v1730_v27 = vld [vmem:[#allocation4 + $0x78] sm:$0xff] }
 0x359   : > { %v3010_v47 = vsel %vm972_vm11, %v4617_v45, %v4611_v52  ;;  %v3008_v53 = vsel %vm972_vm11, %v4616_v5, %v4606_v32  ;;  %v4630_v56 = vpop.permute.xlu1 %4629  ;;  %3846 = vmatmul.mubr.msk.f32.gmra.mrb[6].mxu1 %vm1568_vm14, %v1726_v33  ;;  %v3050_v32 = vld [vmem:[#allocation4 + $0x188] sm:$0xff]  ;;  %v1368_v45 = vld [vmem:[%s6953_s4 + $0x20] sm:$0xff] }
 0x35a   : > { %v4133_v24 = vpack.c.bf16 %v3010_v47, %v3008_v53  ;;  %v4632_v6 = vunpack.i.h.bf16 %v4630_v56  ;;  %v4631_v7 = vunpack.i.l.bf16 %v4630_v56  ;;  %v4625_v38 = vpop.permute.xlu0 %4624  ;;  %1923 = vmatprep.mubr.f32.mxu1 %v7195_v36  ;;  %v3051_v56 = vld [vmem:[#allocation4 + $0x190] sm:$0xff] }
 0x35b   : > { %v4627_v55 = vunpack.i.h.bf16 %v4625_v38  ;;  %v4626_v39 = vunpack.i.l.bf16 %v4625_v38  ;;  %1394 = vperm.xlu1 %4873, %v1368_v45   ;;  %v2065_v45 = vld [vmem:[#allocation4 + $0x80] sm:$0xff] }
 0x35c   : > { %v3012_v57 = vsel %vm972_vm11, %v4631_v7, %v4621_v26  ;;  %4135 = vmatpush1.bf16.msk.msra.mxu0 %vm6448_vm0, %v4133_v24 }
 0x35d   : > { %v3014_v44 = vsel %vm972_vm11, %v4632_v6, %v4626_v39  ;;  %v3015_v31 = vsel %vm972_vm11, %v4626_v39, %v4627_v55  ;;  %v4640_v17 = vpop.permute.xlu1 %4639  ;;  %3847 = vmatmul.mubr.msk.f32.gmra.mrb[8].mxu1 %vm1568_vm14, %v1727_v62 }
 0x35e   : > { %v4136_v20 = vpack.c.bf16 %v3015_v31, %v3013_v40  ;;  %v4139_v42 = vpack.c.bf16 %v3014_v44, %v3012_v57  ;;  %v4642_v18 = vunpack.i.h.bf16 %v4640_v17  ;;  %v4641_v46 = vunpack.i.l.bf16 %v4640_v17  ;;  %v4635_v19 = vpop.permute.xlu0 %4634  ;;  %1929 = vmatprep.mubr.f32.mxu1 %v7195_v36  ;;  %v1370_v57 = vld [vmem:[%s6953_s4 + $0x30] sm:$0xff]  ;;  %v3052_v17 = vld [vmem:[#allocation4 + $0x198] sm:$0xff] }
 0x35f   : > { %v4637_v4 = vunpack.i.h.bf16 %v4635_v19  ;;  %v4636_v61 = vunpack.i.l.bf16 %v4635_v19  ;;  %1404 = vperm.xlu1 %4873, %v1370_v57  }
 0x360   : > { %v2019_v37 = vsel %vm627_vm5, %v4641_v46, %v4642_v18  ;;  %4138 = vmatprep.subr.msk.bf16.mxu0 %vm6435_vm15, %v4136_v20 }
 0x361   : > { %v2017_v35 = vsel %vm627_vm5, %v4636_v61, %v4637_v4  ;;  %4141 = vmatpush1.bf16.msk.msra.mxu0 %vm6448_vm0, %v4139_v42  ;;  %v4650_v16 = vpop.permute.xlu1 %4649  ;;  %3848 = vmatmul.mubr.msk.f32.gmra.mrb[10].mxu1 %vm1568_vm14, %v1728_v28 }
 0x362   : > { %v4030_v12 = vpack.c.bf16 %v2019_v37, %v2017_v35  ;;  %v4645_v43 = vpop.permute.xlu0 %4644  ;;  %1935 = vmatprep.mubr.f32.mxu1 %v7195_v36  ;;  %v4652_v41 = vunpack.i.h.bf16 %v4650_v16  ;;  %v4651_v52 = vunpack.i.l.bf16 %v4650_v16 }
 0x363   : > { %v4647_v14 = vunpack.i.h.bf16 %v4645_v43  ;;  %v4646_v54 = vunpack.i.l.bf16 %v4645_v43 }
 0x364   : > { %4032 = vmatprep.subr.msk.bf16.mxu1 %vm6506_vm1, %v4030_v12  ;;  %3947 = vmatmul.mubr.msk.f32.vlgmr.msra.gmra.mrb[0].mxu0 %vm1568_vm14, %v3049_v3  ;;  %v2021_v1 = vsel %vm627_vm5, %v4651_v52, %v4652_v41 }
 0x365   : > { %v2018_v48 = vsel %vm627_vm5, %v4647_v14, %v4641_v46  ;;  %v2016_v34 = vsel %vm627_vm5, %v4646_v54, %v4636_v61  ;;  %v4660_v22 = vpop.permute.xlu1 %4659  ;;  %3849 = vmatmul.mubr.msk.f32.gmra.mrb[12].mxu1 %vm1568_vm14, %v1729_v49  ;;  %3151 = vmatprep.mubr.f32.mxu0 %v7195_v36 }
 0x366   : > { %v4033_v29 = vpack.c.bf16 %v2018_v48, %v2016_v34  ;;  %v4662_v11 = vunpack.i.h.bf16 %v4660_v22  ;;  %v4661_v50 = vunpack.i.l.bf16 %v4660_v22  ;;  %v4655_v23 = vpop.permute.xlu0 %4654  ;;  %1941 = vmatprep.mubr.f32.mxu1 %v7195_v36  ;;  %v3054_v48 = vld [vmem:[#allocation4 + $0x1a8] sm:$0xff] }
 0x367   : > { %v4657_v15 = vunpack.i.h.bf16 %v4655_v23  ;;  %v4656_v33 = vunpack.i.l.bf16 %v4655_v23 }
 0x368   : > { %v2020_v5 = vsel %vm627_vm5, %v4661_v50, %v4651_v52  ;;  %4035 = vmatpush1.bf16.msk.msra.mxu1 %vm6522_vm2, %v4033_v29  ;;  %3948 = vmatmul.mubr.msk.f32.gmra.mrb[2].mxu0 %vm1568_vm14, %v3050_v32 }
 0x369   : > { %v2022_v26 = vsel %vm627_vm5, %v4662_v11, %v4656_v33  ;;  %v2023_v47 = vsel %vm627_vm5, %v4656_v33, %v4657_v15  ;;  %v4670_v53 = vpop.permute.xlu1 %4669  ;;  %3850 = vmatmul.mubr.msk.f32.gmra.mrb[14].mxu1 %vm1568_vm14, %v1730_v27  ;;  %3157 = vmatprep.mubr.f32.mxu0 %v7195_v36 }
 0x36a   : > { %v4036_v24 = vpack.c.bf16 %v2023_v47, %v2021_v1  ;;  %v4039_v6 = vpack.c.bf16 %v2022_v26, %v2020_v5  ;;  %v4672_v7 = vunpack.i.h.bf16 %v4670_v53  ;;  %v4671_v38 = vunpack.i.l.bf16 %v4670_v53  ;;  %v4665_v62 = vpop.permute.xlu0 %4664  ;;  %2161 = vmatprep.mubr.f32.mxu1 %v7195_v36  ;;  %v3055_v26 = vld [vmem:[#allocation4 + $0x1b0] sm:$0xff] }
 0x36b   : > { %v4667_v55 = vunpack.i.h.bf16 %v4665_v62  ;;  %v4666_v39 = vunpack.i.l.bf16 %v4665_v62  ;;  %v2066_v62 = vld [vmem:[#allocation4 + $0x88] sm:$0xff] }
 0x36c   : > { %v2027_v40 = vsel %vm627_vm5, %v4671_v38, %v4672_v7  ;;  %4038 = vmatprep.subr.msk.bf16.mxu1 %vm6506_vm1, %v4036_v24  ;;  %3949 = vmatmul.mubr.msk.f32.gmra.mrb[4].mxu0 %vm1568_vm14, %v3051_v56 }
 0x36d   : > { %v2025_v44 = vsel %vm627_vm5, %v4666_v39, %v4667_v55  ;;  %4041 = vmatpush1.bf16.msk.msra.mxu1 %vm6522_vm2, %v4039_v6  ;;  %v4680_v31 = vpop.permute.xlu1 %4679  ;;  %3163 = vmatprep.mubr.f32.mxu0 %v7195_v36 }
 0x36e   : > { %v4042_v20 = vpack.c.bf16 %v2027_v40, %v2025_v44  ;;  %v4675_v42 = vpop.permute.xlu0 %4674  ;;  %v4682_v19 = vunpack.i.h.bf16 %v4680_v31  ;;  %v4681_v28 = vunpack.i.l.bf16 %v4680_v31  ;;  %v3056_v44 = vld [vmem:[#allocation4 + $0x1b8] sm:$0xff] }
 0x36f   : > { %v4677_v18 = vunpack.i.h.bf16 %v4675_v42  ;;  %v4676_v46 = vunpack.i.l.bf16 %v4675_v42 }
 0x370   : > { %4044 = vmatprep.subr.msk.bf16.mxu1 %vm6506_vm1, %v4042_v20  ;;  %3950 = vmatmul.mubr.msk.f32.gmra.mrb[6].mxu0 %vm1568_vm14, %v3052_v17  ;;  %v2029_v54 = vsel %vm627_vm5, %v4681_v28, %v4682_v19 }
 0x371   : > { %v2026_v4 = vsel %vm627_vm5, %v4677_v18, %v4671_v38  ;;  %v2024_v61 = vsel %vm627_vm5, %v4676_v46, %v4666_v39  ;;  %v4690_v37 = vpop.permute.xlu1 %4689  ;;  %3169 = vmatprep.mubr.f32.mxu0 %v7195_v36 }
 0x372   : > { %v4045_v35 = vpack.c.bf16 %v2026_v4, %v2024_v61  ;;  %v4692_v16 = vunpack.i.h.bf16 %v4690_v37  ;;  %v4691_v3 = vunpack.i.l.bf16 %v4690_v37  ;;  %v4685_v12 = vpop.permute.xlu0 %4684 }
 0x373   : > { %v4687_v43 = vunpack.i.h.bf16 %v4685_v12  ;;  %v4686_v49 = vunpack.i.l.bf16 %v4685_v12 }
 0x374   : > { %v2028_v14 = vsel %vm627_vm5, %v4691_v3, %v4681_v28  ;;  %4047 = vmatpush1.bf16.msk.msra.mxu1 %vm6522_vm2, %v4045_v35  ;;  %3951 = vmatmul.mubr.msk.f32.gmra.mrb[8].mxu0 %vm1568_vm14, %v3053_v9  ;;  %v2067_v28 = vld [vmem:[#allocation4 + $0x90] sm:$0xff] }
 0x375   : > { %v2030_v30 = vsel %vm627_vm5, %v4692_v16, %v4686_v49  ;;  %v2031_v41 = vsel %vm627_vm5, %v4686_v49, %v4687_v43  ;;  %v4700_v52 = vpop.permute.xlu1 %4699  ;;  %3175 = vmatprep.mubr.f32.mxu0 %v7195_v36 }
 0x376   : > { %v4048_v34 = vpack.c.bf16 %v2031_v41, %v2029_v54  ;;  %v4051_v22 = vpack.c.bf16 %v2030_v30, %v2028_v14  ;;  %v4702_v32 = vunpack.i.h.bf16 %v4700_v52  ;;  %v4701_v29 = vunpack.i.l.bf16 %v4700_v52  ;;  %v4695_v11 = vpop.permute.xlu0 %4694  ;;  %v2068_v14 = vld [vmem:[#allocation4 + $0x98] sm:$0xff] }
 0x377   : > { %v4697_v50 = vunpack.i.h.bf16 %v4695_v11  ;;  %v4696_v23 = vunpack.i.l.bf16 %v4695_v11  ;;  %v2069_v11 = vld [vmem:[#allocation4 + $0xa0] sm:$0xff] }
 0x378   : > { %4050 = vmatprep.subr.msk.bf16.mxu1 %vm6506_vm1, %v4048_v34  ;;  %v3270_v27 = vsel %vm1182_vm13, %v4701_v29, %v4702_v32  ;;  %3952 = vmatmul.mubr.msk.f32.gmra.mrb[10].mxu0 %vm1568_vm14, %v3054_v48 }
 0x379   : > { %4053 = vmatpush1.bf16.msk.msra.mxu1 %vm6522_vm2, %v4051_v22  ;;  %v4710_v15 = vpop.permute.xlu1 %4709  ;;  %v3268_v33 = vsel %vm1182_vm13, %v4696_v23, %v4697_v50  ;;  %3181 = vmatprep.mubr.f32.mxu0 %v7195_v36 }
 0x37a   : > { %v4705_v5 = vpop.permute.xlu0 %4704  ;;  %v4142_v1 = vpack.c.bf16 %v3270_v27, %v3268_v33  ;;  %v4712_v56 = vunpack.i.h.bf16 %v4710_v15  ;;  %v4711_v24 = vunpack.i.l.bf16 %v4710_v15 }
 0x37b   : > { %v4707_v47 = vunpack.i.h.bf16 %v4705_v5  ;;  %v4706_v53 = vunpack.i.l.bf16 %v4705_v5 }
 0x37c   : > { %4143 = vmatprep.subr.bf16.mxu0 %v4142_v1  ;;  %3867 = vmatmul.mubr.msk.f32.vlgmr.msra.gmra.mrb[0].mxu1 %vm1568_vm14, %v2065_v45  ;;  %v3272_v46 = vsel %vm1182_vm13, %v4711_v24, %v4712_v56  ;;  %v2070_v56 = vld [vmem:[#allocation4 + $0xa8] sm:$0xff] }
 0x37d   : > { %v3269_v6 = vsel %vm1182_vm13, %v4707_v47, %v4701_v29  ;;  %v3267_v7 = vsel %vm1182_vm13, %v4706_v53, %v4696_v23  ;;  %v4720_v38 = vpop.permute.xlu1 %4719  ;;  %2167 = vmatprep.mubr.f32.mxu1 %v7195_v36  ;;  %3953 = vmatmul.mubr.msk.f32.gmra.mrb[12].mxu0 %vm1568_vm14, %v3055_v26 }
 0x37e   : > { %v4144_v55 = vpack.c.bf16 %v3269_v6, %v3267_v7  ;;  %v4722_v39 = vunpack.i.h.bf16 %v4720_v38  ;;  %v4721_v57 = vunpack.i.l.bf16 %v4720_v38  ;;  %v4715_v40 = vpop.permute.xlu0 %4714  ;;  %3187 = vmatprep.mubr.f32.mxu0 %v7195_v36 }
 0x37f   : > { %v4717_v31 = vunpack.i.h.bf16 %v4715_v40  ;;  %v4716_v17 = vunpack.i.l.bf16 %v4715_v40 }
 0x380   : > { %v3271_v20 = vsel %vm1182_vm13, %v4721_v57, %v4711_v24  ;;  %4145 = vmatpush1.bf16.msra.mxu0 %v4144_v55  ;;  %3868 = vmatmul.mubr.msk.f32.gmra.mrb[2].mxu1 %vm1568_vm14, %v2066_v62 }
 0x381   : > { %v3273_v42 = vsel %vm1182_vm13, %v4722_v39, %v4716_v17  ;;  %v4730_v18 = vpop.permute.xlu1 %4729  ;;  %v3274_v19 = vsel %vm1182_vm13, %v4716_v17, %v4717_v31  ;;  %2173 = vmatprep.mubr.f32.mxu1 %v7195_v36  ;;  %3954 = vmatmul.mubr.msk.f32.gmra.mrb[14].mxu0 %vm1568_vm14, %v3056_v44  ;;  %v2071_v31 = vld [vmem:[#allocation4 + $0xb0] sm:$0xff] }
 0x382   : > { %v4148_v4 = vpack.c.bf16 %v3273_v42, %v3271_v20  ;;  %v4732_v61 = vunpack.i.h.bf16 %v4730_v18  ;;  %v4731_v37 = vunpack.i.l.bf16 %v4730_v18  ;;  %v4725_v9 = vpop.permute.xlu0 %4724  ;;  %v4146_v35 = vpack.c.bf16 %v3274_v19, %v3272_v46  ;;  %3387 = vmatprep.mubr.f32.mxu0 %v7195_v36  ;;  %v3211_v42 = vld [vmem:[#allocation4 + $0x1c0] sm:$0xff] }
 0x383   : > { %v4727_v16 = vunpack.i.h.bf16 %v4725_v9  ;;  %v4726_v3 = vunpack.i.l.bf16 %v4725_v9 }
 0x384   : > { %4147 = vmatprep.subr.bf16.mxu0 %v4146_v35  ;;  %v3278_v12 = vsel %vm1182_vm13, %v4731_v37, %v4732_v61  ;;  %3869 = vmatmul.mubr.msk.f32.gmra.mrb[4].mxu1 %vm1568_vm14, %v2067_v28 }
 0x385   : > { %4149 = vmatpush1.bf16.msra.mxu0 %v4148_v4  ;;  %v4740_v43 = vpop.permute.xlu1 %4739  ;;  %v3276_v49 = vsel %vm1182_vm13, %v4726_v3, %v4727_v16  ;;  %2179 = vmatprep.mubr.f32.mxu1 %v7195_v36 }
 0x386   : > { %v4735_v54 = vpop.permute.xlu0 %4734  ;;  %v4150_v30 = vpack.c.bf16 %v3278_v12, %v3276_v49  ;;  %v4742_v48 = vunpack.i.h.bf16 %v4740_v43  ;;  %v4741_v34 = vunpack.i.l.bf16 %v4740_v43  ;;  %v2072_v12 = vld [vmem:[#allocation4 + $0xb8] sm:$0xff]  ;;  %v3212_v43 = vld [vmem:[#allocation4 + $0x1c8] sm:$0xff] }
 0x387   : > { %v4737_v41 = vunpack.i.h.bf16 %v4735_v54  ;;  %v4736_v52 = vunpack.i.l.bf16 %v4735_v54 }
 0x388   : > { %4151 = vmatprep.subr.bf16.mxu0 %v4150_v30  ;;  %3870 = vmatmul.mubr.msk.f32.gmra.mrb[6].mxu1 %vm1568_vm14, %v2068_v14  ;;  %v3280_v47 = vsel %vm1182_vm13, %v4741_v34, %v4742_v48 }
 0x389   : > { %v3277_v22 = vsel %vm1182_vm13, %v4737_v41, %v4731_v37  ;;  %v3275_v32 = vsel %vm1182_vm13, %v4736_v52, %v4726_v3  ;;  %v4750_v29 = vpop.permute.xlu1 %4749  ;;  %2185 = vmatprep.mubr.f32.mxu1 %v7195_v36 }
 0x38a   : > { %v4152_v50 = vpack.c.bf16 %v3277_v22, %v3275_v32  ;;  %v4752_v23 = vunpack.i.h.bf16 %v4750_v29  ;;  %v4751_v27 = vunpack.i.l.bf16 %v4750_v29  ;;  %v4745_v15 = vpop.permute.xlu0 %4744 }
 0x38b   : > { %v4747_v33 = vunpack.i.h.bf16 %v4745_v15  ;;  %v4746_v45 = vunpack.i.l.bf16 %v4745_v15 }
 0x38c   : > { %v3279_v5 = vsel %vm1182_vm13, %v4751_v27, %v4741_v34  ;;  %4153 = vmatpush1.bf16.msra.mxu0 %v4152_v50  ;;  %3871 = vmatmul.mubr.msk.f32.gmra.mrb[8].mxu1 %vm1568_vm14, %v2069_v11  ;;  %v3213_v50 = vld [vmem:[#allocation4 + $0x1d0] sm:$0xff] }
 0x38d   : > { %v3281_v1 = vsel %vm1182_vm13, %v4752_v23, %v4746_v45  ;;  %v4760_v26 = vpop.permute.xlu1 %4759  ;;  %v3282_v53 = vsel %vm1182_vm13, %v4746_v45, %v4747_v33  ;;  %2191 = vmatprep.mubr.f32.mxu1 %v7195_v36 }
 0x38e   : > { %v4156_v24 = vpack.c.bf16 %v3281_v1, %v3279_v5  ;;  %v4762_v6 = vunpack.i.h.bf16 %v4760_v26  ;;  %v4761_v7 = vunpack.i.l.bf16 %v4760_v26  ;;  %v4755_v38 = vpop.permute.xlu0 %4754  ;;  %v4154_v62 = vpack.c.bf16 %v3282_v53, %v3280_v47  ;;  %v3214_v26 = vld [vmem:[#allocation4 + $0x1d8] sm:$0xff] }
 0x38f   : > { %v4757_v55 = vunpack.i.h.bf16 %v4755_v38  ;;  %v4756_v39 = vunpack.i.l.bf16 %v4755_v38 }
 0x390   : > { %v2277_v57 = vsel %vm712_vm8, %v4761_v7, %v4762_v6  ;;  %4155 = vmatprep.subr.bf16.mxu0 %v4154_v62  ;;  %3872 = vmatmul.mubr.msk.f32.gmra.mrb[10].mxu1 %vm1568_vm14, %v2070_v56 }
 0x391   : > { %v2275_v40 = vsel %vm712_vm8, %v4756_v39, %v4757_v55  ;;  %4157 = vmatpush1.bf16.msra.mxu0 %v4156_v24  ;;  %v4770_v44 = vpop.permute.xlu1 %4769  ;;  %2197 = vmatprep.mubr.f32.mxu1 %v7195_v36 }
 0x392   : > { %v4054_v17 = vpack.c.bf16 %v2277_v57, %v2275_v40  ;;  %v4765_v20 = vpop.permute.xlu0 %4764  ;;  %v4772_v19 = vunpack.i.h.bf16 %v4770_v44  ;;  %v4771_v28 = vunpack.i.l.bf16 %v4770_v44  ;;  %v3215_v40 = vld [vmem:[#allocation4 + $0x1e0] sm:$0xff] }
 0x393   : > { %v4767_v18 = vunpack.i.h.bf16 %v4765_v20  ;;  %v4766_v46 = vunpack.i.l.bf16 %v4765_v20 }
 0x394   : > { %4056 = vmatprep.subr.msk.bf16.mxu1 %vm6435_vm15, %v4054_v17  ;;  %3873 = vmatmul.mubr.msk.f32.gmra.mrb[12].mxu1 %vm1568_vm14, %v2071_v31  ;;  %v2279_v30 = vsel %vm712_vm8, %v4771_v28, %v4772_v19 }
 0x395   : > { %v2276_v4 = vsel %vm712_vm8, %v4767_v18, %v4761_v7  ;;  %v2274_v61 = vsel %vm712_vm8, %v4766_v46, %v4756_v39  ;;  %v4780_v37 = vpop.permute.xlu1 %4779  ;;  %3955 = vmatmul.mubr.msk.f32.vlgmr.msra.gmra.mrb[0].mxu0 %vm1568_vm14, %v3211_v42  ;;  %2203 = vmatprep.mubr.f32.mxu1 %v7195_v36 }
 0x396   : > { %v4057_v9 = vpack.c.bf16 %v2276_v4, %v2274_v61  ;;  %v4782_v35 = vunpack.i.h.bf16 %v4780_v37  ;;  %v4781_v16 = vunpack.i.l.bf16 %v4780_v37  ;;  %v4775_v3 = vpop.permute.xlu0 %4774  ;;  %3393 = vmatprep.mubr.f32.mxu0 %v7195_v36 }
 0x397   : > { %v4777_v49 = vunpack.i.h.bf16 %v4775_v3  ;;  %v4776_v14 = vunpack.i.l.bf16 %v4775_v3 }
 0x398   : > { %v2278_v54 = vsel %vm712_vm8, %v4781_v16, %v4771_v28  ;;  %4059 = vmatpush1.bf16.msk.msra.mxu1 %vm6448_vm0, %v4057_v9  ;;  %v3216_v9 = vld [vmem:[#allocation4 + $0x1e8] sm:$0xff] }
 0x399   : > { %v2280_v41 = vsel %vm712_vm8, %v4782_v35, %v4776_v14  ;;  %v2281_v52 = vsel %vm712_vm8, %v4776_v14, %v4777_v49  ;;  %v4790_v48 = vpop.permute.xlu1 %4789  ;;  %3874 = vmatmul.mubr.msk.f32.gmra.mrb[14].mxu1 %vm1568_vm14, %v2072_v12  ;;  %3956 = vmatmul.mubr.msk.f32.gmra.mrb[2].mxu0 %vm1568_vm14, %v3212_v43  ;;  %v2323_v49 = vld [vmem:[#allocation4 + $0xc0] sm:$0xff] }
 0x39a   : > { %v4060_v34 = vpack.c.bf16 %v2281_v52, %v2279_v30  ;;  %v4063_v22 = vpack.c.bf16 %v2280_v41, %v2278_v54  ;;  %v4792_v32 = vunpack.i.h.bf16 %v4790_v48  ;;  %v4791_v29 = vunpack.i.l.bf16 %v4790_v48  ;;  %v4785_v11 = vpop.permute.xlu0 %4784  ;;  %2419 = vmatprep.mubr.f32.mxu1 %v7195_v36  ;;  %3399 = vmatprep.mubr.f32.mxu0 %v7195_v36  ;;  %v3217_v52 = vld [vmem:[#allocation4 + $0x1f0] sm:$0xff] }
 0x39b   : > { %v4787_v23 = vunpack.i.h.bf16 %v4785_v11  ;;  %v4786_v27 = vunpack.i.l.bf16 %v4785_v11 }
 0x39c   : > { %v2285_v15 = vsel %vm712_vm8, %v4791_v29, %v4792_v32  ;;  %4062 = vmatprep.subr.msk.bf16.mxu1 %vm6435_vm15, %v4060_v34 }
 0x39d   : > { %v2283_v33 = vsel %vm712_vm8, %v4786_v27, %v4787_v23  ;;  %4065 = vmatpush1.bf16.msk.msra.mxu1 %vm6448_vm0, %v4063_v22  ;;  %v4800_v45 = vpop.permute.xlu1 %4799  ;;  %3957 = vmatmul.mubr.msk.f32.gmra.mrb[4].mxu0 %vm1568_vm14, %v3213_v50 }
 0x39e   : > { %v4066_v5 = vpack.c.bf16 %v2285_v15, %v2283_v33  ;;  %v4795_v1 = vpop.permute.xlu0 %4794  ;;  %3405 = vmatprep.mubr.f32.mxu0 %v7195_v36  ;;  %v4802_v56 = vunpack.i.h.bf16 %v4800_v45  ;;  %v4801_v24 = vunpack.i.l.bf16 %v4800_v45  ;;  %v3218_v15 = vld [vmem:[#allocation4 + $0x1f8] sm:$0xff] }
 0x39f   : > { %v4797_v47 = vunpack.i.h.bf16 %v4795_v1  ;;  %v4796_v53 = vunpack.i.l.bf16 %v4795_v1  ;;  %v2325_v1 = vld [vmem:[#allocation4 + $0xd0] sm:$0xff] }
 0x3a0   : > { %4068 = vmatprep.subr.msk.bf16.mxu1 %vm6435_vm15, %v4066_v5  ;;  %v2287_v20 = vsel %vm712_vm8, %v4801_v24, %v4802_v56 }
 0x3a1   : > { %v2284_v6 = vsel %vm712_vm8, %v4797_v47, %v4791_v29  ;;  %v2282_v7 = vsel %vm712_vm8, %v4796_v53, %v4786_v27  ;;  %v4810_v38 = vpop.permute.xlu1 %4809  ;;  %3958 = vmatmul.mubr.msk.f32.gmra.mrb[6].mxu0 %vm1568_vm14, %v3214_v26 }
 0x3a2   : > { %v4069_v62 = vpack.c.bf16 %v2284_v6, %v2282_v7  ;;  %v4812_v55 = vunpack.i.h.bf16 %v4810_v38  ;;  %v4811_v39 = vunpack.i.l.bf16 %v4810_v38  ;;  %v4805_v57 = vpop.permute.xlu0 %4804  ;;  %3411 = vmatprep.mubr.f32.mxu0 %v7195_v36 }
 0x3a3   : > { %v4807_v44 = vunpack.i.h.bf16 %v4805_v57  ;;  %v4806_v31 = vunpack.i.l.bf16 %v4805_v57 }
 0x3a4   : > { %v2286_v17 = vsel %vm712_vm8, %v4811_v39, %v4801_v24  ;;  %4071 = vmatpush1.bf16.msk.msra.mxu1 %vm6448_vm0, %v4069_v62  ;;  %v2326_v62 = vld [vmem:[#allocation4 + $0xd8] sm:$0xff] }
 0x3a5   : > { %v2288_v42 = vsel %vm712_vm8, %v4812_v55, %v4806_v31  ;;  %v2289_v18 = vsel %vm712_vm8, %v4806_v31, %v4807_v44  ;;  %v4820_v46 = vpop.permute.xlu1 %4819  ;;  %3959 = vmatmul.mubr.msk.f32.gmra.mrb[8].mxu0 %vm1568_vm14, %v3215_v40 }
 0x3a6   : > { %v4072_v19 = vpack.c.bf16 %v2289_v18, %v2287_v20  ;;  %v4075_v28 = vpack.c.bf16 %v2288_v42, %v2286_v17  ;;  %v4822_v4 = vunpack.i.h.bf16 %v4820_v46  ;;  %v4821_v61 = vunpack.i.l.bf16 %v4820_v46  ;;  %v4815_v37 = vpop.permute.xlu0 %4814  ;;  %3417 = vmatprep.mubr.f32.mxu0 %v7195_v36 }
 0x3a7   : > { %v4817_v35 = vunpack.i.h.bf16 %v4815_v37  ;;  %v4816_v16 = vunpack.i.l.bf16 %v4815_v37 }
 0x3a8   : > { %v3503_v3 = vsel %vm1237_vm12, %v4821_v61, %v4822_v4  ;;  %4074 = vmatprep.subr.msk.bf16.mxu1 %vm6435_vm15, %v4072_v19 }
 0x3a9   : > { %v3501_v12 = vsel %vm1237_vm12, %v4816_v16, %v4817_v35  ;;  %4077 = vmatpush1.bf16.msk.msra.mxu1 %vm6448_vm0, %v4075_v28  ;;  %v4830_v43 = vpop.permute.xlu1 %4829  ;;  %3960 = vmatmul.mubr.msk.f32.gmra.mrb[10].mxu0 %vm1568_vm14, %v3216_v9  ;;  %v2328_v35 = vld [vmem:[#allocation4 + $0xe8] sm:$0xff] }
 0x3aa   : > { %v4158_v14 = vpack.c.bf16 %v3503_v3, %v3501_v12  ;;  %v4825_v54 = vpop.permute.xlu0 %4824  ;;  %4182 = vmatprep.subr.bf16.mxu1 %v6183_v8  ;;  %3423 = vmatprep.mubr.f32.mxu0 %v7195_v36  ;;  %v4832_v60 = vunpack.i.h.bf16 %v4830_v43  ;;  %v4831_v25 = vunpack.i.l.bf16 %v4830_v43  ;;  %v2324_v8 = vld [vmem:[#allocation4 + $0xc8] sm:$0xff]  ;;  %v2329_v12 = vld [vmem:[#allocation4 + $0xf0] sm:$0xff]  ;;  %v3549_v43 = vld [vmem:[#allocation4 + $0x200] sm:$0xff] }
 0x3ab   : > { %v4827_v30 = vunpack.i.h.bf16 %v4825_v54  ;;  %v4826_v41 = vunpack.i.l.bf16 %v4825_v54  ;;  %v2490_v54 = vld [vmem:[#allocation4 + $0x128] sm:$0xff] }
 0x3ac   : > { %3891 = vmatmul.mubr.msk.f32.vlgmr.msra.gmra.mrb[0].mxu1 %vm1568_vm14, %v2323_v49  ;;  %4160 = vmatprep.subr.msk.bf16.mxu0 %vm6506_vm1, %v4158_v14  ;;  %v2330_v49 = vld [vmem:[#allocation4 + $0xf8] sm:$0xff]  ;;  %v3550_v14 = vld [vmem:[#allocation4 + $0x208] sm:$0xff] }
 0x3ad   : > { %v3502_v48 = vsel %vm1237_vm12, %v4827_v30, %v4821_v61  ;;  %v3500_v34 = vsel %vm1237_vm12, %v4826_v41, %v4816_v16  ;;  %4186 = vmatpush1.bf16.msra.mxu1 %v6206_v59  ;;  %v4840_v22 = vpop.permute.xlu1 %4839  ;;  %2425 = vmatprep.mubr.f32.mxu1 %v7195_v36  ;;  %v3505_v59 = vsel %vm1237_vm12, %v4831_v25, %v4832_v60  ;;  %v3552_v30 = vld [vmem:[#allocation4 + $0x218] sm:$0xff]  ;;  %v2491_v41 = vld [vmem:[#allocation4 + $0x130] sm:$0xff] }
 0x3ae   : > { %v4161_v32 = vpack.c.bf16 %v3502_v48, %v3500_v34  ;;  %v4842_v29 = vunpack.i.h.bf16 %v4840_v22  ;;  %v4841_v11 = vunpack.i.l.bf16 %v4840_v22  ;;  %v4835_v50 = vpop.permute.xlu0 %4834  ;;  %4183 = vmatprep.subr.bf16.mxu1 %v6210_v63  ;;  %3961 = vmatmul.mubr.msk.f32.gmra.mrb[12].mxu0 %vm1568_vm14, %v3217_v52  ;;  %v3553_v52 = vld [vmem:[#allocation4 + $0x220] sm:$0xff]  ;;  %v2492_v60 = vld [vmem:[#allocation4 + $0x138] sm:$0xff]  ;;  %v3555_v48 = vld [vmem:[#allocation4 + $0x230] sm:$0xff] }
 0x3af   : > { %v4837_v23 = vunpack.i.h.bf16 %v4835_v50  ;;  %v4836_v27 = vunpack.i.l.bf16 %v4835_v50  ;;  %3429 = vmatprep.mubr.f32.mxu0 %v7195_v36  ;;  %v3556_v34 = vld [vmem:[#allocation4 + $0x238] sm:$0xff] }
 0x3b0   : > { %v3504_v33 = vsel %vm1237_vm12, %v4841_v11, %v4831_v25  ;;  %3892 = vmatmul.mubr.msk.f32.gmra.mrb[2].mxu1 %vm1568_vm14, %v2324_v8  ;;  %4163 = vmatpush1.bf16.msk.msra.mxu0 %vm6522_vm2, %v4161_v32  ;;  %v3554_v25 = vld [vmem:[#allocation4 + $0x228] sm:$0xff] }
 0x3b1   : > { %v3506_v45 = vsel %vm1237_vm12, %v4842_v29, %v4836_v27  ;;  %v3507_v63 = vsel %vm1237_vm12, %v4836_v27, %v4837_v23  ;;  %4187 = vmatpush1.bf16.msra.mxu1 %v6223_v21  ;;  %v4850_v5 = vpop.permute.xlu1 %4849  ;;  %2431 = vmatprep.mubr.f32.mxu1 %v7195_v36 }
 0x3b2   : > { %v4164_v26 = vpack.c.bf16 %v3507_v63, %v3505_v59  ;;  %v4167_v47 = vpack.c.bf16 %v3506_v45, %v3504_v33  ;;  %v4852_v53 = vunpack.i.h.bf16 %v4850_v5  ;;  %v4851_v56 = vunpack.i.l.bf16 %v4850_v5  ;;  %v4845_v24 = vpop.permute.xlu0 %4844  ;;  %4184 = vmatprep.subr.bf16.mxu1 %v6259_v0  ;;  %3962 = vmatmul.mubr.msk.f32.gmra.mrb[14].mxu0 %vm1568_vm14, %v3218_v15 }
 0x3b3   : > { %v4847_v6 = vunpack.i.h.bf16 %v4845_v24  ;;  %v4846_v7 = vunpack.i.l.bf16 %v4845_v24  ;;  %3645 = vmatprep.mubr.f32.mxu0 %v7195_v36 }
 0x3b4   : > { %v3511_v38 = vsel %vm1237_vm12, %v4851_v56, %v4852_v53  ;;  %3893 = vmatmul.mubr.msk.f32.gmra.mrb[4].mxu1 %vm1568_vm14, %v2325_v1  ;;  %4166 = vmatprep.subr.msk.bf16.mxu0 %vm6506_vm1, %v4164_v26 }
 0x3b5   : > { %v3509_v21 = vsel %vm1237_vm12, %v4846_v7, %v4847_v6  ;;  %4188 = vmatpush1.bf16.msra.mxu1 %v6252_v51  ;;  %4169 = vmatpush1.bf16.msk.msra.mxu0 %vm6522_vm2, %v4167_v47  ;;  %v4860_v0 = vpop.permute.xlu1 %4859 }
 0x3b6   : > { %v4170_v55 = vpack.c.bf16 %v3511_v38, %v3509_v21  ;;  %v4855_v39 = vpop.permute.xlu0 %4854  ;;  %4185 = vmatprep.subr.bf16.mxu1 %v6283_v58  ;;  %2437 = vmatprep.mubr.f32.mxu1 %v7195_v36  ;;  %v4862_v44 = vunpack.i.h.bf16 %v4860_v0  ;;  %v4861_v51 = vunpack.i.l.bf16 %v4860_v0  ;;  %v2327_v58 = vld [vmem:[#allocation4 + $0xe0] sm:$0xff] }
 0x3b7   : > { %v4857_v57 = vunpack.i.h.bf16 %v4855_v39  ;;  %v4856_v40 = vunpack.i.l.bf16 %v4855_v39 }
 0x3b8   : > { %3894 = vmatmul.mubr.msk.f32.gmra.mrb[6].mxu1 %vm1568_vm14, %v2326_v62  ;;  %4172 = vmatprep.subr.msk.bf16.mxu0 %vm6506_vm1, %v4170_v55  ;;  %v3513_v37 = vsel %vm1237_vm12, %v4861_v51, %v4862_v44 }
 0x3b9   : > { %v3510_v31 = vsel %vm1237_vm12, %v4857_v57, %v4851_v56  ;;  %v3508_v17 = vsel %vm1237_vm12, %v4856_v40, %v4846_v7  ;;  %4189 = vmatpush1.bf16.msra.mxu1 %v6287_v10  ;;  %v4870_v20 = vpop.permute.xlu1 %4869  ;;  %2443 = vmatprep.mubr.f32.mxu1 %v7195_v36 }
 0x3ba   : > { %v4173_v42 = vpack.c.bf16 %v3510_v31, %v3508_v17  ;;  %v4872_v18 = vunpack.i.h.bf16 %v4870_v20  ;;  %v4871_v46 = vunpack.i.l.bf16 %v4870_v20  ;;  %v4865_v19 = vpop.permute.xlu0 %4864 }
 0x3bb   : > { %v4867_v28 = vunpack.i.h.bf16 %v4865_v19  ;;  %v4866_v4 = vunpack.i.l.bf16 %v4865_v19 }
 0x3bc   : > { %v3512_v61 = vsel %vm1237_vm12, %v4871_v46, %v4861_v51  ;;  %3895 = vmatmul.mubr.msk.f32.gmra.mrb[8].mxu1 %vm1568_vm14, %v2327_v58  ;;  %4175 = vmatpush1.bf16.msk.msra.mxu0 %vm6522_vm2, %v4173_v42 }
 0x3bd   : > { %v3514_v10 = vsel %vm1237_vm12, %v4872_v18, %v4866_v4  ;;  %v3515_v9 = vsel %vm1237_vm12, %v4866_v4, %v4867_v28  ;;  %2449 = vmatprep.mubr.f32.mxu1 %v7195_v36 }
 0x3be   : > { %v4176_v16 = vpack.c.bf16 %v3515_v9, %v3513_v37  ;;  %v4179_v3 = vpack.c.bf16 %v3514_v10, %v3512_v61 }
 0x3c0   : > { %3896 = vmatmul.mubr.msk.f32.gmra.mrb[10].mxu1 %vm1568_vm14, %v2328_v35  ;;  %4178 = vmatprep.subr.msk.bf16.mxu0 %vm6506_vm1, %v4176_v16 }
 0x3c1   : > { %4181 = vmatpush1.bf16.msk.msra.mxu0 %vm6522_vm2, %v4179_v3  ;;  %2455 = vmatprep.mubr.f32.mxu1 %v7195_v36 }
 0x3c4   : > { %3897 = vmatmul.mubr.msk.f32.gmra.mrb[12].mxu1 %vm1568_vm14, %v2329_v12  ;;  %3979 = vmatmul.mubr.msk.f32.vlgmr.msra.gmra.mrb[0].mxu0 %vm1568_vm14, %v3549_v43 }
 0x3c5   : > { %2461 = vmatprep.mubr.f32.mxu1 %v7195_v36  ;;  %3651 = vmatprep.mubr.f32.mxu0 %v7195_v36 }
 0x3c8   : > { %3898 = vmatmul.mubr.msk.f32.gmra.mrb[14].mxu1 %vm1568_vm14, %v2330_v49  ;;  %3980 = vmatmul.mubr.msk.f32.gmra.mrb[2].mxu0 %vm1568_vm14, %v3550_v14 }
 0x3c9   : > { %2605 = vmatprep.mubr.f32.mxu1 %v7195_v36  ;;  %3657 = vmatprep.mubr.f32.mxu0 %v7195_v36 }
 0x3cb   : > { %v1375_v15 = vpop.permute.xlu0 %1374 }
 0x3cc   : > { %3903 = vmatmul.mubr.msk.f32.vlgmr.msra.gmra.mrb[8].mxu1 %vm1568_vm14, %v2489_v13  ;;  %3981 = vmatmul.mubr.msk.f32.gmra.mrb[4].mxu0 %vm1568_vm14, %v3551_v2 }
 0x3cd   : > { %2611 = vmatprep.mubr.f32.mxu1 %v7195_v36  ;;  %3663 = vmatprep.mubr.f32.mxu0 %v7195_v36 }
 0x3cf   : > { %v1390_v17 = vpop.permute.xlu0 %1389 }
 0x3d0   : > { %3904 = vmatmul.mubr.msk.f32.gmra.mrb[10].mxu1 %vm1568_vm14, %v2490_v54  ;;  %3982 = vmatmul.mubr.msk.f32.gmra.mrb[6].mxu0 %vm1568_vm14, %v3552_v30 }
 0x3d1   : > { %2617 = vmatprep.mubr.f32.mxu1 %v7195_v36  ;;  %3669 = vmatprep.mubr.f32.mxu0 %v7195_v36 }
 0x3d2   : > { %v1380_v33 = vpop.permute.xlu1 %1379 }
 0x3d3   : > { %v1400_v54 = vpop.permute.xlu0 %1399 }
 0x3d4   : > { %3905 = vmatmul.mubr.msk.f32.gmra.mrb[12].mxu1 %vm1568_vm14, %v2491_v41  ;;  %3983 = vmatmul.mubr.msk.f32.gmra.mrb[8].mxu0 %vm1568_vm14, %v3553_v52 }
 0x3d5   : > { %2623 = vmatprep.mubr.f32.mxu1 %v7195_v36  ;;  %3675 = vmatprep.mubr.f32.mxu0 %v7195_v36 }
 0x3d6   : > { %v1385_v56 = vpop.permute.xlu1 %1384 }
 0x3d8   : > { %3906 = vmatmul.mubr.msk.f32.gmra.mrb[14].mxu1 %vm1568_vm14, %v2492_v60  ;;  %3984 = vmatmul.mubr.msk.f32.gmra.mrb[10].mxu0 %vm1568_vm14, %v3554_v25 }
 0x3d9   : > { %3681 = vmatprep.mubr.f32.mxu0 %v7195_v36 }
 0x3da   : > { %v1395_v42 = vpop.permute.xlu1 %1394 }
 0x3dc   : > { %3985 = vmatmul.mubr.msk.f32.gmra.mrb[12].mxu0 %vm1568_vm14, %v3555_v48 }
 0x3dd   : > { %3687 = vmatprep.mubr.f32.mxu0 %v7195_v36 }
 0x3de   : > { %v1405_v52 = vpop.permute.xlu1 %1404 }
 0x3e0   : > { %3986 = vmatmul.mubr.msk.f32.gmra.mrb[14].mxu0 %vm1568_vm14, %v3556_v34 }
 0x47f   : > { %v2421_v22 = vpop.f32.mrb[0].mxu1 }
 0x480   : > { %v2423_v8 = vpop.f32.mrb[1].mxu1  ;;  %v4190_v59 = vadd.f32 %v2421_v22, %v1375_v15 }
 0x481   : > { %v4192_v45 = vadd.f32 %v2423_v8, %v1375_v15 }
 0x483   : > { %v2427_v32 = vpop.f32.mrb[2].mxu1 }
 0x484   : > { %v2429_v29 = vpop.f32.mrb[3].mxu1  ;;  %v4194_v26 = vadd.f32 %v2427_v32, %v1380_v33 }
 0x485   : > { %v4196_v53 = vadd.f32 %v2429_v29, %v1380_v33 }
 0x487   : > { %v2433_v11 = vpop.f32.mrb[4].mxu1 }
 0x488   : > { %v2435_v50 = vpop.f32.mrb[5].mxu1  ;;  %v4198_v0 = vadd.f32 %v2433_v11, %v1385_v56 }
 0x489   : > { %v4200_v55 = vadd.f32 %v2435_v50, %v1385_v56 }
 0x48b   : > { %v2439_v23 = vpop.f32.mrb[6].mxu1 }
 0x48c   : > { %v2441_v27 = vpop.f32.mrb[7].mxu1  ;;  %v4202_v58 = vadd.f32 %v2439_v23, %v1390_v17 }
 0x48d   : > { %v4204_v46 = vadd.f32 %v2441_v27, %v1390_v17 }
 0x497   : > { %v3647_v63 = vpop.f32.mrb[0].mxu0 }
 0x498   : > { %v4191_v5 = vadd.f32 %v4190_v59, %v3647_v63  ;;  %v3649_v1 = vpop.f32.mrb[1].mxu0  ;;  %v1410_v63 = vpop.permute.xlu0 %1409 }
 0x499   : > { %v4193_v36 = vadd.f32 %v4192_v45, %v3649_v1 }
 0x49a   : > { %v3710_v47 = vmax.f32 %v4191_v5, 0.0 }
 0x49b   : > { %v3711_v24 = vmax.f32 %v4193_v36, 0.0  ;;  %v3653_v6 = vpop.f32.mrb[2].mxu0 }
 0x49c   : > { %3726 = vst [vmem:[%s6928_s6] sm:$0xff] %v3710_v47  ;;  %v4195_v7 = vadd.f32 %v4194_v26, %v3653_v6  ;;  %v3655_v38 = vpop.f32.mrb[3].mxu0 }
 0x49d   : > { %3727 = vst [vmem:[%s6928_s6 + $0x8] sm:$0xff] %v3711_v24  ;;  %v4197_v21 = vadd.f32 %v4196_v53, %v3655_v38 }
 0x49e   : > { %v3712_v62 = vmax.f32 %v4195_v7, 0.0 }
 0x49f   : > { %v3713_v39 = vmax.f32 %v4197_v21, 0.0  ;;  %v2607_v57 = vpop.f32.mrb[8].mxu1  ;;  %v3659_v40 = vpop.f32.mrb[4].mxu0 }
 0x4a0   : > { %3728 = vst [vmem:[%s6928_s6 + $0x10] sm:$0xff] %v3712_v62  ;;  %v4199_v44 = vadd.f32 %v4198_v0, %v3659_v40  ;;  %v2609_v51 = vpop.f32.mrb[9].mxu1  ;;  %v3661_v31 = vpop.f32.mrb[5].mxu0  ;;  %v4206_v35 = vadd.f32 %v2607_v57, %v1395_v42 }
 0x4a1   : > { %3729 = vst [vmem:[%s6928_s6 + $0x18] sm:$0xff] %v3713_v39  ;;  %v4201_v20 = vadd.f32 %v4200_v55, %v3661_v31  ;;  %v4208_v3 = vadd.f32 %v2609_v51, %v1395_v42 }
 0x4a2   : > { %v3714_v18 = vmax.f32 %v4199_v44, 0.0 }
 0x4a3   : > { %v3715_v19 = vmax.f32 %v4201_v20, 0.0  ;;  %v2613_v28 = vpop.f32.mrb[10].mxu1  ;;  %v3665_v4 = vpop.f32.mrb[6].mxu0 }
 0x4a4   : > { %3730 = vst [vmem:[%s6928_s6 + $0x20] sm:$0xff] %v3714_v18  ;;  %v4203_v61 = vadd.f32 %v4202_v58, %v3665_v4  ;;  %v2615_v37 = vpop.f32.mrb[11].mxu1  ;;  %v3667_v10 = vpop.f32.mrb[7].mxu0  ;;  %v4210_v41 = vadd.f32 %v2613_v28, %v1400_v54 }
 0x4a5   : > { %3731 = vst [vmem:[%s6928_s6 + $0x28] sm:$0xff] %v3715_v19  ;;  %v4205_v9 = vadd.f32 %v4204_v46, %v3667_v10  ;;  %v4212_v25 = vadd.f32 %v2615_v37, %v1400_v54 }
 0x4a6   : > { %v3716_v16 = vmax.f32 %v4203_v61, 0.0 }
 0x4a7   : > { %v3717_v12 = vmax.f32 %v4205_v9, 0.0  ;;  %v2619_v43 = vpop.f32.mrb[12].mxu1  ;;  %v3671_v49 = vpop.f32.mrb[8].mxu0 }
 0x4a8   : > { %3732 = vst [vmem:[%s6928_s6 + $0x30] sm:$0xff] %v3716_v16  ;;  %v4207_v14 = vadd.f32 %v4206_v35, %v3671_v49  ;;  %v2621_v13 = vpop.f32.mrb[13].mxu1  ;;  %v3673_v2 = vpop.f32.mrb[9].mxu0  ;;  %v4214_v50 = vadd.f32 %v2619_v43, %v1405_v52 }
 0x4a9   : > { %3733 = vst [vmem:[%s6928_s6 + $0x38] sm:$0xff] %v3717_v12  ;;  %v4209_v30 = vadd.f32 %v4208_v3, %v3673_v2  ;;  %v4216_v27 = vadd.f32 %v2621_v13, %v1405_v52 }
 0x4aa   : > { %v3718_v60 = vmax.f32 %v4207_v14, 0.0 }
 0x4ab   : > { %v3719_v48 = vmax.f32 %v4209_v30, 0.0  ;;  %v2625_v34 = vpop.f32.mrb[14].mxu1  ;;  %v3677_v22 = vpop.f32.mrb[10].mxu0 }
 0x4ac   : > { %3734 = vst [vmem:[%s6928_s6 + $0x40] sm:$0xff] %v3718_v60  ;;  %v4211_v8 = vadd.f32 %v4210_v41, %v3677_v22  ;;  %v2627_v32 = vpop.f32.mrb[15].mxu1  ;;  %v3679_v29 = vpop.f32.mrb[11].mxu0  ;;  %v4218_v1 = vadd.f32 %v2625_v34, %v1410_v63 }
 0x4ad   : > { %3735 = vst [vmem:[%s6928_s6 + $0x48] sm:$0xff] %v3719_v48  ;;  %v4213_v11 = vadd.f32 %v4212_v25, %v3679_v29  ;;  %v4220_v26 = vadd.f32 %v2627_v32, %v1410_v63 }
 0x4ae   : > { %v3720_v23 = vmax.f32 %v4211_v8, 0.0 }
 0x4af   : > { %v3721_v15 = vmax.f32 %v4213_v11, 0.0  ;;  %v3683_v33 = vpop.f32.mrb[12].mxu0 }
 0x4b0   : > { %3736 = vst [vmem:[%s6928_s6 + $0x50] sm:$0xff] %v3720_v23  ;;  %v4215_v59 = vadd.f32 %v4214_v50, %v3683_v33  ;;  %v3685_v45 = vpop.f32.mrb[13].mxu0 }
 0x4b1   : > { %3737 = vst [vmem:[%s6928_s6 + $0x58] sm:$0xff] %v3721_v15  ;;  %v4217_v5 = vadd.f32 %v4216_v27, %v3685_v45 }
 0x4b2   : > { %v3722_v36 = vmax.f32 %v4215_v59, 0.0 }
 0x4b3   : > { %v3723_v47 = vmax.f32 %v4217_v5, 0.0  ;;  %v3689_v53 = vpop.f32.mrb[14].mxu0 }
 0x4b4   : > { %3738 = vst [vmem:[%s6928_s6 + $0x60] sm:$0xff] %v3722_v36  ;;  %v4219_v56 = vadd.f32 %v4218_v1, %v3689_v53  ;;  %v3691_v24 = vpop.f32.mrb[15].mxu0 }
 0x4b5   : > { %3739 = vst [vmem:[%s6928_s6 + $0x68] sm:$0xff] %v3723_v47  ;;  %v4221_v6 = vadd.f32 %v4220_v26, %v3691_v24 }
 0x4b6   : > { %v3724_v7 = vmax.f32 %v4219_v56, 0.0 }
 0x4b7   : > { %v3725_v38 = vmax.f32 %v4221_v6, 0.0 }
 0x4b8   : > { %3740 = vst [vmem:[%s6928_s6 + $0x70] sm:$0xff] %v3724_v7 }
 0x4b9   : > { %3741 = vst [vmem:[%s6928_s6 + $0x78] sm:$0xff] %v3725_v38 }
 0x4ba PF: > { %s16_s18 = sadd.s32 1, %s4912_s18  }
 0x4bb   : > { %p13_p3 = scmp.ge.s32.totalorder %s16_s18, 4  }
 0x4bd   :  { %15 = sbr.rel (!%p13_p3) target bundleno = 1 (0x1), region = 83 }
 0x4c4   :  { %3763 = vsyncpa [#allocation5], 1 }
 0x4c5   :  { %3765 = vsyncpa [#allocation5 + $0x1], 1 }

</bundles_post_ra>
